<compile_context>
chip_gen: v7x
topology: tpu7x:2x2x1
jax: 0.10.0
libtpu: 0.0.40
codegen_flags: <defaults>
</compile_context>

<pallas_src>
import functools

import jax
import jax.numpy as jnp
from jax import lax
from jax.experimental import pallas as pl
from jax.experimental.pallas import tpu as pltpu

LN_EPS = 1e-5  # torch.nn.LayerNorm default


def _layernorm(x, w, b):
    # x: (N, C) f32, w/b: (1, C) f32. Biased variance, as in torch.nn.LayerNorm.
    mu = jnp.mean(x, axis=-1, keepdims=True)
    var = jnp.mean((x - mu) ** 2, axis=-1, keepdims=True)
    return (x - mu) * lax.rsqrt(var + LN_EPS) * w + b


def _erf(z):
    # Abramowitz & Stegun 7.1.26 polynomial erf (|err| ~ 1.5e-7 + approx-recip noise).
    # Kept instead of lax.erf to stay on primitives with guaranteed Mosaic lowering;
    # the exp() and the reciprocal both land on the EUP slot.
    p = 0.3275911
    a1, a2, a3, a4, a5 = (0.254829592, -0.284496736, 1.421413741,
                          -1.453152027, 1.061405429)
    az = jnp.abs(z)
    t = pl.reciprocal(1.0 + p * az, approx=True)
    poly = t * (a1 + t * (a2 + t * (a3 + t * (a4 + t * a5))))
    y = 1.0 - poly * jnp.exp(-az * az)
    return jnp.where(z >= 0.0, y, -y)


def _gelu_exact(x):
    # Matches torch.nn.GELU() (erf-based, not tanh approximation).
    return 0.5 * x * (1.0 + _erf(x * 0.7071067811865476))


def block_kernel(x_ref, n1w_ref, n1b_ref, qkvw_ref, projw_ref, projb_ref,
                 n2w_ref, n2b_ref, fc1w_ref, fc1b_ref, fc2w_ref, fc2b_ref,
                 o_ref, x1_acc, h2_acc, mlp_acc, qkv_buf, ctx_buf,
                 *, num_heads, head_dim, n_valid):
    hk = pl.program_id(1)
    C = num_heads * head_dim
    N = x_ref.shape[1]          # padded token count (multiple of 128)

    # ---------- hk == 0: attention branch + MLP accumulator init ----------
    @pl.when(hk == 0)
    def _attention_and_init():
        x = x_ref[0].astype(jnp.float32)                             # (N, C)
        h1 = _layernorm(x, n1w_ref[...], n1b_ref[...])
        # Stage qkv in bf16 VMEM; per-head q/k/v come from Ref slices (address
        # arithmetic) rather than lane-offset slices of a live f32 value.
        qkv_buf[...] = jnp.dot(h1.astype(jnp.bfloat16), qkvw_ref[...],
                               preferred_element_type=jnp.float32
                               ).astype(jnp.bfloat16)                # (N, 3C)

        # Additive bias masking padded KEY columns (hoisted out of the head loop).
        if n_valid != N:
            col = lax.broadcasted_iota(jnp.int32, (1, N), 1)
            kbias = jnp.where(col < n_valid, 0.0, -1e30).astype(jnp.float32)
        else:
            kbias = None

        for hh in range(num_heads):
            lo = hh * head_dim
            qh = qkv_buf[:, lo:lo + head_dim]                        # (N, hd) bf16
            kh = qkv_buf[:, C + lo:C + lo + head_dim]
            vh = qkv_buf[:, 2 * C + lo:2 * C + lo + head_dim]
            # scores: contract head_dim of q and k (NT matmul, lane dim = N).
            s = lax.dot_general(qh, kh, (((1,), (1,)), ((), ())),
                                preferred_element_type=jnp.float32)  # (N, N)
            if kbias is not None:
                s = s + kbias
            s = s - jnp.max(s, axis=-1, keepdims=True)
            e = jnp.exp(s)
            p = e * pl.reciprocal(jnp.sum(e, axis=-1, keepdims=True), approx=True)
            ctx_buf[:, lo:lo + head_dim] = jnp.dot(
                p.astype(jnp.bfloat16), vh,
                preferred_element_type=jnp.float32).astype(jnp.bfloat16)

        # Single fused output projection: full contraction K = C fills the MXU
        # (vs. num_heads matmuls with K = head_dim).
        attn = jnp.dot(ctx_buf[...], projw_ref[...],
                       preferred_element_type=jnp.float32)           # (N, C)

        x1 = x + attn + projb_ref[...]                               # residual 1
        x1_acc[...] = x1
        h2_acc[...] = _layernorm(x1, n2w_ref[...], n2b_ref[...]).astype(jnp.bfloat16)
        mlp_acc[...] = jnp.zeros_like(mlp_acc)

    # ---------- every hk step: one tile of the MLP hidden dimension ----------
    h = jnp.dot(h2_acc[...], fc1w_ref[...],
                preferred_element_type=jnp.float32) + fc1b_ref[...]  # (N, tH) f32
    h = _gelu_exact(h)
    mlp_acc[...] += jnp.dot(h.astype(jnp.bfloat16), fc2w_ref[...],
                            preferred_element_type=jnp.float32)      # (N, C)

    # ---------- last hk step: residual 2 + writeback ----------
    @pl.when(hk == pl.num_programs(1) - 1)
    def _finalize():
        o_ref[0] = (x1_acc[...] + mlp_acc[...] + fc2b_ref[...]).astype(o_ref.dtype)


def _vmem_capacity_bytes():
    # Physical VMEM per TensorCore; conservative fallback is v7x's 64 MiB.
    try:
        info = pltpu.get_tpu_info()
        cap = getattr(info, "vmem_capacity_bytes", None)
        if cap:
            return int(cap)
    except Exception:
        pass
    return 64 * 2 ** 20


def _estimate_vmem_bytes(N, C, tH):
    bf, f4 = 2, 4
    # Pipeline-managed input/output blocks (assume double-buffered).
    blocks = 2 * (2 * N * C * f4                    # x in + out
                  + (3 * C * C + C * C) * bf        # qkv + proj weights
                  + (C * tH + tH * C) * bf          # fc1 / fc2 tiles
                  + (7 * C + tH) * f4)              # LN params + biases
    scratch = N * C * (f4 + bf + f4 + bf) + N * 3 * C * bf
    temps = N * (3 * C + 2 * N + tH + 2 * C) * f4   # rough live f32 temporaries
    return blocks + scratch + temps


def _pick_h_tile(N, C, H, budget):
    # Largest MLP hidden tile that fits the VMEM budget; full H preferred so the
    # fc weights are DMA'd exactly once for the whole grid.
    cands = [H]
    if H % 128 == 0:
        for t in (8192, 4096, 2048, 1024, 512, 256, 128):
            if t < H and H % t == 0:
                cands.append(t)
    for t in cands:
        if _estimate_vmem_bytes(N, C, t) <= budget:
            return t
    return cands[-1]


def prepare_params(params, *, num_heads):
    """Offline param prep: fold q-scale into W_q and cast matmul weights to bf16."""
    C = params["qkv_wT"].shape[0]
    head_dim = C // num_heads
    scale = head_dim ** (-0.5)
    qkv_wT = params["qkv_wT"].astype(jnp.float32).at[:, :C].multiply(scale)
    f32 = lambda a: a.astype(jnp.float32)
    bf16 = lambda a: a.astype(jnp.bfloat16)
    return {
        "n1_w": f32(params["n1_w"]), "n1_b": f32(params["n1_b"]),
        "qkv_wT": bf16(qkv_wT),
        "proj_wT": bf16(params["proj_wT"]), "proj_b": f32(params["proj_b"]),
        "n2_w": f32(params["n2_w"]), "n2_b": f32(params["n2_b"]),
        "fc1_wT": bf16(params["fc1_wT"]), "fc1_b": f32(params["fc1_b"]),
        "fc2_wT": bf16(params["fc2_wT"]), "fc2_b": f32(params["fc2_b"]),
    }


def block_forward(x, prepared, *, num_heads):
    B, N, C = x.shape
    head_dim = C // num_heads
    H = prepared["fc1_wT"].shape[1]

    # Pad tokens to a lane-dense multiple of 128 (scores / p@v have lane dim = N);
    # padded key columns are masked inside the kernel, padded rows sliced off here.
    N_pad = ((N + 127) // 128) * 128
    x_in = jnp.pad(x, ((0, 0), (0, N_pad - N), (0, 0))) if N_pad != N else x

    cap = _vmem_capacity_bytes()
    headroom = max(12 * 2 ** 20, cap // 8)     # Mosaic internal scratch / spills
    budget = cap - headroom
    tH = _pick_h_tile(N_pad, C, H, budget)
    nH = H // tH

    kern = functools.partial(block_kernel, num_heads=num_heads,
                             head_dim=head_dim, n_valid=N)

    full = lambda shape: pl.BlockSpec(shape, lambda b, hk: (0, 0))
    grid_spec = pltpu.PrefetchScalarGridSpec(
        num_scalar_prefetch=0,
        grid=(B, nH),                                            # (batch, H tiles)
        in_specs=[
            pl.BlockSpec((1, N_pad, C), lambda b, hk: (b, 0, 0)),  # x
            full((1, C)), full((1, C)),                            # norm1 w, b
            full((C, 3 * C)),                                      # qkv W^T (bf16, q-scaled)
            full((C, C)), full((1, C)),                            # proj W^T (bf16), b
            full((1, C)), full((1, C)),                            # norm2 w, b
            pl.BlockSpec((C, tH), lambda b, hk: (0, hk)),          # fc1 W^T tile (bf16)
            pl.BlockSpec((1, tH), lambda b, hk: (0, hk)),          # fc1 b tile
            pl.BlockSpec((tH, C), lambda b, hk: (hk, 0)),          # fc2 W^T tile (bf16)
            full((1, C)),                                          # fc2 b
        ],
        out_specs=pl.BlockSpec((1, N_pad, C), lambda b, hk: (b, 0, 0)),
        scratch_shapes=[
            pltpu.VMEM((N_pad, C), jnp.float32),       # x1: post-attention residual
            pltpu.VMEM((N_pad, C), jnp.bfloat16),      # LN2(x1) as bf16 MXU operand
            pltpu.VMEM((N_pad, C), jnp.float32),       # fc2 accumulator
            pltpu.VMEM((N_pad, 3 * C), jnp.bfloat16),  # staged qkv
            pltpu.VMEM((N_pad, C), jnp.bfloat16),      # per-head contexts -> fused proj
        ],
    )

    est = _estimate_vmem_bytes(N_pad, C, tH)
    vmem_limit = int(min(budget, max(32 * 2 ** 20, 2 * est)))

    # Advisory cost estimate for XLA scheduling around the custom call.
    flops = B * (2 * N_pad * (3 * C * C + C * C + 2 * C * H) + 4 * N_pad * N_pad * C)
    transcendentals = B * N_pad * (N_pad * num_heads + H)
    fc_bytes = 2 * C * H * 2                          # fc1 + fc2 in bf16
    bytes_accessed = (2 * B * N_pad * C * 4           # x in + out (f32)
                      + (3 * C * C + C * C) * 2       # resident attention weights
                      + (fc_bytes if nH == 1 else B * fc_bytes)  # fc re-fetch if tiled
                      + (3 * C + H) * 4)              # biases / LN params

    out = pl.pallas_call(
        kern,
        out_shape=jax.ShapeDtypeStruct((B, N_pad, C), x.dtype),
        grid_spec=grid_spec,
        compiler_params=pltpu.CompilerParams(
            dimension_semantics=("parallel", "arbitrary"),
            vmem_limit_bytes=vmem_limit),
        cost_estimate=pl.CostEstimate(flops=flops,
                                      transcendentals=transcendentals,
                                      bytes_accessed=bytes_accessed),
    )(x_in, prepared["n1_w"], prepared["n1_b"], prepared["qkv_wT"],
      prepared["proj_wT"], prepared["proj_b"], prepared["n2_w"], prepared["n2_b"],
      prepared["fc1_wT"], prepared["fc1_b"], prepared["fc2_wT"], prepared["fc2_b"])

    return out[:, :N, :] if N_pad != N else out


def reference_forward(x, params, *, num_heads):
    # Pure-JAX f32 reference mirroring the PyTorch module (eval mode).
    B, N, C = x.shape
    head_dim = C // num_heads
    scale = head_dim ** (-0.5)

    def ln(x, w, b):
        mu = jnp.mean(x, axis=-1, keepdims=True)
        var = jnp.mean((x - mu) ** 2, axis=-1, keepdims=True)
        return (x - mu) / jnp.sqrt(var + LN_EPS) * w[0] + b[0]

    h = ln(x, params["n1_w"], params["n1_b"])
    qkv = h @ params["qkv_wT"]                              # (B, N, 3C)
    qkv = qkv.reshape(B, N, 3, num_heads, head_dim).transpose(2, 0, 3, 1, 4)
    q, k, v = qkv[0] * scale, qkv[1], qkv[2]                # (B, nh, N, hd)
    attn = jax.nn.softmax(q @ k.transpose(0, 1, 3, 2), axis=-1)
    o = (attn @ v).transpose(0, 2, 1, 3).reshape(B, N, C)
    o = o @ params["proj_wT"] + params["proj_b"][0]
    x = x + o
    h = ln(x, params["n2_w"], params["n2_b"])
    h = h @ params["fc1_wT"] + params["fc1_b"][0]
    h = jax.nn.gelu(h, approximate=False)
    h = h @ params["fc2_wT"] + params["fc2_b"][0]
    return x + h


def init_params(key, dim, num_heads, mlp_ratio=4.0):
    H = int(dim * mlp_ratio)
    ks = jax.random.split(key, 6)
    s = 0.02
    return {
        "n1_w": jnp.ones((1, dim), jnp.float32),
        "n1_b": jnp.zeros((1, dim), jnp.float32),
        "qkv_wT": s * jax.random.normal(ks[0], (dim, 3 * dim), jnp.float32),
        "proj_wT": s * jax.random.normal(ks[1], (dim, dim), jnp.float32),
        "proj_b": s * jax.random.normal(ks[2], (1, dim), jnp.float32),
        "n2_w": jnp.ones((1, dim), jnp.float32),
        "n2_b": jnp.zeros((1, dim), jnp.float32),
        "fc1_wT": s * jax.random.normal(ks[3], (dim, H), jnp.float32),
        "fc1_b": s * jax.random.normal(ks[4], (1, H), jnp.float32),
        "fc2_wT": s * jax.random.normal(ks[5], (H, dim), jnp.float32),
        "fc2_b": jnp.zeros((1, dim), jnp.float32),
    }


if __name__ == "__main__":
    # Small but structure-exercising shapes: N=16 -> padded to 128 (masked keys),
    # H = 4*64 = 256 hidden units, 4 heads of head_dim 16.
    B, N, dim, num_heads = 2, 16, 64, 4
    key = jax.random.PRNGKey(0)
    kx, kp = jax.random.split(key)
    x = jax.random.normal(kx, (B, N, dim), jnp.float32)
    params = init_params(kp, dim, num_heads)
    prepared = prepare_params(params, num_heads=num_heads)

    out = block_forward(x, prepared, num_heads=num_heads)
    out = jax.block_until_ready(out)

    ref = reference_forward(x, params, num_heads=num_heads)
    assert out.shape == (B, N, dim)
    # bf16 matmul operands (f32 accumulation) vs f32 reference -> loosened tolerance.
    assert jnp.allclose(out, ref, atol=1e-2, rtol=1e-2), (
        float(jnp.max(jnp.abs(out - ref))))
    print("KERNEL_OK")
</pallas_src>

<mosaic_0001>
module attributes {stable_mosaic.version = 11 : i64} {
  func.func @block_kernel(%arg0: i32, %arg1: i32, %arg2: memref<1x128x64xf32, #tpu.memory_space<vmem>>, %arg3: memref<1x64xf32, #tpu.memory_space<vmem>>, %arg4: memref<1x64xf32, #tpu.memory_space<vmem>>, %arg5: memref<64x192xbf16, #tpu.memory_space<vmem>>, %arg6: memref<64x64xbf16, #tpu.memory_space<vmem>>, %arg7: memref<1x64xf32, #tpu.memory_space<vmem>>, %arg8: memref<1x64xf32, #tpu.memory_space<vmem>>, %arg9: memref<1x64xf32, #tpu.memory_space<vmem>>, %arg10: memref<64x256xbf16, #tpu.memory_space<vmem>>, %arg11: memref<1x256xf32, #tpu.memory_space<vmem>>, %arg12: memref<256x64xbf16, #tpu.memory_space<vmem>>, %arg13: memref<1x64xf32, #tpu.memory_space<vmem>>, %arg14: memref<1x128x64xf32, #tpu.memory_space<vmem>>, %arg15: memref<128x64xf32, #tpu.memory_space<vmem>>, %arg16: memref<128x64xbf16, #tpu.memory_space<vmem>>, %arg17: memref<128x64xf32, #tpu.memory_space<vmem>>, %arg18: memref<128x192xbf16, #tpu.memory_space<vmem>>, %arg19: memref<128x64xbf16, #tpu.memory_space<vmem>>) attributes {dimension_semantics = [#tpu.dimension_semantics<parallel>, #tpu.dimension_semantics<arbitrary>], iteration_bounds = array<i64: 2, 1>, scalar_prefetch = 0 : i64, scratch_operands = 5 : i64, tpu.core_type = #tpu.core_type<tc>, window_params = [{transform_indices = @transform_0, window_bounds = array<i64: 1, 128, 64>}, {pipeline_mode = #tpu.pipeline_mode<synchronous>, transform_indices = @transform_1, window_bounds = array<i64: 1, 64>}, {pipeline_mode = #tpu.pipeline_mode<synchronous>, transform_indices = @transform_2, window_bounds = array<i64: 1, 64>}, {pipeline_mode = #tpu.pipeline_mode<synchronous>, transform_indices = @transform_3, window_bounds = array<i64: 64, 192>}, {pipeline_mode = #tpu.pipeline_mode<synchronous>, transform_indices = @transform_4, window_bounds = array<i64: 64, 64>}, {pipeline_mode = #tpu.pipeline_mode<synchronous>, transform_indices = @transform_5, window_bounds = array<i64: 1, 64>}, {pipeline_mode = #tpu.pipeline_mode<synchronous>, transform_indices = @transform_6, window_bounds = array<i64: 1, 64>}, {pipeline_mode = #tpu.pipeline_mode<synchronous>, transform_indices = @transform_7, window_bounds = array<i64: 1, 64>}, {transform_indices = @transform_8, window_bounds = array<i64: 64, 256>}, {transform_indices = @transform_9, window_bounds = array<i64: 1, 256>}, {transform_indices = @transform_10, window_bounds = array<i64: 256, 64>}, {pipeline_mode = #tpu.pipeline_mode<synchronous>, transform_indices = @transform_11, window_bounds = array<i64: 1, 64>}, {transform_indices = @transform_12, window_bounds = array<i64: 1, 128, 64>}]} {
    %c0_i32 = arith.constant 0 : i32
    %0 = arith.cmpi eq, %arg1, %c0_i32 : i32
    %1 = arith.extui %0 : i1 to i32
    %c0_i32_0 = arith.constant 0 : i32
    %2 = arith.cmpi ne, %1, %c0_i32_0 : i32
    scf.if %2 {
      %c0_29 = arith.constant 0 : index
      %c0_30 = arith.constant 0 : index
      %c0_31 = arith.constant 0 : index
      %57 = vector.load %arg2[%c0_29, %c0_30, %c0_31] : memref<1x128x64xf32, #tpu.memory_space<vmem>>, vector<1x128x64xf32>
      %58 = vector.shape_cast %57 : vector<1x128x64xf32> to vector<128x64xf32>
      %c0_32 = arith.constant 0 : index
      %c0_33 = arith.constant 0 : index
      %59 = vector.load %arg3[%c0_32, %c0_33] : memref<1x64xf32, #tpu.memory_space<vmem>>, vector<1x64xf32>
      %c0_34 = arith.constant 0 : index
      %c0_35 = arith.constant 0 : index
      %60 = vector.load %arg4[%c0_34, %c0_35] : memref<1x64xf32, #tpu.memory_space<vmem>>, vector<1x64xf32>
      %cst_36 = arith.constant dense<0.000000e+00> : vector<128xf32>
      %61 = vector.multi_reduction <add>, %58, %cst_36 [1] : vector<128x64xf32> to vector<128xf32>
      %62 = vector.shape_cast %61 : vector<128xf32> to vector<128x1xf32>
      %cst_37 = arith.constant 6.400000e+01 : f32
      %63 = vector.broadcast %cst_37 : f32 to vector<128x1xf32>
      %64 = arith.divf %62, %63 : vector<128x1xf32>
      %65 = vector.broadcast %64 : vector<128x1xf32> to vector<128x64xf32>
      %66 = arith.subf %58, %65 : vector<128x64xf32>
      %67 = arith.mulf %66, %66 : vector<128x64xf32>
      %cst_38 = arith.constant dense<0.000000e+00> : vector<128xf32>
      %68 = vector.multi_reduction <add>, %67, %cst_38 [1] : vector<128x64xf32> to vector<128xf32>
      %69 = vector.shape_cast %68 : vector<128xf32> to vector<128x1xf32>
      %cst_39 = arith.constant 6.400000e+01 : f32
      %70 = vector.broadcast %cst_39 : f32 to vector<128x1xf32>
      %71 = arith.divf %69, %70 : vector<128x1xf32>
      %72 = vector.broadcast %64 : vector<128x1xf32> to vector<128x64xf32>
      %73 = arith.subf %58, %72 : vector<128x64xf32>
      %cst_40 = arith.constant 9.99999974E-6 : f32
      %74 = vector.broadcast %cst_40 : f32 to vector<128x1xf32>
      %75 = arith.addf %71, %74 : vector<128x1xf32>
      %76 = math.rsqrt %75 : vector<128x1xf32>
      %77 = vector.broadcast %76 : vector<128x1xf32> to vector<128x64xf32>
      %78 = arith.mulf %73, %77 : vector<128x64xf32>
      %79 = vector.broadcast %59 : vector<1x64xf32> to vector<128x64xf32>
      %80 = arith.mulf %78, %79 : vector<128x64xf32>
      %81 = vector.broadcast %60 : vector<1x64xf32> to vector<128x64xf32>
      %82 = arith.addf %80, %81 : vector<128x64xf32>
      %83 = arith.truncf %82 : vector<128x64xf32> to vector<128x64xbf16>
      %c0_41 = arith.constant 0 : index
      %c0_42 = arith.constant 0 : index
      %84 = vector.load %arg5[%c0_41, %c0_42] : memref<64x192xbf16, #tpu.memory_space<vmem>>, vector<64x192xbf16>
      %cst_43 = arith.constant dense<0.000000e+00> : vector<128x192xf32>
      %85 = tpu.matmul %83, %84, %cst_43 {dimension_numbers = #tpu.dot_dimension_numbers<[1], [0], [0], [1], [0, 0, 1, 1], [], []>} : vector<128x64xbf16>, vector<64x192xbf16>, vector<128x192xf32> -> vector<128x192xf32>
      %86 = arith.truncf %85 : vector<128x192xf32> to vector<128x192xbf16>
      %c0_44 = arith.constant 0 : index
      %c0_45 = arith.constant 0 : index
      %87 = vector.load %arg18[%c0_44, %c0_45] : memref<128x192xbf16, #tpu.memory_space<vmem>>, vector<128x192xbf16>
      tpu.vector_store %arg18[%c0_44, %c0_45], %86 {strides = array<i32>} : memref<128x192xbf16, #tpu.memory_space<vmem>>, vector<128x192xbf16>,
      %88 = tpu.iota {dimensions = array<i32: 1>} : vector<1x128xi32>
      %c16_i32 = arith.constant 16 : i32
      %89 = vector.broadcast %c16_i32 : i32 to vector<1x128xi32>
      %90 = arith.cmpi slt, %88, %89 : vector<1x128xi32>
      %cst_46 = arith.constant 0.000000e+00 : f32
      %cst_47 = arith.constant -1.000000e+30 : f32
      %91 = vector.broadcast %cst_46 : f32 to vector<1x128xf32>
      %92 = vector.broadcast %cst_47 : f32 to vector<1x128xf32>
      %93 = arith.select %90, %91, %92 : vector<1x128xi1>, vector<1x128xf32>
      %c0_48 = arith.constant 0 : index
      %c0_49 = arith.constant 0 : index
      %94 = vector.load %arg18[%c0_48, %c0_49] : memref<128x192xbf16, #tpu.memory_space<vmem>>, vector<128x16xbf16>
      %c0_50 = arith.constant 0 : index
      %c64 = arith.constant 64 : index
      %95 = vector.load %arg18[%c0_50, %c64] : memref<128x192xbf16, #tpu.memory_space<vmem>>, vector<128x16xbf16>
      %c0_51 = arith.constant 0 : index
      %c128 = arith.constant 128 : index
      %96 = vector.load %arg18[%c0_51, %c128] : memref<128x192xbf16, #tpu.memory_space<vmem>>, vector<128x16xbf16>
      %cst_52 = arith.constant dense<0.000000e+00> : vector<128x128xf32>
      %97 = tpu.matmul %94, %95, %cst_52 {dimension_numbers = #tpu.dot_dimension_numbers<[1], [1], [0], [0], [0, 0, 1, 0], [], []>} : vector<128x16xbf16>, vector<128x16xbf16>, vector<128x128xf32> -> vector<128x128xf32>
      %98 = vector.broadcast %93 : vector<1x128xf32> to vector<128x128xf32>
      %99 = arith.addf %97, %98 : vector<128x128xf32>
      %cst_53 = arith.constant dense<0xFF800000> : vector<128xf32>
      %100 = vector.multi_reduction <maximumf>, %99, %cst_53 [1] : vector<128x128xf32> to vector<128xf32>
      %101 = vector.shape_cast %100 : vector<128xf32> to vector<128x1xf32>
      %102 = vector.broadcast %101 : vector<128x1xf32> to vector<128x128xf32>
      %103 = arith.subf %99, %102 : vector<128x128xf32>
      %104 = math.exp %103 : vector<128x128xf32>
      %cst_54 = arith.constant dense<0.000000e+00> : vector<128xf32>
      %105 = vector.multi_reduction <add>, %104, %cst_54 [1] : vector<128x128xf32> to vector<128xf32>
      %106 = vector.shape_cast %105 : vector<128xf32> to vector<128x1xf32>
      %107 = tpu.reciprocal %106 {approx = true} : vector<128x1xf32> -> vector<128x1xf32>
      %108 = vector.broadcast %107 : vector<128x1xf32> to vector<128x128xf32>
      %109 = arith.mulf %104, %108 : vector<128x128xf32>
      %110 = arith.truncf %109 : vector<128x128xf32> to vector<128x128xbf16>
      %cst_55 = arith.constant dense<0.000000e+00> : vector<128x16xf32>
      %111 = tpu.matmul %110, %96, %cst_55 {dimension_numbers = #tpu.dot_dimension_numbers<[1], [0], [0], [1], [0, 0, 1, 1], [], []>} : vector<128x128xbf16>, vector<128x16xbf16>, vector<128x16xf32> -> vector<128x16xf32>
      %112 = arith.truncf %111 : vector<128x16xf32> to vector<128x16xbf16>
      %c0_56 = arith.constant 0 : index
      %c0_57 = arith.constant 0 : index
      %113 = vector.load %arg19[%c0_56, %c0_57] : memref<128x64xbf16, #tpu.memory_space<vmem>>, vector<128x16xbf16>
      tpu.vector_store %arg19[%c0_56, %c0_57], %112 {strides = array<i32>} : memref<128x64xbf16, #tpu.memory_space<vmem>>, vector<128x16xbf16>,
      %c0_58 = arith.constant 0 : index
      %c16 = arith.constant 16 : index
      %114 = vector.load %arg18[%c0_58, %c16] : memref<128x192xbf16, #tpu.memory_space<vmem>>, vector<128x16xbf16>
      %c0_59 = arith.constant 0 : index
      %c80 = arith.constant 80 : index
      %115 = vector.load %arg18[%c0_59, %c80] : memref<128x192xbf16, #tpu.memory_space<vmem>>, vector<128x16xbf16>
      %c0_60 = arith.constant 0 : index
      %c144 = arith.constant 144 : index
      %116 = vector.load %arg18[%c0_60, %c144] : memref<128x192xbf16, #tpu.memory_space<vmem>>, vector<128x16xbf16>
      %cst_61 = arith.constant dense<0.000000e+00> : vector<128x128xf32>
      %117 = tpu.matmul %114, %115, %cst_61 {dimension_numbers = #tpu.dot_dimension_numbers<[1], [1], [0], [0], [0, 0, 1, 0], [], []>} : vector<128x16xbf16>, vector<128x16xbf16>, vector<128x128xf32> -> vector<128x128xf32>
      %118 = vector.broadcast %93 : vector<1x128xf32> to vector<128x128xf32>
      %119 = arith.addf %117, %118 : vector<128x128xf32>
      %cst_62 = arith.constant dense<0xFF800000> : vector<128xf32>
      %120 = vector.multi_reduction <maximumf>, %119, %cst_62 [1] : vector<128x128xf32> to vector<128xf32>
      %121 = vector.shape_cast %120 : vector<128xf32> to vector<128x1xf32>
      %122 = vector.broadcast %121 : vector<128x1xf32> to vector<128x128xf32>
      %123 = arith.subf %119, %122 : vector<128x128xf32>
      %124 = math.exp %123 : vector<128x128xf32>
      %cst_63 = arith.constant dense<0.000000e+00> : vector<128xf32>
      %125 = vector.multi_reduction <add>, %124, %cst_63 [1] : vector<128x128xf32> to vector<128xf32>
      %126 = vector.shape_cast %125 : vector<128xf32> to vector<128x1xf32>
      %127 = tpu.reciprocal %126 {approx = true} : vector<128x1xf32> -> vector<128x1xf32>
      %128 = vector.broadcast %127 : vector<128x1xf32> to vector<128x128xf32>
      %129 = arith.mulf %124, %128 : vector<128x128xf32>
      %130 = arith.truncf %129 : vector<128x128xf32> to vector<128x128xbf16>
      %cst_64 = arith.constant dense<0.000000e+00> : vector<128x16xf32>
      %131 = tpu.matmul %130, %116, %cst_64 {dimension_numbers = #tpu.dot_dimension_numbers<[1], [0], [0], [1], [0, 0, 1, 1], [], []>} : vector<128x128xbf16>, vector<128x16xbf16>, vector<128x16xf32> -> vector<128x16xf32>
      %132 = arith.truncf %131 : vector<128x16xf32> to vector<128x16xbf16>
      %c0_65 = arith.constant 0 : index
      %c16_66 = arith.constant 16 : index
      %133 = vector.load %arg19[%c0_65, %c16_66] : memref<128x64xbf16, #tpu.memory_space<vmem>>, vector<128x16xbf16>
      tpu.vector_store %arg19[%c0_65, %c16_66], %132 {strides = array<i32>} : memref<128x64xbf16, #tpu.memory_space<vmem>>, vector<128x16xbf16>,
      %c0_67 = arith.constant 0 : index
      %c32 = arith.constant 32 : index
      %134 = vector.load %arg18[%c0_67, %c32] : memref<128x192xbf16, #tpu.memory_space<vmem>>, vector<128x16xbf16>
      %c0_68 = arith.constant 0 : index
      %c96 = arith.constant 96 : index
      %135 = vector.load %arg18[%c0_68, %c96] : memref<128x192xbf16, #tpu.memory_space<vmem>>, vector<128x16xbf16>
      %c0_69 = arith.constant 0 : index
      %c160 = arith.constant 160 : index
      %136 = vector.load %arg18[%c0_69, %c160] : memref<128x192xbf16, #tpu.memory_space<vmem>>, vector<128x16xbf16>
      %cst_70 = arith.constant dense<0.000000e+00> : vector<128x128xf32>
      %137 = tpu.matmul %134, %135, %cst_70 {dimension_numbers = #tpu.dot_dimension_numbers<[1], [1], [0], [0], [0, 0, 1, 0], [], []>} : vector<128x16xbf16>, vector<128x16xbf16>, vector<128x128xf32> -> vector<128x128xf32>
      %138 = vector.broadcast %93 : vector<1x128xf32> to vector<128x128xf32>
      %139 = arith.addf %137, %138 : vector<128x128xf32>
      %cst_71 = arith.constant dense<0xFF800000> : vector<128xf32>
      %140 = vector.multi_reduction <maximumf>, %139, %cst_71 [1] : vector<128x128xf32> to vector<128xf32>
      %141 = vector.shape_cast %140 : vector<128xf32> to vector<128x1xf32>
      %142 = vector.broadcast %141 : vector<128x1xf32> to vector<128x128xf32>
      %143 = arith.subf %139, %142 : vector<128x128xf32>
      %144 = math.exp %143 : vector<128x128xf32>
      %cst_72 = arith.constant dense<0.000000e+00> : vector<128xf32>
      %145 = vector.multi_reduction <add>, %144, %cst_72 [1] : vector<128x128xf32> to vector<128xf32>
      %146 = vector.shape_cast %145 : vector<128xf32> to vector<128x1xf32>
      %147 = tpu.reciprocal %146 {approx = true} : vector<128x1xf32> -> vector<128x1xf32>
      %148 = vector.broadcast %147 : vector<128x1xf32> to vector<128x128xf32>
      %149 = arith.mulf %144, %148 : vector<128x128xf32>
      %150 = arith.truncf %149 : vector<128x128xf32> to vector<128x128xbf16>
      %cst_73 = arith.constant dense<0.000000e+00> : vector<128x16xf32>
      %151 = tpu.matmul %150, %136, %cst_73 {dimension_numbers = #tpu.dot_dimension_numbers<[1], [0], [0], [1], [0, 0, 1, 1], [], []>} : vector<128x128xbf16>, vector<128x16xbf16>, vector<128x16xf32> -> vector<128x16xf32>
      %152 = arith.truncf %151 : vector<128x16xf32> to vector<128x16xbf16>
      %c0_74 = arith.constant 0 : index
      %c32_75 = arith.constant 32 : index
      %153 = vector.load %arg19[%c0_74, %c32_75] : memref<128x64xbf16, #tpu.memory_space<vmem>>, vector<128x16xbf16>
      tpu.vector_store %arg19[%c0_74, %c32_75], %152 {strides = array<i32>} : memref<128x64xbf16, #tpu.memory_space<vmem>>, vector<128x16xbf16>,
      %c0_76 = arith.constant 0 : index
      %c48 = arith.constant 48 : index
      %154 = vector.load %arg18[%c0_76, %c48] : memref<128x192xbf16, #tpu.memory_space<vmem>>, vector<128x16xbf16>
      %c0_77 = arith.constant 0 : index
      %c112 = arith.constant 112 : index
      %155 = vector.load %arg18[%c0_77, %c112] : memref<128x192xbf16, #tpu.memory_space<vmem>>, vector<128x16xbf16>
      %c0_78 = arith.constant 0 : index
      %c176 = arith.constant 176 : index
      %156 = vector.load %arg18[%c0_78, %c176] : memref<128x192xbf16, #tpu.memory_space<vmem>>, vector<128x16xbf16>
      %cst_79 = arith.constant dense<0.000000e+00> : vector<128x128xf32>
      %157 = tpu.matmul %154, %155, %cst_79 {dimension_numbers = #tpu.dot_dimension_numbers<[1], [1], [0], [0], [0, 0, 1, 0], [], []>} : vector<128x16xbf16>, vector<128x16xbf16>, vector<128x128xf32> -> vector<128x128xf32>
      %158 = vector.broadcast %93 : vector<1x128xf32> to vector<128x128xf32>
      %159 = arith.addf %157, %158 : vector<128x128xf32>
      %cst_80 = arith.constant dense<0xFF800000> : vector<128xf32>
      %160 = vector.multi_reduction <maximumf>, %159, %cst_80 [1] : vector<128x128xf32> to vector<128xf32>
      %161 = vector.shape_cast %160 : vector<128xf32> to vector<128x1xf32>
      %162 = vector.broadcast %161 : vector<128x1xf32> to vector<128x128xf32>
      %163 = arith.subf %159, %162 : vector<128x128xf32>
      %164 = math.exp %163 : vector<128x128xf32>
      %cst_81 = arith.constant dense<0.000000e+00> : vector<128xf32>
      %165 = vector.multi_reduction <add>, %164, %cst_81 [1] : vector<128x128xf32> to vector<128xf32>
      %166 = vector.shape_cast %165 : vector<128xf32> to vector<128x1xf32>
      %167 = tpu.reciprocal %166 {approx = true} : vector<128x1xf32> -> vector<128x1xf32>
      %168 = vector.broadcast %167 : vector<128x1xf32> to vector<128x128xf32>
      %169 = arith.mulf %164, %168 : vector<128x128xf32>
      %170 = arith.truncf %169 : vector<128x128xf32> to vector<128x128xbf16>
      %cst_82 = arith.constant dense<0.000000e+00> : vector<128x16xf32>
      %171 = tpu.matmul %170, %156, %cst_82 {dimension_numbers = #tpu.dot_dimension_numbers<[1], [0], [0], [1], [0, 0, 1, 1], [], []>} : vector<128x128xbf16>, vector<128x16xbf16>, vector<128x16xf32> -> vector<128x16xf32>
      %172 = arith.truncf %171 : vector<128x16xf32> to vector<128x16xbf16>
      %c0_83 = arith.constant 0 : index
      %c48_84 = arith.constant 48 : index
      %173 = vector.load %arg19[%c0_83, %c48_84] : memref<128x64xbf16, #tpu.memory_space<vmem>>, vector<128x16xbf16>
      tpu.vector_store %arg19[%c0_83, %c48_84], %172 {strides = array<i32>} : memref<128x64xbf16, #tpu.memory_space<vmem>>, vector<128x16xbf16>,
      %c0_85 = arith.constant 0 : index
      %c0_86 = arith.constant 0 : index
      %174 = vector.load %arg19[%c0_85, %c0_86] : memref<128x64xbf16, #tpu.memory_space<vmem>>, vector<128x64xbf16>
      %c0_87 = arith.constant 0 : index
      %c0_88 = arith.constant 0 : index
      %175 = vector.load %arg6[%c0_87, %c0_88] : memref<64x64xbf16, #tpu.memory_space<vmem>>, vector<64x64xbf16>
      %cst_89 = arith.constant dense<0.000000e+00> : vector<128x64xf32>
      %176 = tpu.matmul %174, %175, %cst_89 {dimension_numbers = #tpu.dot_dimension_numbers<[1], [0], [0], [1], [0, 0, 1, 1], [], []>} : vector<128x64xbf16>, vector<64x64xbf16>, vector<128x64xf32> -> vector<128x64xf32>
      %177 = arith.addf %58, %176 : vector<128x64xf32>
      %c0_90 = arith.constant 0 : index
      %c0_91 = arith.constant 0 : index
      %178 = vector.load %arg7[%c0_90, %c0_91] : memref<1x64xf32, #tpu.memory_space<vmem>>, vector<1x64xf32>
      %179 = vector.broadcast %178 : vector<1x64xf32> to vector<128x64xf32>
      %180 = arith.addf %177, %179 : vector<128x64xf32>
      %c0_92 = arith.constant 0 : index
      %c0_93 = arith.constant 0 : index
      %181 = vector.load %arg15[%c0_92, %c0_93] : memref<128x64xf32, #tpu.memory_space<vmem>>, vector<128x64xf32>
      tpu.vector_store %arg15[%c0_92, %c0_93], %180 {strides = array<i32>} : memref<128x64xf32, #tpu.memory_space<vmem>>, vector<128x64xf32>,
      %c0_94 = arith.constant 0 : index
      %c0_95 = arith.constant 0 : index
      %182 = vector.load %arg8[%c0_94, %c0_95] : memref<1x64xf32, #tpu.memory_space<vmem>>, vector<1x64xf32>
      %c0_96 = arith.constant 0 : index
      %c0_97 = arith.constant 0 : index
      %183 = vector.load %arg9[%c0_96, %c0_97] : memref<1x64xf32, #tpu.memory_space<vmem>>, vector<1x64xf32>
      %cst_98 = arith.constant dense<0.000000e+00> : vector<128xf32>
      %184 = vector.multi_reduction <add>, %180, %cst_98 [1] : vector<128x64xf32> to vector<128xf32>
      %185 = vector.shape_cast %184 : vector<128xf32> to vector<128x1xf32>
      %cst_99 = arith.constant 6.400000e+01 : f32
      %186 = vector.broadcast %cst_99 : f32 to vector<128x1xf32>
      %187 = arith.divf %185, %186 : vector<128x1xf32>
      %188 = vector.broadcast %187 : vector<128x1xf32> to vector<128x64xf32>
      %189 = arith.subf %180, %188 : vector<128x64xf32>
      %190 = arith.mulf %189, %189 : vector<128x64xf32>
      %cst_100 = arith.constant dense<0.000000e+00> : vector<128xf32>
      %191 = vector.multi_reduction <add>, %190, %cst_100 [1] : vector<128x64xf32> to vector<128xf32>
      %192 = vector.shape_cast %191 : vector<128xf32> to vector<128x1xf32>
      %cst_101 = arith.constant 6.400000e+01 : f32
      %193 = vector.broadcast %cst_101 : f32 to vector<128x1xf32>
      %194 = arith.divf %192, %193 : vector<128x1xf32>
      %195 = vector.broadcast %187 : vector<128x1xf32> to vector<128x64xf32>
      %196 = arith.subf %180, %195 : vector<128x64xf32>
      %cst_102 = arith.constant 9.99999974E-6 : f32
      %197 = vector.broadcast %cst_102 : f32 to vector<128x1xf32>
      %198 = arith.addf %194, %197 : vector<128x1xf32>
      %199 = math.rsqrt %198 : vector<128x1xf32>
      %200 = vector.broadcast %199 : vector<128x1xf32> to vector<128x64xf32>
      %201 = arith.mulf %196, %200 : vector<128x64xf32>
      %202 = vector.broadcast %182 : vector<1x64xf32> to vector<128x64xf32>
      %203 = arith.mulf %201, %202 : vector<128x64xf32>
      %204 = vector.broadcast %183 : vector<1x64xf32> to vector<128x64xf32>
      %205 = arith.addf %203, %204 : vector<128x64xf32>
      %206 = arith.truncf %205 : vector<128x64xf32> to vector<128x64xbf16>
      %c0_103 = arith.constant 0 : index
      %c0_104 = arith.constant 0 : index
      %207 = vector.load %arg16[%c0_103, %c0_104] : memref<128x64xbf16, #tpu.memory_space<vmem>>, vector<128x64xbf16>
      tpu.vector_store %arg16[%c0_103, %c0_104], %206 {strides = array<i32>} : memref<128x64xbf16, #tpu.memory_space<vmem>>, vector<128x64xbf16>,
      %cst_105 = arith.constant 0.000000e+00 : f32
      %208 = vector.broadcast %cst_105 : f32 to vector<128x64xf32>
      %c0_106 = arith.constant 0 : index
      %c0_107 = arith.constant 0 : index
      %209 = vector.load %arg17[%c0_106, %c0_107] : memref<128x64xf32, #tpu.memory_space<vmem>>, vector<128x64xf32>
      tpu.vector_store %arg17[%c0_106, %c0_107], %208 {strides = array<i32>} : memref<128x64xf32, #tpu.memory_space<vmem>>, vector<128x64xf32>,
    } else {
    }
    %c0 = arith.constant 0 : index
    %c0_1 = arith.constant 0 : index
    %3 = vector.load %arg16[%c0, %c0_1] : memref<128x64xbf16, #tpu.memory_space<vmem>>, vector<128x64xbf16>
    %c0_2 = arith.constant 0 : index
    %c0_3 = arith.constant 0 : index
    %4 = vector.load %arg10[%c0_2, %c0_3] : memref<64x256xbf16, #tpu.memory_space<vmem>>, vector<64x256xbf16>
    %cst = arith.constant dense<0.000000e+00> : vector<128x256xf32>
    %5 = tpu.matmul %3, %4, %cst {dimension_numbers = #tpu.dot_dimension_numbers<[1], [0], [0], [1], [0, 0, 1, 1], [], []>} : vector<128x64xbf16>, vector<64x256xbf16>, vector<128x256xf32> -> vector<128x256xf32>
    %c0_4 = arith.constant 0 : index
    %c0_5 = arith.constant 0 : index
    %6 = vector.load %arg11[%c0_4, %c0_5] : memref<1x256xf32, #tpu.memory_space<vmem>>, vector<1x256xf32>
    %7 = vector.broadcast %6 : vector<1x256xf32> to vector<128x256xf32>
    %8 = arith.addf %5, %7 : vector<128x256xf32>
    %cst_6 = arith.constant 5.000000e-01 : f32
    %9 = vector.broadcast %cst_6 : f32 to vector<128x256xf32>
    %10 = arith.mulf %9, %8 : vector<128x256xf32>
    %cst_7 = arith.constant 0.707106769 : f32
    %11 = vector.broadcast %cst_7 : f32 to vector<128x256xf32>
    %12 = arith.mulf %8, %11 : vector<128x256xf32>
    %13 = math.absf %12 : vector<128x256xf32>
    %cst_8 = arith.constant 0.327591091 : f32
    %14 = vector.broadcast %cst_8 : f32 to vector<128x256xf32>
    %15 = arith.mulf %14, %13 : vector<128x256xf32>
    %cst_9 = arith.constant 1.000000e+00 : f32
    %16 = vector.broadcast %cst_9 : f32 to vector<128x256xf32>
    %17 = arith.addf %16, %15 : vector<128x256xf32>
    %18 = tpu.reciprocal %17 {approx = true} : vector<128x256xf32> -> vector<128x256xf32>
    %cst_10 = arith.constant 1.06140542 : f32
    %19 = vector.broadcast %cst_10 : f32 to vector<128x256xf32>
    %20 = arith.mulf %18, %19 : vector<128x256xf32>
    %cst_11 = arith.constant -1.45315206 : f32
    %21 = vector.broadcast %cst_11 : f32 to vector<128x256xf32>
    %22 = arith.addf %21, %20 : vector<128x256xf32>
    %23 = arith.mulf %18, %22 : vector<128x256xf32>
    %cst_12 = arith.constant 1.42141378 : f32
    %24 = vector.broadcast %cst_12 : f32 to vector<128x256xf32>
    %25 = arith.addf %24, %23 : vector<128x256xf32>
    %26 = arith.mulf %18, %25 : vector<128x256xf32>
    %cst_13 = arith.constant -0.284496725 : f32
    %27 = vector.broadcast %cst_13 : f32 to vector<128x256xf32>
    %28 = arith.addf %27, %26 : vector<128x256xf32>
    %29 = arith.mulf %18, %28 : vector<128x256xf32>
    %cst_14 = arith.constant 0.254829586 : f32
    %30 = vector.broadcast %cst_14 : f32 to vector<128x256xf32>
    %31 = arith.addf %30, %29 : vector<128x256xf32>
    %32 = arith.mulf %18, %31 : vector<128x256xf32>
    %cst_15 = arith.constant 0.000000e+00 : f32
    %33 = vector.broadcast %cst_15 : f32 to vector<128x256xf32>
    %34 = arith.subf %33, %13 : vector<128x256xf32>
    %35 = arith.mulf %34, %13 : vector<128x256xf32>
    %36 = math.exp %35 : vector<128x256xf32>
    %37 = arith.mulf %32, %36 : vector<128x256xf32>
    %cst_16 = arith.constant 1.000000e+00 : f32
    %38 = vector.broadcast %cst_16 : f32 to vector<128x256xf32>
    %39 = arith.subf %38, %37 : vector<128x256xf32>
    %cst_17 = arith.constant 0.000000e+00 : f32
    %40 = vector.broadcast %cst_17 : f32 to vector<128x256xf32>
    %41 = arith.cmpf oge, %12, %40 : vector<128x256xf32>
    %cst_18 = arith.constant 0.000000e+00 : f32
    %42 = vector.broadcast %cst_18 : f32 to vector<128x256xf32>
    %43 = arith.subf %42, %39 : vector<128x256xf32>
    %44 = arith.select %41, %39, %43 : vector<128x256xi1>, vector<128x256xf32>
    %cst_19 = arith.constant 1.000000e+00 : f32
    %45 = vector.broadcast %cst_19 : f32 to vector<128x256xf32>
    %46 = arith.addf %45, %44 : vector<128x256xf32>
    %47 = arith.mulf %10, %46 : vector<128x256xf32>
    %c0_20 = arith.constant 0 : index
    %c0_21 = arith.constant 0 : index
    %48 = vector.load %arg17[%c0_20, %c0_21] : memref<128x64xf32, #tpu.memory_space<vmem>>, vector<128x64xf32>
    %49 = arith.truncf %47 : vector<128x256xf32> to vector<128x256xbf16>
    %c0_22 = arith.constant 0 : index
    %c0_23 = arith.constant 0 : index
    %50 = vector.load %arg12[%c0_22, %c0_23] : memref<256x64xbf16, #tpu.memory_space<vmem>>, vector<256x64xbf16>
    %cst_24 = arith.constant dense<0.000000e+00> : vector<128x64xf32>
    %51 = tpu.matmul %49, %50, %cst_24 {dimension_numbers = #tpu.dot_dimension_numbers<[1], [0], [0], [1], [0, 0, 1, 1], [], []>} : vector<128x256xbf16>, vector<256x64xbf16>, vector<128x64xf32> -> vector<128x64xf32>
    %52 = arith.addf %48, %51 : vector<128x64xf32>
    %c0_25 = arith.constant 0 : index
    %c0_26 = arith.constant 0 : index
    %53 = vector.load %arg17[%c0_25, %c0_26] : memref<128x64xf32, #tpu.memory_space<vmem>>, vector<128x64xf32>
    tpu.vector_store %arg17[%c0_25, %c0_26], %52 {strides = array<i32>} : memref<128x64xf32, #tpu.memory_space<vmem>>, vector<128x64xf32>,
    %c0_i32_27 = arith.constant 0 : i32
    %54 = arith.cmpi eq, %arg1, %c0_i32_27 : i32
    %55 = arith.extui %54 : i1 to i32
    %c0_i32_28 = arith.constant 0 : i32
    %56 = arith.cmpi ne, %55, %c0_i32_28 : i32
    scf.if %56 {
      %c0_29 = arith.constant 0 : index
      %c0_30 = arith.constant 0 : index
      %57 = vector.load %arg15[%c0_29, %c0_30] : memref<128x64xf32, #tpu.memory_space<vmem>>, vector<128x64xf32>
      %c0_31 = arith.constant 0 : index
      %c0_32 = arith.constant 0 : index
      %58 = vector.load %arg17[%c0_31, %c0_32] : memref<128x64xf32, #tpu.memory_space<vmem>>, vector<128x64xf32>
      %59 = arith.addf %57, %58 : vector<128x64xf32>
      %c0_33 = arith.constant 0 : index
      %c0_34 = arith.constant 0 : index
      %60 = vector.load %arg13[%c0_33, %c0_34] : memref<1x64xf32, #tpu.memory_space<vmem>>, vector<1x64xf32>
      %61 = vector.broadcast %60 : vector<1x64xf32> to vector<128x64xf32>
      %62 = arith.addf %59, %61 : vector<128x64xf32>
      %c0_35 = arith.constant 0 : index
      %c0_36 = arith.constant 0 : index
      %c0_37 = arith.constant 0 : index
      %63 = vector.load %arg14[%c0_35, %c0_36, %c0_37] : memref<1x128x64xf32, #tpu.memory_space<vmem>>, vector<1x128x64xf32>
      %64 = vector.shape_cast %63 : vector<1x128x64xf32> to vector<128x64xf32>
      %65 = vector.shape_cast %62 : vector<128x64xf32> to vector<1x128x64xf32>
      tpu.vector_store %arg14[%c0_35, %c0_36, %c0_37], %65 {strides = array<i32>} : memref<1x128x64xf32, #tpu.memory_space<vmem>>, vector<1x128x64xf32>,
    } else {
    }
    return
  }
  func.func @transform_0(%arg0: i32, %arg1: i32) -> (i32, i32, i32) {
    %c0_i32 = arith.constant 0 : i32
    %c0_i32_0 = arith.constant 0 : i32
    %c0_i32_1 = arith.constant 0 : i32
    return %arg0, %c0_i32, %c0_i32_0 : i32, i32, i32
  }
  func.func @transform_1(%arg0: i32, %arg1: i32) -> (i32, i32) {
    %c0_i32 = arith.constant 0 : i32
    %c0_i32_0 = arith.constant 0 : i32
    %c0_i32_1 = arith.constant 0 : i32
    return %c0_i32, %c0_i32_0 : i32, i32
  }
  func.func @transform_2(%arg0: i32, %arg1: i32) -> (i32, i32) {
    %c0_i32 = arith.constant 0 : i32
    %c0_i32_0 = arith.constant 0 : i32
    %c0_i32_1 = arith.constant 0 : i32
    return %c0_i32, %c0_i32_0 : i32, i32
  }
  func.func @transform_3(%arg0: i32, %arg1: i32) -> (i32, i32) {
    %c0_i32 = arith.constant 0 : i32
    %c0_i32_0 = arith.constant 0 : i32
    %c0_i32_1 = arith.constant 0 : i32
    return %c0_i32, %c0_i32_0 : i32, i32
  }
  func.func @transform_4(%arg0: i32, %arg1: i32) -> (i32, i32) {
    %c0_i32 = arith.constant 0 : i32
    %c0_i32_0 = arith.constant 0 : i32
    %c0_i32_1 = arith.constant 0 : i32
    return %c0_i32, %c0_i32_0 : i32, i32
  }
  func.func @transform_5(%arg0: i32, %arg1: i32) -> (i32, i32) {
    %c0_i32 = arith.constant 0 : i32
    %c0_i32_0 = arith.constant 0 : i32
    %c0_i32_1 = arith.constant 0 : i32
    return %c0_i32, %c0_i32_0 : i32, i32
  }
  func.func @transform_6(%arg0: i32, %arg1: i32) -> (i32, i32) {
    %c0_i32 = arith.constant 0 : i32
    %c0_i32_0 = arith.constant 0 : i32
    %c0_i32_1 = arith.constant 0 : i32
    return %c0_i32, %c0_i32_0 : i32, i32
  }
  func.func @transform_7(%arg0: i32, %arg1: i32) -> (i32, i32) {
    %c0_i32 = arith.constant 0 : i32
    %c0_i32_0 = arith.constant 0 : i32
    %c0_i32_1 = arith.constant 0 : i32
    return %c0_i32, %c0_i32_0 : i32, i32
  }
  func.func @transform_8(%arg0: i32, %arg1: i32) -> (i32, i32) {
    %c0_i32 = arith.constant 0 : i32
    %c0_i32_0 = arith.constant 0 : i32
    return %c0_i32, %arg1 : i32, i32
  }
  func.func @transform_9(%arg0: i32, %arg1: i32) -> (i32, i32) {
    %c0_i32 = arith.constant 0 : i32
    %c0_i32_0 = arith.constant 0 : i32
    return %c0_i32, %arg1 : i32, i32
  }
  func.func @transform_10(%arg0: i32, %arg1: i32) -> (i32, i32) {
    %c0_i32 = arith.constant 0 : i32
    %c0_i32_0 = arith.constant 0 : i32
    return %arg1, %c0_i32 : i32, i32
  }
  func.func @transform_11(%arg0: i32, %arg1: i32) -> (i32, i32) {
    %c0_i32 = arith.constant 0 : i32
    %c0_i32_0 = arith.constant 0 : i32
    %c0_i32_1 = arith.constant 0 : i32
    return %c0_i32, %c0_i32_0 : i32, i32
  }
  func.func @transform_12(%arg0: i32, %arg1: i32) -> (i32, i32, i32) {
    %c0_i32 = arith.constant 0 : i32
    %c0_i32_0 = arith.constant 0 : i32
    %c0_i32_1 = arith.constant 0 : i32
    return %arg0, %c0_i32, %c0_i32_0 : i32, i32, i32
  }
}

</mosaic_0001>

<bundles_post_ra>
// kernel: tpu_custom_call.1
= control target key start
LH: loop header
LB: loop body
LE: loop exit
PB: predicated region body
PF: predicated region fallthrough
CT: control target
= control target key end

     0   :  { %s6359_s21 = smov 0   ;;  %s6361_s22 = smov 0   ;;  %s9138_s0 = inlined_call_operand.vmem [shape: f32[2,128,64], index: 0, kind: input, shape index: {}]   ;;  %s9139_s1 = inlined_call_operand.vmem [shape: f32[1,64], index: 1, kind: input, shape index: {}]   ;;  %s9140_s2 = inlined_call_operand.vmem [shape: f32[1,64], index: 2, kind: input, shape index: {}]   ;;  %s9141_s3 = inlined_call_operand.vmem [shape: bf16[64,192], index: 3, kind: input, shape index: {}]   ;;  %s9142_s4 = inlined_call_operand.vmem [shape: bf16[64,64], index: 4, kind: input, shape index: {}]   ;;  %s9143_s5 = inlined_call_operand.vmem [shape: f32[1,64], index: 5, kind: input, shape index: {}]   ;;  %s9144_s6 = inlined_call_operand.vmem [shape: f32[1,64], index: 6, kind: input, shape index: {}]   ;;  %s9145_s7 = inlined_call_operand.vmem [shape: f32[1,64], index: 7, kind: input, shape index: {}]   ;;  %s9146_s8 = inlined_call_operand.vmem [shape: bf16[64,256], index: 8, kind: input, shape index: {}]   ;;  %s9147_s9 = inlined_call_operand.vmem [shape: f32[1,256], index: 9, kind: input, shape index: {}]   ;;  %s9148_s10 = inlined_call_operand.vmem [shape: bf16[256,64], index: 10, kind: input, shape index: {}]   ;;  %s9149_s11 = inlined_call_operand.vmem [shape: f32[1,64], index: 11, kind: input, shape index: {}]   ;;  %s9150_s12 = inlined_call_operand.vmem [shape: f32[2,128,64], index: 12, kind: output, shape index: {}]  }
   0x1   :  { %s6363_s23 = smov 0  }
   0x2 LB: > { %s34_s24 = sadd.s32 1, %s6278_s22  ;;  %p5071_p0 = scmp.ge.s32.totalorder %s6282_s23, 1  ;;  %s6282_s23 = sphi %s6363_s23, %s22_s23   ;;  %s6278_s22 = sphi %s6361_s22, %s9210_s22   ;;  %s6274_s21 = sphi %s6359_s21, %s9209_s21  }
   0x3   : > { %p36_p1 = scmp.ge.s32.totalorder %s34_s24, 2  ;;  %p406_p2 = scmp.lt.s32.totalorder %s6282_s23, 3 }
   0x5   : > { %s9212_s24 = smov (%p36_p1, %s34_s24), 0  ;;  %p407_p3 = pnand %p5071_p0, %p406_p2 }
   0x7   : > { %410 = sbr.rel (%p407_p3) target bundleno = 4173 (0x104d), region = 68 }
   0xe   : > { %p462_p4 = scmp.lt.s32.totalorder %s6274_s21, 1  ;;  %vm512_vm0 = vcmask 523264   ;;  %vm1035_vm1 = vcmask 130048   ;;  %s6285_s19 = smov 64   ;;  %vm1968_vm3 = vcmask 261248   ;;  %vm2499_vm4 = vcmask 392448  }
   0xf   : > { %s6286_s20 = smov 48   ;;  %s6287_s26 = smov 112   ;;  %vm3030_vm5 = vcmask 523648  }
  0x10   : > { %s9214_s21 = smov (!%p462_p4, %s6274_s21), 1  ;;  %s6288_s27 = smov 32  }
  0x11   : > { %s5176_s25 = sshll.u32 %s9214_s21, 7  ;;  %s6290_s29 = smov 96  }
  0x12   : > { %s6385_s28 = scalar_lea.vmem %s9138_s0, %s5176_s25  ;;  %s6291_s30 = smov 16  }
  0x13   : > { %v494_v0 = vld [vmem:[%s6385_s28] sm:$0xff]  ;;  %v496_v1 = vld [vmem:[%s6385_s28 + $0x10] sm:$0xff]  ;;  %v495_v2 = vld [vmem:[%s6385_s28 + $0x8] sm:$0xff]  ;;  %s6292_s13 = smov 80   ;;  %s9065_s17 = scalar_lea.vmem %s9150_s12, %s5176_s25 }
  0x14   : > { %v513_v3 = vsel %vm512_vm0, %v494_v0, 0.0  ;;  %v519_v4 = vsel %vm512_vm0, %v496_v1, 0.0  ;;  %v497_v5 = vld [vmem:[%s6385_s28 + $0x18] sm:$0xff]  ;;  %v6394_v6 = vld [vmem:[%s6385_s28 + $0x20] sm:$0xff]  ;;  %v6397_v7 = vld [vmem:[%s6385_s28 + $0x28] sm:$0xff]  ;;  %v516_v8 = vsel %vm512_vm0, %v495_v2, 0.0 }
  0x15   : > { %514 = vadd.xlane.f32.xlu0 %v513_v3  ;;  %520 = vadd.xlane.f32.xlu1 %v519_v4  ;;  %v522_v9 = vsel %vm512_vm0, %v497_v5, 0.0  ;;  %v6402_v10 = vld [vmem:[%s6385_s28 + $0x30] sm:$0xff]  ;;  %v6405_v11 = vld [vmem:[%s6385_s28 + $0x38] sm:$0xff]  ;;  %v6408_v12 = vld [vmem:[%s6385_s28 + $0x40] sm:$0xff]  ;;  %v525_v14 = vsel %vm512_vm0, %v6394_v6, 0.0  ;;  %v528_v15 = vsel %vm512_vm0, %v6397_v7, 0.0 }
  0x16   : > { %v6411_v13 = vld [vmem:[%s6385_s28 + $0x48] sm:$0xff]  ;;  %v531_v16 = vsel %vm512_vm0, %v6402_v10, 0.0  ;;  %v534_v17 = vsel %vm512_vm0, %v6405_v11, 0.0  ;;  %v537_v18 = vsel %vm512_vm0, %v6408_v12, 0.0  ;;  %v6426_v20 = vld [vmem:[%s6385_s28 + $0x50] sm:$0xff]  ;;  %v6429_v21 = vld [vmem:[%s6385_s28 + $0x58] sm:$0xff] }
  0x17   : > { %v540_v19 = vsel %vm512_vm0, %v6411_v13, 0.0  ;;  %v543_v22 = vsel %vm512_vm0, %v6426_v20, 0.0  ;;  %v546_v23 = vsel %vm512_vm0, %v6429_v21, 0.0  ;;  %v6436_v24 = vld [vmem:[%s6385_s28 + $0x60] sm:$0xff]  ;;  %v6439_v25 = vld [vmem:[%s6385_s28 + $0x68] sm:$0xff]  ;;  %v6446_v28 = vld [vmem:[%s6385_s28 + $0x70] sm:$0xff] }
  0x18   : > { %v549_v26 = vsel %vm512_vm0, %v6436_v24, 0.0  ;;  %v552_v27 = vsel %vm512_vm0, %v6439_v25, 0.0  ;;  %v6449_v29 = vld [vmem:[%s6385_s28 + $0x78] sm:$0xff]  ;;  %v555_v30 = vsel %vm512_vm0, %v6446_v28, 0.0 }
  0x19   : > { %517 = vadd.xlane.f32.xlu0 %v516_v8  ;;  %523 = vadd.xlane.f32.xlu1 %v522_v9  ;;  %v558_v31 = vsel %vm512_vm0, %v6449_v29, 0.0 }
  0x1d   : > { %526 = vadd.xlane.f32.xlu0 %v525_v14  ;;  %529 = vadd.xlane.f32.xlu1 %v528_v15 }
  0x21   : > { %532 = vadd.xlane.f32.xlu0 %v531_v16  ;;  %535 = vadd.xlane.f32.xlu1 %v534_v17 }
  0x25   : > { %538 = vadd.xlane.f32.xlu0 %v537_v18  ;;  %541 = vadd.xlane.f32.xlu1 %v540_v19 }
  0x29   : > { %544 = vadd.xlane.f32.xlu0 %v543_v22  ;;  %547 = vadd.xlane.f32.xlu1 %v546_v23 }
  0x2d   : > { %550 = vadd.xlane.f32.xlu0 %v549_v26  ;;  %553 = vadd.xlane.f32.xlu1 %v552_v27 }
  0x31   : > { %556 = vadd.xlane.f32.xlu0 %v555_v30  ;;  %559 = vadd.xlane.f32.xlu1 %v558_v31 }
  0xa2   : > { %v515_v32 = vpop.xlane.xlu0 %514  ;;  %v521_v33 = vpop.xlane.xlu1 %520 }
  0xa3   : > { %v562_v34 = vmul.f32 0.015625, %v515_v32  ;;  %v564_v35 = vmul.f32 0.015625, %v521_v33 }
  0xa5   : > { %v6455_v36 = vsub.f32 %v494_v0, %v562_v34  ;;  %v6457_v37 = vsub.f32 %v496_v1, %v564_v35 }
  0xa6   : > { %v518_v38 = vpop.xlane.xlu0 %517  ;;  %v524_v39 = vpop.xlane.xlu1 %523 }
  0xa7   : > { %v563_v40 = vmul.f32 0.015625, %v518_v38  ;;  %v565_v41 = vmul.f32 0.015625, %v524_v39  ;;  %v594_v42 = vmul.f32 %v6455_v36, %v6455_v36  ;;  %v596_v43 = vmul.f32 %v6457_v37, %v6457_v37 }
  0xa9   : > { %v6463_v44 = vsub.f32 %v495_v2, %v563_v40  ;;  %v6465_v45 = vsub.f32 %v497_v5, %v565_v41  ;;  %v610_v46 = vsel %vm512_vm0, %v594_v42, 0.0  ;;  %v616_v49 = vsel %vm512_vm0, %v596_v43, 0.0 }
  0xaa   : > { %611 = vadd.xlane.f32.xlu0 %v610_v46  ;;  %v527_v47 = vpop.xlane.xlu0 %526  ;;  %v530_v48 = vpop.xlane.xlu1 %529 }
  0xab   : > { %v566_v50 = vmul.f32 0.015625, %v527_v47  ;;  %v567_v51 = vmul.f32 0.015625, %v530_v48  ;;  %v595_v52 = vmul.f32 %v6463_v44, %v6463_v44  ;;  %v597_v53 = vmul.f32 %v6465_v45, %v6465_v45 }
  0xad   : > { %v6474_v54 = vsub.f32 %v6394_v6, %v566_v50  ;;  %v6477_v55 = vsub.f32 %v6397_v7, %v567_v51  ;;  %v613_v56 = vsel %vm512_vm0, %v595_v52, 0.0  ;;  %v619_v59 = vsel %vm512_vm0, %v597_v53, 0.0  ;;  %v5747_v53 = vld [vmem:[%s9141_s3 + $0x14] ss:$8 sps:$4 sm:$0xff]  }
  0xae   : > { %617 = vadd.xlane.f32.xlu0 %v616_v49  ;;  %614 = vadd.xlane.f32.xlu1 %v613_v56  ;;  %v533_v57 = vpop.xlane.xlu0 %532  ;;  %v536_v58 = vpop.xlane.xlu1 %535  ;;  %v5744_v49 = vld [vmem:[%s9141_s3 + $0x4] ss:$8 sps:$4 sm:$0xff]  }
  0xaf   : > { %v568_v60 = vmul.f32 0.015625, %v533_v57  ;;  %v569_v61 = vmul.f32 0.015625, %v536_v58  ;;  %v598_v62 = vmul.f32 %v6474_v54, %v6474_v54  ;;  %v599_v63 = vmul.f32 %v6477_v55, %v6477_v55  ;;  %846 = vmatprep.subr.bf16.mxu0 %v5744_v49  ;;  %v5749_v57 = vld [vmem:[%s9141_s3 + $0x10] ss:$8 sps:$4 sm:$0xff]   ;;  %v5750_v58 = vld [vmem:[%s9141_s3 + $0x24] ss:$8 sps:$4 sm:$0xff]  }
  0xb1   : > { %v6486_v0 = vsub.f32 %v6402_v10, %v568_v60  ;;  %v6489_v1 = vsub.f32 %v6405_v11, %v569_v61  ;;  %v622_v2 = vsel %vm512_vm0, %v598_v62, 0.0  ;;  %v625_v5 = vsel %vm512_vm0, %v599_v63, 0.0  ;;  %v5753_v60 = vld [vmem:[%s9141_s3 + $0x34] ss:$8 sps:$4 sm:$0xff]   ;;  %v5755_v61 = vld [vmem:[%s9141_s3 + $0x30] ss:$8 sps:$4 sm:$0xff]  }
  0xb2   : > { %620 = vadd.xlane.f32.xlu1 %v619_v59  ;;  %623 = vadd.xlane.f32.xlu0 %v622_v2  ;;  %v539_v3 = vpop.xlane.xlu0 %538  ;;  %v542_v4 = vpop.xlane.xlu1 %541  ;;  %v5752_v59 = vld [vmem:[%s9141_s3 + $0x20] ss:$8 sps:$4 sm:$0xff]   ;;  %v9152_v62 = vmov 0  }
  0xb3   : > { %v570_v6 = vmul.f32 0.015625, %v539_v3  ;;  %v571_v7 = vmul.f32 0.015625, %v542_v4  ;;  %v600_v8 = vmul.f32 %v6486_v0, %v6486_v0  ;;  %v601_v9 = vmul.f32 %v6489_v1, %v6489_v1  ;;  %878 = vmatprep.mubr.bf16.mxu0 %v9152_v62 }
  0xb5   : > { %v6498_v10 = vsub.f32 %v6408_v12, %v570_v6  ;;  %v6501_v11 = vsub.f32 %v6411_v13, %v571_v7  ;;  %v628_v14 = vsel %vm512_vm0, %v600_v8, 0.0  ;;  %v631_v17 = vsel %vm512_vm0, %v601_v9, 0.0 }
  0xb6   : > { %626 = vadd.xlane.f32.xlu1 %v625_v5  ;;  %629 = vadd.xlane.f32.xlu0 %v628_v14  ;;  %v545_v15 = vpop.xlane.xlu0 %544  ;;  %v548_v16 = vpop.xlane.xlu1 %547 }
  0xb7   : > { %v572_v18 = vmul.f32 0.015625, %v545_v15  ;;  %v573_v19 = vmul.f32 0.015625, %v548_v16  ;;  %v602_v22 = vmul.f32 %v6498_v10, %v6498_v10  ;;  %v603_v12 = vmul.f32 %v6501_v11, %v6501_v11 }
  0xb9   : > { %v6510_v23 = vsub.f32 %v6426_v20, %v572_v18  ;;  %v6513_v13 = vsub.f32 %v6429_v21, %v573_v19  ;;  %v634_v26 = vsel %vm512_vm0, %v602_v22, 0.0  ;;  %v637_v31 = vsel %vm512_vm0, %v603_v12, 0.0 }
  0xba   : > { %632 = vadd.xlane.f32.xlu1 %v631_v17  ;;  %635 = vadd.xlane.f32.xlu0 %v634_v26  ;;  %v551_v27 = vpop.xlane.xlu0 %550  ;;  %v554_v30 = vpop.xlane.xlu1 %553 }
  0xbb   : > { %v574_v32 = vmul.f32 0.015625, %v551_v27  ;;  %v575_v33 = vmul.f32 0.015625, %v554_v30  ;;  %v604_v34 = vmul.f32 %v6510_v23, %v6510_v23  ;;  %v605_v20 = vmul.f32 %v6513_v13, %v6513_v13 }
  0xbd   : > { %v6522_v35 = vsub.f32 %v6436_v24, %v574_v32  ;;  %v6525_v21 = vsub.f32 %v6439_v25, %v575_v33  ;;  %v640_v38 = vsel %vm512_vm0, %v604_v34, 0.0  ;;  %v643_v41 = vsel %vm512_vm0, %v605_v20, 0.0  ;;  %v6576_v34 = vld [vmem:[%s9139_s1] ss:$0 sm:$0xff] }
  0xbe   : > { %638 = vadd.xlane.f32.xlu1 %v637_v31  ;;  %641 = vadd.xlane.f32.xlu0 %v640_v38  ;;  %v557_v39 = vpop.xlane.xlu0 %556  ;;  %v560_v40 = vpop.xlane.xlu1 %559 }
  0xbf   : > { %v576_v42 = vmul.f32 0.015625, %v557_v39  ;;  %v577_v43 = vmul.f32 0.015625, %v560_v40  ;;  %v606_v46 = vmul.f32 %v6522_v35, %v6522_v35  ;;  %v607_v24 = vmul.f32 %v6525_v21, %v6525_v21 }
  0xc1   : > { %v6534_v47 = vsub.f32 %v6446_v28, %v576_v42  ;;  %v6537_v25 = vsub.f32 %v6449_v29, %v577_v43  ;;  %v646_v48 = vsel %vm512_vm0, %v606_v46, 0.0  ;;  %v649_v50 = vsel %vm512_vm0, %v607_v24, 0.0  ;;  %v5746_v29 = vld [vmem:[%s9141_s3] ss:$8 sps:$4 sm:$0xff]  }
  0xc2   : > { %644 = vadd.xlane.f32.xlu1 %v643_v41  ;;  %647 = vadd.xlane.f32.xlu0 %v646_v48 }
  0xc3   : > { %v608_v51 = vmul.f32 %v6534_v47, %v6534_v47  ;;  %v609_v28 = vmul.f32 %v6537_v25, %v6537_v25  ;;  %847 = vmatpush1.bf16.msra.mxu0 %v5746_v29 }
  0xc4   : > { %848 = vmatprep.subr.bf16.mxu0 %v5747_v53 }
  0xc5   : > { %v652_v52 = vsel %vm512_vm0, %v608_v51, 0.0  ;;  %v655_v56 = vsel %vm512_vm0, %v609_v28, 0.0 }
  0xc6   : > { %650 = vadd.xlane.f32.xlu1 %v649_v50  ;;  %653 = vadd.xlane.f32.xlu0 %v652_v52 }
  0xc7   : > { %849 = vmatpush1.bf16.msra.mxu0 %v5749_v57 }
  0xc8   : > { %850 = vmatprep.subr.bf16.mxu0 %v5750_v58 }
  0xca   : > { %656 = vadd.xlane.f32.xlu1 %v655_v56 }
  0xcb   : > { %851 = vmatpush1.bf16.msra.mxu0 %v5752_v59 }
  0xcc   : > { %852 = vmatprep.subr.bf16.mxu0 %v5753_v60 }
  0xcf   : > { %853 = vmatpush1.bf16.msra.mxu0 %v5755_v61 }
 0x137   : > { %v612_v63 = vpop.xlane.xlu0 %611 }
 0x138   : > { %v658_v2 = vmul.f32 0.015625, %v612_v63 }
 0x13a   : > { %v674_v3 = vadd.f32 1e-05, %v658_v2 }
 0x13b   : > { %v615_v4 = vpop.xlane.xlu1 %614  ;;  %v618_v5 = vpop.xlane.xlu0 %617 }
 0x13c   : > { %5788 = vrsqrt.f32 %v674_v3  ;;  %v659_v6 = vmul.f32 0.015625, %v615_v4  ;;  %v660_v7 = vmul.f32 0.015625, %v618_v5 }
 0x13e   : > { %v675_v8 = vadd.f32 1e-05, %v659_v6  ;;  %v676_v9 = vadd.f32 1e-05, %v660_v7 }
 0x13f   : > { %v621_v14 = vpop.xlane.xlu1 %620  ;;  %v624_v15 = vpop.xlane.xlu0 %623 }
 0x140   : > { %5790 = vrsqrt.f32 %v675_v8  ;;  %v661_v16 = vmul.f32 0.015625, %v621_v14  ;;  %v662_v18 = vmul.f32 0.015625, %v624_v15 }
 0x141   : > { %5792 = vrsqrt.f32 %v676_v9 }
 0x142   : > { %v677_v17 = vadd.f32 1e-05, %v661_v16  ;;  %v678_v26 = vadd.f32 1e-05, %v662_v18 }
 0x143   : > { %v627_v19 = vpop.xlane.xlu1 %626  ;;  %v630_v30 = vpop.xlane.xlu0 %629 }
 0x144   : > { %5794 = vrsqrt.f32 %v677_v17  ;;  %v663_v22 = vmul.f32 0.015625, %v627_v19  ;;  %v664_v38 = vmul.f32 0.015625, %v630_v30 }
 0x146   : > { %v5789_v12 = vpop.eup %5788  ;;  %v679_v27 = vadd.f32 1e-05, %v663_v22  ;;  %v680_v48 = vadd.f32 1e-05, %v664_v38 }
 0x147   : > { %v633_v31 = vpop.xlane.xlu1 %632  ;;  %v706_v32 = vmul.f32 %v5789_v12, %v6455_v36  ;;  %v6583_v36 = vld [vmem:[%s9140_s2] ss:$0 sm:$0xff]  ;;  %v636_v49 = vpop.xlane.xlu0 %635 }
 0x148   : > { %5796 = vrsqrt.f32 %v679_v27  ;;  %v665_v33 = vmul.f32 0.015625, %v633_v31  ;;  %v666_v57 = vmul.f32 0.015625, %v636_v49 }
 0x149   : > { %5798 = vrsqrt.f32 %v678_v26  ;;  %v728_v40 = vmul.f32 %v6576_v34, %v706_v32 }
 0x14a   : > { %v5791_v20 = vpop.eup %5790  ;;  %v681_v42 = vadd.f32 1e-05, %v665_v33  ;;  %v682_v63 = vadd.f32 1e-05, %v666_v57 }
 0x14b   : > { %v707_v39 = vmul.f32 %v5791_v20, %v6463_v44  ;;  %v5793_v41 = vpop.eup %5792  ;;  %v639_v43 = vpop.xlane.xlu1 %638  ;;  %v750_v50 = vadd.f32 %v6583_v36, %v728_v40 }
 0x14c   : > { %v708_v44 = vmul.f32 %v5793_v41, %v6457_v37  ;;  %5800 = vrsqrt.f32 %v681_v42  ;;  %v667_v29 = vmul.f32 0.015625, %v639_v43  ;;  %v642_v2 = vpop.xlane.xlu0 %641 }
 0x14d   : > { %v729_v46 = vmul.f32 %v6576_v34, %v707_v39  ;;  %5802 = vrsqrt.f32 %v680_v48  ;;  %v668_v9 = vmul.f32 0.015625, %v642_v2 }
 0x14e   : > { %v5795_v24 = vpop.eup %5794  ;;  %v730_v58 = vmul.f32 %v6576_v34, %v708_v44  ;;  %v683_v60 = vadd.f32 1e-05, %v667_v29 }
 0x14f   : > { %v751_v51 = vadd.f32 %v6583_v36, %v729_v46  ;;  %v709_v28 = vmul.f32 %v5795_v24, %v6465_v45  ;;  %v645_v61 = vpop.xlane.xlu1 %644  ;;  %v684_v18 = vadd.f32 1e-05, %v668_v9 }
 0x150   : > { %v752_v3 = vadd.f32 %v6583_v36, %v730_v58  ;;  %5804 = vrsqrt.f32 %v683_v60  ;;  %v669_v5 = vmul.f32 0.015625, %v645_v61  ;;  %v648_v19 = vpop.xlane.xlu0 %647 }
 0x151   : > { %v766_v52 = vpack.c.bf16 %v751_v51, %v750_v50  ;;  %v731_v53 = vmul.f32 %v6576_v34, %v709_v28  ;;  %5806 = vrsqrt.f32 %v682_v63  ;;  %v670_v32 = vmul.f32 0.015625, %v648_v19 }
 0x152   : > { %v5797_v56 = vpop.eup %5796 }
 0x153   : > { %5086 = vmatmul.mubr.msk.bf16.vlgmr.msra.gmra.mrb[0].mxu0 %vm512_vm0, %v766_v52  ;;  %v5799_v59 = vpop.eup %5798  ;;  %v753_v37 = vadd.f32 %v6583_v36, %v731_v53  ;;  %v711_v45 = vmul.f32 %v5797_v56, %v6477_v55  ;;  %v685_v55 = vadd.f32 1e-05, %v669_v5  ;;  %v651_v16 = vpop.xlane.xlu1 %650  ;;  %v686_v40 = vadd.f32 1e-05, %v670_v32 }
 0x154   : > { %888 = vmatprep.mubr.bf16.mxu0 %v9152_v62  ;;  %v710_v4 = vmul.f32 %v5799_v59, %v6474_v54  ;;  %v671_v26 = vmul.f32 0.015625, %v651_v16  ;;  %v654_v41 = vpop.xlane.xlu0 %653 }
 0x155   : > { %v767_v6 = vpack.c.bf16 %v753_v37, %v752_v3  ;;  %v733_v7 = vmul.f32 %v6576_v34, %v711_v45  ;;  %5808 = vrsqrt.f32 %v685_v55  ;;  %v672_v50 = vmul.f32 0.015625, %v654_v41 }
 0x156   : > { %v5801_v8 = vpop.eup %5800  ;;  %v732_v14 = vmul.f32 %v6576_v34, %v710_v4  ;;  %5810 = vrsqrt.f32 %v684_v18 }
 0x157   : > { %v5803_v15 = vpop.eup %5802  ;;  %v755_v17 = vadd.f32 %v6583_v36, %v733_v7  ;;  %v713_v54 = vmul.f32 %v5801_v8, %v6489_v1  ;;  %v687_v1 = vadd.f32 1e-05, %v671_v26  ;;  %v657_v38 = vpop.xlane.xlu1 %656  ;;  %v688_v29 = vadd.f32 1e-05, %v672_v50 }
 0x158   : > { %v754_v22 = vadd.f32 %v6583_v36, %v732_v14  ;;  %v712_v12 = vmul.f32 %v5803_v15, %v6486_v0  ;;  %v673_v46 = vmul.f32 0.015625, %v657_v38 }
 0x159   : > { %v735_v30 = vmul.f32 %v6576_v34, %v713_v54  ;;  %5812 = vrsqrt.f32 %v687_v1 }
 0x15a   : > { %v768_v27 = vpack.c.bf16 %v755_v17, %v754_v22  ;;  %v5805_v31 = vpop.eup %5804  ;;  %v734_v33 = vmul.f32 %v6576_v34, %v712_v12  ;;  %5814 = vrsqrt.f32 %v686_v40 }
 0x15b   : > { %5087 = vmatmul.mubr.msk.bf16.gmra.mrb[4].mxu0 %vm512_vm0, %v767_v6  ;;  %v5807_v20 = vpop.eup %5806  ;;  %v757_v39 = vadd.f32 %v6583_v36, %v735_v30  ;;  %v715_v0 = vmul.f32 %v5805_v31, %v6501_v11  ;;  %v689_v11 = vadd.f32 1e-05, %v673_v46 }
 0x15c   : > { %898 = vmatprep.mubr.bf16.mxu0 %v9152_v62  ;;  %v756_v42 = vadd.f32 %v6583_v36, %v734_v33  ;;  %v714_v43 = vmul.f32 %v5807_v20, %v6498_v10 }
 0x15d   : > { %v737_v48 = vmul.f32 %v6576_v34, %v715_v0  ;;  %5816 = vrsqrt.f32 %v689_v11 }
 0x15e   : > { %v769_v24 = vpack.c.bf16 %v757_v39, %v756_v42  ;;  %v736_v51 = vmul.f32 %v6576_v34, %v714_v43  ;;  %5818 = vrsqrt.f32 %v688_v29 }
 0x15f   : > { %v5809_v49 = vpop.eup %5808  ;;  %v759_v28 = vadd.f32 %v6583_v36, %v737_v48 }
 0x160   : > { %v5811_v44 = vpop.eup %5810  ;;  %v717_v10 = vmul.f32 %v5809_v49, %v6513_v13  ;;  %v758_v52 = vadd.f32 %v6583_v36, %v736_v51 }
 0x161   : > { %v716_v53 = vmul.f32 %v5811_v44, %v6510_v23 }
 0x162   : > { %v770_v56 = vpack.c.bf16 %v759_v28, %v758_v52  ;;  %v739_v57 = vmul.f32 %v6576_v34, %v717_v10 }
 0x163   : > { %5088 = vmatmul.mubr.msk.bf16.gmra.mrb[8].mxu0 %vm512_vm0, %v768_v27  ;;  %v5813_v58 = vpop.eup %5812  ;;  %v738_v59 = vmul.f32 %v6576_v34, %v716_v53 }
 0x164   : > { %908 = vmatprep.mubr.bf16.mxu0 %v9152_v62  ;;  %v5815_v60 = vpop.eup %5814  ;;  %v761_v13 = vadd.f32 %v6583_v36, %v739_v57  ;;  %v719_v61 = vmul.f32 %v5813_v58, %v6525_v21 }
 0x165   : > { %v760_v37 = vadd.f32 %v6583_v36, %v738_v59  ;;  %v718_v23 = vmul.f32 %v5815_v60, %v6522_v35 }
 0x166   : > { %v741_v63 = vmul.f32 %v6576_v34, %v719_v61 }
 0x167   : > { %v771_v45 = vpack.c.bf16 %v761_v13, %v760_v37  ;;  %v5817_v2 = vpop.eup %5816  ;;  %v740_v3 = vmul.f32 %v6576_v34, %v718_v23 }
 0x168   : > { %v5819_v4 = vpop.eup %5818  ;;  %v763_v5 = vadd.f32 %v6583_v36, %v741_v63  ;;  %v721_v6 = vmul.f32 %v5817_v2, %v6537_v25 }
 0x169   : > { %v762_v21 = vadd.f32 %v6583_v36, %v740_v3  ;;  %v720_v7 = vmul.f32 %v5819_v4, %v6534_v47 }
 0x16a   : > { %v743_v8 = vmul.f32 %v6576_v34, %v721_v6 }
 0x16b   : > { %5089 = vmatmul.mubr.msk.bf16.gmra.mrb[12].mxu0 %vm512_vm0, %v769_v24  ;;  %v772_v35 = vpack.c.bf16 %v763_v5, %v762_v21  ;;  %v742_v9 = vmul.f32 %v6576_v34, %v720_v7 }
 0x16c   : > { %918 = vmatprep.mubr.bf16.mxu0 %v9152_v62  ;;  %v765_v14 = vadd.f32 %v6583_v36, %v743_v8 }
 0x16d   : > { %v764_v15 = vadd.f32 %v6583_v36, %v742_v9 }
 0x16f   : > { %v773_v55 = vpack.c.bf16 %v765_v14, %v764_v15 }
 0x173   : > { %5090 = vmatmul.mubr.msk.bf16.gmra.mrb[16].mxu0 %vm512_vm0, %v770_v56 }
 0x174   : > { %928 = vmatprep.mubr.bf16.mxu0 %v9152_v62 }
 0x17b   : > { %5091 = vmatmul.mubr.msk.bf16.gmra.mrb[20].mxu0 %vm512_vm0, %v771_v45 }
 0x17c   : > { %938 = vmatprep.mubr.bf16.mxu0 %v9152_v62 }
 0x183   : > { %5092 = vmatmul.mubr.msk.bf16.gmra.mrb[24].mxu0 %vm512_vm0, %v772_v35 }
 0x184   : > { %948 = vmatprep.mubr.bf16.mxu0 %v9152_v62 }
 0x18b   : > { %5093 = vmatmul.mubr.msk.bf16.gmra.mrb[28].mxu0 %vm512_vm0, %v773_v55 }
 0x226   : > { %v880_v25 = vpop.f32.mrb[0].mxu0 }
 0x227   : > { %v882_v16 = vpop.f32.mrb[1].mxu0 }
 0x228   : > { %v884_v17 = vpop.f32.mrb[2].mxu0 }
 0x229   : > { %v6645_v47 = vpack.c.bf16 %v884_v17, %v880_v25  ;;  %v886_v54 = vpop.f32.mrb[3].mxu0 }
 0x22a   : > { %v960_v18 = vpack.c.bf16 %v886_v54, %v882_v16 }
 0x22b   : > { %975 = vst [vmem:[#allocation5] sm:$0xff] %v6645_v47  ;;  %1019 = vrot.lane.b32.xlu0 %v6645_v47, %s6285_s19  ;;  %5398 = vmatprep.mubr.msk.bf16.mxu1 %vm1035_vm1, %v6645_v47 }
 0x22c   : > { %976 = vst.msk [vmem:[#allocation5 + $0x8] sm:$0xff] %vm512_vm0, %v960_v18 }
 0x22e   : > { %v890_v34 = vpop.f32.mrb[4].mxu0 }
 0x22f   : > { %v892_v36 = vpop.f32.mrb[5].mxu0 }
 0x230   : > { %v894_v19 = vpop.f32.mrb[6].mxu0 }
 0x231   : > { %v6653_v22 = vpack.c.bf16 %v894_v19, %v890_v34  ;;  %v896_v12 = vpop.f32.mrb[7].mxu0 }
 0x232   : > { %v962_v26 = vpack.c.bf16 %v896_v12, %v892_v36 }
 0x233   : > { %977 = vst [vmem:[#allocation5 + $0x10] sm:$0xff] %v6653_v22  ;;  %v6656_v27 = vld [vmem:[#allocation5 + $0x8] sm:$0xff]  ;;  %1021 = vrot.lane.b32.xlu1 %v6653_v22, %s6285_s19 }
 0x234   : > { %978 = vst.msk [vmem:[#allocation5 + $0x18] sm:$0xff] %vm512_vm0, %v962_v26  ;;  %5414 = vmatprep.subr.bf16.mxu0 %v6656_v27 }
 0x235   : > { %5415 = vmatpush3.bf16.msra.mxu0 %v6656_v27 }
 0x236   : > { %v900_v30 = vpop.f32.mrb[8].mxu0 }
 0x237   : > { %v902_v31 = vpop.f32.mrb[9].mxu0 }
 0x238   : > { %v904_v32 = vpop.f32.mrb[10].mxu0 }
 0x239   : > { %v6663_v33 = vpack.c.bf16 %v904_v32, %v900_v30  ;;  %v906_v20 = vpop.f32.mrb[11].mxu0 }
 0x23a   : > { %v964_v1 = vpack.c.bf16 %v906_v20, %v902_v31 }
 0x23b   : > { %979 = vst [vmem:[#allocation5 + $0x20] sm:$0xff] %v6663_v33  ;;  %v6666_v38 = vld [vmem:[#allocation5 + $0x18] sm:$0xff]  ;;  %1023 = vrot.lane.b32.xlu1 %v6663_v33, %s6285_s19 }
 0x23c   : > { %980 = vst.msk [vmem:[#allocation5 + $0x28] sm:$0xff] %vm512_vm0, %v964_v1  ;;  %5416 = vmatprep.subr.bf16.mxu0 %v6666_v38 }
 0x23d   : > { %5417 = vmatpush3.bf16.msra.mxu0 %v6666_v38 }
 0x23e   : > { %v910_v39 = vpop.f32.mrb[12].mxu0 }
 0x23f   : > { %v912_v0 = vpop.f32.mrb[13].mxu0 }
 0x240   : > { %v914_v40 = vpop.f32.mrb[14].mxu0 }
 0x241   : > { %v6673_v41 = vpack.c.bf16 %v914_v40, %v910_v39  ;;  %v916_v42 = vpop.f32.mrb[15].mxu0 }
 0x242   : > { %v966_v43 = vpack.c.bf16 %v916_v42, %v912_v0 }
 0x243   : > { %981 = vst [vmem:[#allocation5 + $0x30] sm:$0xff] %v6673_v41  ;;  %v6676_v46 = vld [vmem:[#allocation5 + $0x28] sm:$0xff]  ;;  %1025 = vrot.lane.b32.xlu1 %v6673_v41, %s6285_s19 }
 0x244   : > { %982 = vst.msk [vmem:[#allocation5 + $0x38] sm:$0xff] %vm512_vm0, %v966_v43  ;;  %5418 = vmatprep.subr.bf16.mxu0 %v6676_v46 }
 0x245   : > { %5419 = vmatpush3.bf16.msra.mxu0 %v6676_v46 }
 0x246   : > { %v920_v24 = vpop.f32.mrb[16].mxu0 }
 0x247   : > { %v922_v48 = vpop.f32.mrb[17].mxu0 }
 0x248   : > { %v924_v49 = vpop.f32.mrb[18].mxu0 }
 0x249   : > { %v6683_v50 = vpack.c.bf16 %v924_v49, %v920_v24  ;;  %v926_v51 = vpop.f32.mrb[19].mxu0 }
 0x24a   : > { %v968_v44 = vpack.c.bf16 %v926_v51, %v922_v48 }
 0x24b   : > { %983 = vst [vmem:[#allocation5 + $0x40] sm:$0xff] %v6683_v50  ;;  %v6686_v11 = vld [vmem:[#allocation5 + $0x38] sm:$0xff]  ;;  %1027 = vrot.lane.b32.xlu0 %v6683_v50, %s6285_s19 }
 0x24c   : > { %984 = vst.msk [vmem:[#allocation5 + $0x48] sm:$0xff] %vm512_vm0, %v968_v44  ;;  %5420 = vmatprep.subr.bf16.mxu0 %v6686_v11 }
 0x24d   : > { %5421 = vmatpush3.bf16.msra.mxu0 %v6686_v11 }
 0x24e   : > { %v930_v28 = vpop.f32.mrb[20].mxu0 }
 0x24f   : > { %v932_v10 = vpop.f32.mrb[21].mxu0 }
 0x250   : > { %v934_v29 = vpop.f32.mrb[22].mxu0 }
 0x251   : > { %v6693_v52 = vpack.c.bf16 %v934_v29, %v930_v28  ;;  %v936_v53 = vpop.f32.mrb[23].mxu0 }
 0x252   : > { %v970_v56 = vpack.c.bf16 %v936_v53, %v932_v10  ;;  %v9151_v53 = vlaneseq }
 0x253   : > { %985 = vst [vmem:[#allocation5 + $0x50] sm:$0xff] %v6693_v52  ;;  %v1007_v57 = vld [vmem:[#allocation5 + $0x48] sm:$0xff]  ;;  %1029 = vrot.lane.b32.xlu1 %v6693_v52, %s6285_s19 }
 0x254   : > { %986 = vst.msk [vmem:[#allocation5 + $0x58] sm:$0xff] %vm512_vm0, %v970_v56  ;;  %5422 = vmatprep.subr.bf16.mxu0 %v1007_v57  ;;  %v992_v56 = vand.u32 127, %v9151_v53 }
 0x255   : > { %5423 = vmatpush3.bf16.msra.mxu0 %v1007_v57 }
 0x256   : > { %v940_v58 = vpop.f32.mrb[24].mxu0  ;;  %vm993_vm2 = vcmp.lt.s32.totalorder %v992_v56, 16 }
 0x257   : > { %v942_v59 = vpop.f32.mrb[25].mxu0 }
 0x258   : > { %v944_v60 = vpop.f32.mrb[26].mxu0 }
 0x259   : > { %v6699_v13 = vpack.c.bf16 %v944_v60, %v940_v58  ;;  %v946_v61 = vpop.f32.mrb[27].mxu0 }
 0x25a   : > { %v972_v37 = vpack.c.bf16 %v946_v61, %v942_v59 }
 0x25b   : > { %987 = vst [vmem:[#allocation5 + $0x60] sm:$0xff] %v6699_v13  ;;  %v1008_v23 = vld [vmem:[#allocation5 + $0x58] sm:$0xff]  ;;  %1031 = vrot.lane.b32.xlu0 %v6699_v13, %s6285_s19 }
 0x25c   : > { %988 = vst.msk [vmem:[#allocation5 + $0x68] sm:$0xff] %vm512_vm0, %v972_v37  ;;  %5424 = vmatprep.subr.bf16.mxu0 %v1008_v23 }
 0x25d   : > { %5425 = vmatpush3.bf16.msra.mxu0 %v1008_v23 }
 0x25e   : > { %v950_v45 = vpop.f32.mrb[28].mxu0 }
 0x25f   : > { %v952_v63 = vpop.f32.mrb[29].mxu0  ;;  %1486 = vrot.lane.b32.xlu0 %v6645_v47, %s6286_s20 }
 0x260   : > { %v954_v2 = vpop.f32.mrb[30].mxu0 }
 0x261   : > { %v6707_v3 = vpack.c.bf16 %v954_v2, %v950_v45  ;;  %v956_v4 = vpop.f32.mrb[31].mxu0 }
 0x262   : > { %v974_v5 = vpack.c.bf16 %v956_v4, %v952_v63 }
 0x263   : > { %989 = vst [vmem:[#allocation5 + $0x70] sm:$0xff] %v6707_v3  ;;  %v1009_v6 = vld [vmem:[#allocation5 + $0x68] sm:$0xff]  ;;  %1490 = vrot.lane.b32.xlu0 %v6663_v33, %s6286_s20  ;;  %1033 = vrot.lane.b32.xlu1 %v6707_v3, %s6285_s19 }
 0x264   : > { %990 = vst.msk [vmem:[#allocation5 + $0x78] sm:$0xff] %vm512_vm0, %v974_v5  ;;  %5426 = vmatprep.subr.bf16.mxu0 %v1009_v6 }
 0x265   : > { %5427 = vmatpush3.bf16.msra.mxu0 %v1009_v6 }
 0x267   : > { %1494 = vrot.lane.b32.xlu0 %v6683_v50, %s6286_s20  ;;  %1488 = vrot.lane.b32.xlu1 %v6653_v22, %s6286_s20 }
 0x26b   : > { %v1010_v21 = vld [vmem:[#allocation5 + $0x78] sm:$0xff]  ;;  %1498 = vrot.lane.b32.xlu0 %v6699_v13, %s6286_s20  ;;  %1492 = vrot.lane.b32.xlu1 %v6673_v41, %s6286_s20 }
 0x26c   : > { %5428 = vmatprep.subr.bf16.mxu0 %v1010_v21 }
 0x26d   : > { %5429 = vmatpush3.bf16.msra.mxu0 %v1010_v21 }
 0x26f   : > { %1470 = vrot.lane.b32.xlu0 %v6645_v47, %s6287_s26  ;;  %1496 = vrot.lane.b32.xlu1 %v6693_v52, %s6286_s20 }
 0x273   : > { %1474 = vrot.lane.b32.xlu0 %v6663_v33, %s6287_s26  ;;  %1500 = vrot.lane.b32.xlu1 %v6707_v3, %s6286_s20 }
 0x277   : > { %1478 = vrot.lane.b32.xlu0 %v6683_v50, %s6287_s26  ;;  %1472 = vrot.lane.b32.xlu1 %v6653_v22, %s6287_s26 }
 0x27b   : > { %1482 = vrot.lane.b32.xlu0 %v6699_v13, %s6287_s26  ;;  %1476 = vrot.lane.b32.xlu1 %v6673_v41, %s6287_s26 }
 0x27f   : > { %1807 = vrot.lane.b32.xlu0 %v6656_v27, %s6287_s26  ;;  %1480 = vrot.lane.b32.xlu1 %v6693_v52, %s6287_s26 }
 0x283   : > { %1811 = vrot.lane.b32.xlu0 %v6676_v46, %s6287_s26  ;;  %1484 = vrot.lane.b32.xlu1 %v6707_v3, %s6287_s26 }
 0x287   : > { %1815 = vrot.lane.b32.xlu0 %v1007_v57, %s6287_s26  ;;  %1809 = vrot.lane.b32.xlu1 %v6666_v38, %s6287_s26  ;;  %v6289_v57 = vmov -1e+30  }
 0x288   : > { %v6801_v58 = vsel %vm993_vm2, 0.0, %v6289_v57 }
 0x28b   : > { %1817 = vrot.lane.b32.xlu0 %v1008_v23, %s6287_s26  ;;  %1813 = vrot.lane.b32.xlu1 %v6686_v11, %s6287_s26 }
 0x28f   : > { %1819 = vrot.lane.b32.xlu0 %v1009_v6, %s6287_s26  ;;  %2019 = vrot.lane.b32.xlu1 %v6653_v22, %s6288_s27 }
 0x293   : > { %2017 = vrot.lane.b32.xlu0 %v6645_v47, %s6288_s27  ;;  %1821 = vrot.lane.b32.xlu1 %v1010_v21, %s6287_s26 }
 0x29d   : > { %v1020_v7 = vpop.permute.xlu0 %1019 }
 0x29e   : > { %5678 = vmatprep.subr.msk.bf16.mxu1 %vm1035_vm1, %v1020_v7  ;;  %v1061_v35 = vsel %vm1035_vm1, %v1020_v7, 0 }
 0x29f   : > { %5383 = vmatpush3.bf16.xpose.msra.mxu1 %v1061_v35 }
 0x2a5   : > { %v1022_v8 = vpop.permute.xlu1 %1021 }
 0x2a6   : > { %5679 = vmatprep.subr.msk.bf16.mxu1 %vm1035_vm1, %v1022_v8  ;;  %v1064_v9 = vsel %vm1035_vm1, %v1022_v8, 0 }
 0x2a7   : > { %5385 = vmatpush3.bf16.xpose.msra.mxu1 %v1064_v9 }
 0x2ad   : > { %v1024_v14 = vpop.permute.xlu1 %1023 }
 0x2ae   : > { %5680 = vmatprep.subr.msk.bf16.mxu1 %vm1035_vm1, %v1024_v14  ;;  %v1067_v15 = vsel %vm1035_vm1, %v1024_v14, 0 }
 0x2af   : > { %5387 = vmatpush3.bf16.xpose.msra.mxu1 %v1067_v15 }
 0x2b5   : > { %v1026_v55 = vpop.permute.xlu1 %1025 }
 0x2b6   : > { %5681 = vmatprep.subr.msk.bf16.mxu1 %vm1035_vm1, %v1026_v55  ;;  %v1070_v25 = vsel %vm1035_vm1, %v1026_v55, 0 }
 0x2b7   : > { %5389 = vmatpush3.bf16.xpose.msra.mxu1 %v1070_v25 }
 0x2bd   : > { %v1028_v16 = vpop.permute.xlu0 %1027 }
 0x2be   : > { %5682 = vmatprep.subr.msk.bf16.mxu1 %vm1035_vm1, %v1028_v16  ;;  %v1073_v17 = vsel %vm1035_vm1, %v1028_v16, 0 }
 0x2bf   : > { %5391 = vmatpush3.bf16.xpose.msra.mxu1 %v1073_v17 }
 0x2c5   : > { %v1030_v47 = vpop.permute.xlu1 %1029 }
 0x2c6   : > { %5683 = vmatprep.subr.msk.bf16.mxu1 %vm1035_vm1, %v1030_v47  ;;  %v1076_v54 = vsel %vm1035_vm1, %v1030_v47, 0 }
 0x2c7   : > { %5393 = vmatpush3.bf16.xpose.msra.mxu1 %v1076_v54 }
 0x2cd   : > { %v1032_v18 = vpop.permute.xlu0 %1031 }
 0x2ce   : > { %5684 = vmatprep.subr.msk.bf16.mxu1 %vm1035_vm1, %v1032_v18  ;;  %v1079_v34 = vsel %vm1035_vm1, %v1032_v18, 0 }
 0x2cf   : > { %5395 = vmatpush3.bf16.xpose.msra.mxu1 %v1079_v34 }
 0x2d1   : > { %v1487_v36 = vpop.permute.xlu0 %1486 }
 0x2d2   : > { %v1527_v31 = vsel %vm1035_vm1, %v1487_v36, 0 }
 0x2d5   : > { %v1034_v19 = vpop.permute.xlu1 %1033  ;;  %v1491_v12 = vpop.permute.xlu0 %1490 }
 0x2d6   : > { %5685 = vmatprep.subr.msk.bf16.mxu1 %vm1035_vm1, %v1034_v19  ;;  %v1082_v26 = vsel %vm1035_vm1, %v1034_v19, 0  ;;  %v1533_v0 = vsel %vm1035_vm1, %v1491_v12, 0 }
 0x2d7   : > { %5397 = vmatpush3.bf16.xpose.msra.mxu1 %v1082_v26 }
 0x2d8   : > { %5686 = vmatprep.subr.msk.bf16.mxu1 %vm1035_vm1, %v1487_v36 }
 0x2d9   : > { %v1495_v27 = vpop.permute.xlu0 %1494  ;;  %v1489_v32 = vpop.permute.xlu1 %1488 }
 0x2da   : > { %v1530_v38 = vsel %vm1035_vm1, %v1489_v32, 0  ;;  %v1539_v46 = vsel %vm1035_vm1, %v1495_v27, 0 }
 0x2dd   : > { %v1499_v30 = vpop.permute.xlu0 %1498  ;;  %v1493_v40 = vpop.permute.xlu1 %1492 }
 0x2de   : > { %5399 = vmatmul.mubr.msk.bf16.vlgmr.msra.gmra.mrb[0].mxu1 %vm1035_vm1, %v6653_v22  ;;  %v1536_v43 = vsel %vm1035_vm1, %v1493_v40, 0  ;;  %v1545_v49 = vsel %vm1035_vm1, %v1499_v30, 0 }
 0x2df   : > { %5402 = vmatprep.mubr.msk.bf16.mxu1 %vm1035_vm1, %v6663_v33  ;;  %5447 = vmatpush3.bf16.xpose.msra.mxu1 %v1527_v31 }
 0x2e0   : > { %5687 = vmatprep.subr.msk.bf16.mxu1 %vm1035_vm1, %v1489_v32 }
 0x2e1   : > { %v1471_v20 = vpop.permute.xlu0 %1470  ;;  %v1497_v24 = vpop.permute.xlu1 %1496 }
 0x2e2   : > { %v1542_v48 = vsel %vm1035_vm1, %v1497_v24, 0 }
 0x2e5   : > { %v1475_v1 = vpop.permute.xlu0 %1474  ;;  %v1501_v51 = vpop.permute.xlu1 %1500 }
 0x2e6   : > { %5403 = vmatmul.mubr.msk.bf16.gmra.mrb[4].mxu1 %vm1035_vm1, %v6673_v41  ;;  %v1548_v44 = vsel %vm1035_vm1, %v1501_v51, 0 }
 0x2e7   : > { %5406 = vmatprep.mubr.msk.bf16.mxu1 %vm1035_vm1, %v6683_v50  ;;  %5449 = vmatpush3.bf16.xpose.msra.mxu1 %v1530_v38 }
 0x2e8   : > { %5688 = vmatprep.subr.msk.bf16.mxu1 %vm1035_vm1, %v1491_v12 }
 0x2e9   : > { %v1479_v22 = vpop.permute.xlu0 %1478  ;;  %v1473_v11 = vpop.permute.xlu1 %1472 }
 0x2ed   : > { %v1483_v39 = vpop.permute.xlu0 %1482  ;;  %v1477_v28 = vpop.permute.xlu1 %1476 }
 0x2ee   : > { %5407 = vmatmul.mubr.msk.bf16.gmra.mrb[8].mxu1 %vm1035_vm1, %v6693_v52 }
 0x2ef   : > { %5410 = vmatprep.mubr.msk.bf16.mxu1 %vm1035_vm1, %v6699_v13  ;;  %5451 = vmatpush3.bf16.xpose.msra.mxu1 %v1533_v0 }
 0x2f0   : > { %5689 = vmatprep.subr.msk.bf16.mxu1 %vm1035_vm1, %v1493_v40 }
 0x2f1   : > { %v6778_v42 = vpop.permute.xlu0 %1807  ;;  %v1481_v10 = vpop.permute.xlu1 %1480 }
 0x2f2   : > { %5478 = vmatprep.subr.bf16.mxu0 %v6778_v42 }
 0x2f5   : > { %v1485_v29 = vpop.permute.xlu1 %1484 }
 0x2f6   : > { %5411 = vmatmul.mubr.msk.bf16.gmra.mrb[12].mxu1 %vm1035_vm1, %v6707_v3 }
 0x2f7   : > { %5453 = vmatpush3.bf16.xpose.msra.mxu1 %v1536_v43  ;;  %5462 = vmatprep.mubr.msk.bf16.mxu1 %vm1035_vm1, %v1471_v20 }
 0x2f8   : > { %5690 = vmatprep.subr.msk.bf16.mxu1 %vm1035_vm1, %v1495_v27 }
 0x2ff   : > { %5455 = vmatpush3.bf16.xpose.msra.mxu1 %v1539_v46 }
 0x300   : > { %5691 = vmatprep.subr.msk.bf16.mxu1 %vm1035_vm1, %v1497_v24 }
 0x307   : > { %5457 = vmatpush3.bf16.xpose.msra.mxu1 %v1542_v48 }
 0x308   : > { %5692 = vmatprep.subr.msk.bf16.mxu1 %vm1035_vm1, %v1499_v30 }
 0x30f   : > { %5459 = vmatpush3.bf16.xpose.msra.mxu1 %v1545_v49 }
 0x310   : > { %5693 = vmatprep.subr.msk.bf16.mxu1 %vm1035_vm1, %v1501_v51 }
 0x317   : > { %5461 = vmatpush3.bf16.xpose.msra.mxu1 %v1548_v44 }
 0x31e   : > { %5463 = vmatmul.mubr.msk.bf16.vlgmr.msra.gmra.mrb[16].mxu1 %vm1035_vm1, %v1473_v11 }
 0x31f   : > { %5466 = vmatprep.mubr.msk.bf16.mxu1 %vm1035_vm1, %v1475_v1 }
 0x326   : > { %5467 = vmatmul.mubr.msk.bf16.gmra.mrb[20].mxu1 %vm1035_vm1, %v1477_v28 }
 0x327   : > { %5470 = vmatprep.mubr.msk.bf16.mxu1 %vm1035_vm1, %v1479_v22 }
 0x32e   : > { %5471 = vmatmul.mubr.msk.bf16.gmra.mrb[24].mxu1 %vm1035_vm1, %v1481_v10 }
 0x32f   : > { %5474 = vmatprep.mubr.msk.bf16.mxu1 %vm1035_vm1, %v1483_v39 }
 0x336   : > { %5475 = vmatmul.mubr.msk.bf16.gmra.mrb[28].mxu1 %vm1035_vm1, %v1485_v29 }
 0x3b1   : > { %v5400_v59 = vpop.f32.mrb[0].mxu1 }
 0x3b2   : > { %v6804_v60 = vadd.f32 %v5400_v59, %v6801_v58  ;;  %v1118_v61 = vpop.f32.mrb[1].mxu1 }
 0x3b3   : > { %v5401_v37 = vpop.f32.mrb[2].mxu1  ;;  %v6811_v63 = vadd.f32 %v1118_v61, %v6801_v58 }
 0x3b4   : > { %1185 = vmax.xlane.f32.xlu0 %v6804_v60  ;;  %v1121_v23 = vpop.f32.mrb[3].mxu1  ;;  %v6816_v4 = vadd.f32 %v5401_v37, %v6801_v58  ;;  %v6911_v37 = vpop.permute.xlu0 %1811 }
 0x3b5   : > { %v6808_v45 = vadd.f32 %v1121_v23, %v6801_v58 }
 0x3b7   : > { %1183 = vmax.xlane.f32.xlu1 %v6808_v45 }
 0x3b8   : > { %1181 = vmax.xlane.f32.xlu0 %v6811_v63  ;;  %v6913_v23 = vpop.permute.xlu0 %1815 }
 0x3b9   : > { %v5404_v2 = vpop.f32.mrb[4].mxu1 }
 0x3ba   : > { %v1134_v5 = vpop.f32.mrb[5].mxu1  ;;  %v6823_v35 = vadd.f32 %v5404_v2, %v6801_v58 }
 0x3bb   : > { %v5405_v6 = vpop.f32.mrb[6].mxu1  ;;  %v6831_v14 = vadd.f32 %v1134_v5, %v6801_v58 }
 0x3bc   : > { %v6819_v21 = vadd.f32 %v5405_v6, %v6801_v58  ;;  %v1137_v7 = vpop.f32.mrb[7].mxu1  ;;  %1187 = vmax.xlane.f32.xlu0 %v6816_v4  ;;  %v6922_v6 = vpop.permute.xlu1 %1809 }
 0x3bd   : > { %v6827_v8 = vadd.f32 %v1137_v7, %v6801_v58  ;;  %v6924_v7 = vpop.permute.xlu0 %1817 }
 0x3be   : > { %1195 = vmax.xlane.f32.xlu1 %v6819_v21 }
 0x3c0   : > { %1193 = vmax.xlane.f32.xlu0 %v6823_v35 }
 0x3c1   : > { %v5408_v9 = vpop.f32.mrb[8].mxu1 }
 0x3c2   : > { %v1150_v15 = vpop.f32.mrb[9].mxu1  ;;  %1191 = vmax.xlane.f32.xlu1 %v6827_v8  ;;  %v6839_v17 = vadd.f32 %v5408_v9, %v6801_v58 }
 0x3c3   : > { %v5409_v55 = vpop.f32.mrb[10].mxu1  ;;  %v6847_v18 = vadd.f32 %v1150_v15, %v6801_v58  ;;  %v6931_v15 = vpop.permute.xlu1 %1813 }
 0x3c4   : > { %v6835_v25 = vadd.f32 %v5409_v55, %v6801_v58  ;;  %v1153_v16 = vpop.f32.mrb[11].mxu1  ;;  %1189 = vmax.xlane.f32.xlu0 %v6831_v14  ;;  %v6933_v55 = vpop.permute.xlu0 %1819 }
 0x3c5   : > { %v6843_v47 = vadd.f32 %v1153_v16, %v6801_v58 }
 0x3c6   : > { %1203 = vmax.xlane.f32.xlu1 %v6835_v25 }
 0x3c8   : > { %1201 = vmax.xlane.f32.xlu0 %v6839_v17 }
 0x3c9   : > { %v5412_v54 = vpop.f32.mrb[12].mxu1 }
 0x3ca   : > { %v1166_v34 = vpop.f32.mrb[13].mxu1  ;;  %1199 = vmax.xlane.f32.xlu1 %v6843_v47  ;;  %v6855_v26 = vadd.f32 %v5412_v54, %v6801_v58 }
 0x3cb   : > { %v5413_v36 = vpop.f32.mrb[14].mxu1  ;;  %v6863_v30 = vadd.f32 %v1166_v34, %v6801_v58  ;;  %v6942_v34 = vpop.permute.xlu1 %2019 }
 0x3cc   : > { %v6851_v19 = vadd.f32 %v5413_v36, %v6801_v58  ;;  %v1169_v12 = vpop.f32.mrb[15].mxu1  ;;  %1197 = vmax.xlane.f32.xlu0 %v6847_v18  ;;  %v6944_v36 = vpop.permute.xlu0 %2017 }
 0x3cd   : > { %v6859_v27 = vadd.f32 %v1169_v12, %v6801_v58 }
 0x3ce   : > { %1211 = vmax.xlane.f32.xlu1 %v6851_v19 }
 0x3d0   : > { %1209 = vmax.xlane.f32.xlu0 %v6855_v26 }
 0x3d2   : > { %1207 = vmax.xlane.f32.xlu1 %v6859_v27 }
 0x3d4   : > { %1205 = vmax.xlane.f32.xlu0 %v6863_v30 }
 0x3e3   : > { %2023 = vrot.lane.b32.xlu1 %v6673_v41, %s6288_s27 }
 0x3f1   : > { %v5464_v31 = vpop.f32.mrb[16].mxu1 }
 0x3f2   : > { %v6870_v32 = vadd.f32 %v5464_v31, %v6801_v58  ;;  %v1584_v20 = vpop.f32.mrb[17].mxu1 }
 0x3f3   : > { %v5465_v1 = vpop.f32.mrb[18].mxu1  ;;  %v6874_v22 = vadd.f32 %v1584_v20, %v6801_v58  ;;  %v6951_v20 = vpop.permute.xlu1 %1821 }
 0x3f4   : > { %1651 = vmax.xlane.f32.xlu0 %v6870_v32  ;;  %v1587_v38 = vpop.f32.mrb[19].mxu1  ;;  %v6878_v49 = vadd.f32 %v5465_v1, %v6801_v58 }
 0x3f5   : > { %v6882_v51 = vadd.f32 %v1587_v38, %v6801_v58 }
 0x3f8   : > { %1647 = vmax.xlane.f32.xlu0 %v6874_v22 }
 0x3f9   : > { %v5468_v39 = vpop.f32.mrb[20].mxu1 }
 0x3fa   : > { %v1600_v0 = vpop.f32.mrb[21].mxu1  ;;  %v6916_v2 = vadd.f32 %v5468_v39, %v6801_v58 }
 0x3fb   : > { %v5469_v40 = vpop.f32.mrb[22].mxu1  ;;  %v6920_v5 = vadd.f32 %v1600_v0, %v6801_v58 }
 0x3fc   : > { %v1603_v43 = vpop.f32.mrb[23].mxu1  ;;  %v6886_v29 = vadd.f32 %v5469_v40, %v6801_v58 }
 0x3fd   : > { %v6892_v56 = vadd.f32 %v1603_v43, %v6801_v58 }
 0x401   : > { %v5472_v46 = vpop.f32.mrb[24].mxu1 }
 0x402   : > { %v1616_v41 = vpop.f32.mrb[25].mxu1  ;;  %v6928_v9 = vadd.f32 %v5472_v46, %v6801_v58 }
 0x403   : > { %v5473_v24 = vpop.f32.mrb[26].mxu1  ;;  %v6936_v16 = vadd.f32 %v1616_v41, %v6801_v58 }
 0x404   : > { %v1619_v48 = vpop.f32.mrb[27].mxu1  ;;  %v6896_v57 = vadd.f32 %v5473_v24, %v6801_v58 }
 0x405   : > { %v6900_v59 = vadd.f32 %v1619_v48, %v6801_v58 }
 0x407   : > { %1653 = vmax.xlane.f32.xlu1 %v6878_v49 }
 0x409   : > { %v5476_v44 = vpop.f32.mrb[28].mxu1 }
 0x40a   : > { %v1632_v11 = vpop.f32.mrb[29].mxu1  ;;  %v6940_v54 = vadd.f32 %v5476_v44, %v6801_v58 }
 0x40b   : > { %1649 = vmax.xlane.f32.xlu1 %v6882_v51  ;;  %v5477_v28 = vpop.f32.mrb[30].mxu1  ;;  %v6948_v12 = vadd.f32 %v1632_v11, %v6801_v58 }
 0x40c   : > { %v1635_v10 = vpop.f32.mrb[31].mxu1  ;;  %v6904_v61 = vadd.f32 %v5477_v28, %v6801_v58 }
 0x40e   : > { %2021 = vrot.lane.b32.xlu0 %v6663_v33, %s6288_s27  ;;  %v6908_v33 = vadd.f32 %v1635_v10, %v6801_v58 }
 0x40f   : > { %1661 = vmax.xlane.f32.xlu1 %v6886_v29 }
 0x413   : > { %1657 = vmax.xlane.f32.xlu1 %v6892_v56 }
 0x417   : > { %1669 = vmax.xlane.f32.xlu1 %v6896_v57 }
 0x41b   : > { %1665 = vmax.xlane.f32.xlu1 %v6900_v59 }
 0x41f   : > { %1677 = vmax.xlane.f32.xlu1 %v6904_v61 }
 0x423   : > { %1673 = vmax.xlane.f32.xlu1 %v6908_v33 }
 0x42d   : > { %1659 = vmax.xlane.f32.xlu0 %v6916_v2 }
 0x431   : > { %1655 = vmax.xlane.f32.xlu0 %v6920_v5 }
 0x435   : > { %1667 = vmax.xlane.f32.xlu0 %v6928_v9 }
 0x439   : > { %1663 = vmax.xlane.f32.xlu0 %v6936_v16 }
 0x43d   : > { %1675 = vmax.xlane.f32.xlu0 %v6940_v54 }
 0x441   : > { %1671 = vmax.xlane.f32.xlu0 %v6948_v12  ;;  %v1186_v31 = vpop.xlane.xlu0 %1185 }
 0x442   : > { %v1215_v1 = vsub.f32 %v6804_v60, %v1186_v31 }
 0x444   : > { %v1233_v38 = vmul.f32 1.442695, %v1215_v1  ;;  %v1184_v0 = vpop.xlane.xlu1 %1183 }
 0x445   : > { %v1182_v39 = vpop.xlane.xlu0 %1181  ;;  %v1214_v46 = vsub.f32 %v6808_v45, %v1184_v0 }
 0x446   : > { %5820 = vpow2.f32 %v1233_v38  ;;  %v1213_v40 = vsub.f32 %v6811_v63, %v1182_v39 }
 0x447   : > { %v1231_v11 = vmul.f32 1.442695, %v1214_v46 }
 0x448   : > { %v1229_v43 = vmul.f32 1.442695, %v1213_v40 }
 0x449   : > { %v1188_v41 = vpop.xlane.xlu0 %1187 }
 0x44a   : > { %5822 = vpow2.f32 %v1229_v43  ;;  %v1216_v24 = vsub.f32 %v6816_v4, %v1188_v41 }
 0x44b   : > { %v1196_v48 = vpop.xlane.xlu1 %1195 }
 0x44c   : > { %v1235_v44 = vmul.f32 1.442695, %v1216_v24  ;;  %v1220_v28 = vsub.f32 %v6819_v21, %v1196_v48 }
 0x44d   : > { %v1194_v10 = vpop.xlane.xlu0 %1193 }
 0x44e   : > { %5824 = vpow2.f32 %v1235_v44  ;;  %v1219_v60 = vsub.f32 %v6823_v35, %v1194_v10  ;;  %v1243_v38 = vmul.f32 1.442695, %v1220_v28 }
 0x44f   : > { %v1192_v31 = vpop.xlane.xlu1 %1191  ;;  %5826 = vpow2.f32 %v1231_v11 }
 0x450   : > { %v6959_v1 = vpop.eup %5820  ;;  %v1241_v63 = vmul.f32 1.442695, %v1219_v60  ;;  %v1218_v45 = vsub.f32 %v6827_v8, %v1192_v31 }
 0x451   : > { %1265 = vadd.xlane.f32.xlu0 %v6959_v1  ;;  %v1190_v4 = vpop.xlane.xlu0 %1189 }
 0x452   : > { %5828 = vpow2.f32 %v1241_v63  ;;  %v1217_v39 = vsub.f32 %v6831_v14, %v1190_v4  ;;  %v1239_v35 = vmul.f32 1.442695, %v1218_v45 }
 0x453   : > { %v1204_v0 = vpop.xlane.xlu1 %1203  ;;  %5830 = vpow2.f32 %v1243_v38 }
 0x454   : > { %v6964_v21 = vpop.eup %5822  ;;  %v1237_v40 = vmul.f32 1.442695, %v1217_v39  ;;  %v1224_v43 = vsub.f32 %v6835_v25, %v1204_v0 }
 0x455   : > { %1261 = vadd.xlane.f32.xlu0 %v6964_v21  ;;  %v1202_v46 = vpop.xlane.xlu0 %1201 }
 0x456   : > { %5832 = vpow2.f32 %v1237_v40  ;;  %v1223_v8 = vsub.f32 %v6839_v17, %v1202_v46  ;;  %v1251_v14 = vmul.f32 1.442695, %v1224_v43 }
 0x457   : > { %v1200_v41 = vpop.xlane.xlu1 %1199  ;;  %5834 = vpow2.f32 %v1239_v35 }
 0x458   : > { %v6969_v24 = vpop.eup %5824  ;;  %v1249_v48 = vmul.f32 1.442695, %v1223_v8  ;;  %v1222_v11 = vsub.f32 %v6843_v47, %v1200_v41 }
 0x459   : > { %1267 = vadd.xlane.f32.xlu1 %v6969_v24  ;;  %v1198_v44 = vpop.xlane.xlu0 %1197  ;;  %v6974_v28 = vpop.eup %5826 }
 0x45a   : > { %5836 = vpow2.f32 %v1249_v48  ;;  %v1221_v25 = vsub.f32 %v6847_v18, %v1198_v44  ;;  %v1247_v63 = vmul.f32 1.442695, %v1222_v11 }
 0x45b   : > { %5838 = vpow2.f32 %v1251_v14  ;;  %v1212_v17 = vpop.xlane.xlu1 %1211 }
 0x45c   : > { %v6976_v10 = vpop.eup %5828  ;;  %v1245_v60 = vmul.f32 1.442695, %v1221_v25  ;;  %v1228_v39 = vsub.f32 %v6851_v19, %v1212_v17 }
 0x45d   : > { %1263 = vadd.xlane.f32.xlu1 %v6974_v28  ;;  %1273 = vadd.xlane.f32.xlu0 %v6976_v10  ;;  %v1210_v31 = vpop.xlane.xlu0 %1209  ;;  %v6981_v45 = vpop.eup %5830 }
 0x45e   : > { %5840 = vpow2.f32 %v1245_v60  ;;  %v1227_v38 = vsub.f32 %v6855_v26, %v1210_v31  ;;  %v1259_v46 = vmul.f32 1.442695, %v1228_v39 }
 0x45f   : > { %5842 = vpow2.f32 %v1247_v63  ;;  %v1208_v35 = vpop.xlane.xlu1 %1207 }
 0x460   : > { %v6983_v47 = vpop.eup %5832  ;;  %v1257_v18 = vmul.f32 1.442695, %v1227_v38  ;;  %v1226_v8 = vsub.f32 %v6859_v27, %v1208_v35 }
 0x461   : > { %1275 = vadd.xlane.f32.xlu1 %v6981_v45  ;;  %1269 = vadd.xlane.f32.xlu0 %v6983_v47  ;;  %v1206_v4 = vpop.xlane.xlu0 %1205  ;;  %v6989_v40 = vpop.eup %5834 }
 0x462   : > { %v1225_v0 = vsub.f32 %v6863_v30, %v1206_v4  ;;  %5844 = vpow2.f32 %v1257_v18  ;;  %v1255_v30 = vmul.f32 1.442695, %v1226_v8 }
 0x463   : > { %v7021_v4 = vpop.permute.xlu1 %2023 }
 0x464   : > { %v6991_v43 = vpop.eup %5836  ;;  %v1253_v26 = vmul.f32 1.442695, %v1225_v0 }
 0x465   : > { %1271 = vadd.xlane.f32.xlu1 %v6989_v40  ;;  %1281 = vadd.xlane.f32.xlu0 %v6991_v43  ;;  %v6996_v41 = vpop.eup %5838 }
 0x466   : > { %5846 = vpow2.f32 %v1253_v26 }
 0x467   : > { %5848 = vpow2.f32 %v1259_v46 }
 0x468   : > { %v6998_v19 = vpop.eup %5840  ;;  %5850 = vpow2.f32 %v1255_v30 }
 0x469   : > { %1283 = vadd.xlane.f32.xlu1 %v6996_v41  ;;  %1277 = vadd.xlane.f32.xlu0 %v6998_v19  ;;  %v7002_v48 = vpop.eup %5842 }
 0x46c   : > { %v7005_v14 = vpop.eup %5844 }
 0x46d   : > { %1279 = vadd.xlane.f32.xlu1 %v7002_v48 }
 0x470   : > { %v7007_v44 = vpop.eup %5846 }
 0x471   : > { %1289 = vadd.xlane.f32.xlu1 %v7005_v14  ;;  %1285 = vadd.xlane.f32.xlu0 %v7007_v44  ;;  %v7011_v27 = vpop.eup %5848 }
 0x472   : > { %v7014_v11 = vpop.eup %5850 }
 0x475   : > { %1291 = vadd.xlane.f32.xlu1 %v7011_v27 }
 0x479   : > { %1287 = vadd.xlane.f32.xlu1 %v7014_v11 }
 0x481   : > { %v1652_v25 = vpop.xlane.xlu0 %1651 }
 0x482   : > { %v1681_v60 = vsub.f32 %v6870_v32, %v1652_v25 }
 0x484   : > { %v1699_v17 = vmul.f32 1.442695, %v1681_v60 }
 0x485   : > { %v1648_v31 = vpop.xlane.xlu0 %1647 }
 0x486   : > { %5852 = vpow2.f32 %v1699_v17  ;;  %v1679_v63 = vsub.f32 %v6874_v22, %v1648_v31 }
 0x488   : > { %v1695_v38 = vmul.f32 1.442695, %v1679_v63 }
 0x489   : > { %v7037_v25 = vpop.permute.xlu0 %2021 }
 0x48a   : > { %5854 = vpow2.f32 %v1695_v38 }
 0x490   : > { %v7019_v18 = vpop.eup %5852 }
 0x491   : > { %1731 = vadd.xlane.f32.xlu1 %v7019_v18 }
 0x494   : > { %v7024_v39 = vpop.eup %5854  ;;  %v1654_v0 = vpop.xlane.xlu1 %1653 }
 0x495   : > { %v1682_v35 = vsub.f32 %v6878_v49, %v1654_v0  ;;  %1727 = vadd.xlane.f32.xlu0 %v7024_v39 }
 0x497   : > { %v1701_v32 = vmul.f32 1.442695, %v1682_v35 }
 0x498   : > { %v1650_v26 = vpop.xlane.xlu1 %1649 }
 0x499   : > { %5856 = vpow2.f32 %v1701_v32  ;;  %v1680_v22 = vsub.f32 %v6882_v51, %v1650_v26 }
 0x49b   : > { %v1697_v46 = vmul.f32 1.442695, %v1680_v22 }
 0x49c   : > { %v1662_v49 = vpop.xlane.xlu1 %1661 }
 0x49d   : > { %5858 = vpow2.f32 %v1697_v46  ;;  %v1686_v38 = vsub.f32 %v6886_v29, %v1662_v49 }
 0x49f   : > { %v1709_v26 = vmul.f32 1.442695, %v1686_v38 }
 0x4a0   : > { %v1658_v51 = vpop.xlane.xlu1 %1657 }
 0x4a1   : > { %v1684_v53 = vsub.f32 %v6892_v56, %v1658_v51 }
 0x4a3   : > { %v7029_v8 = vpop.eup %5856 }
 0x4a4   : > { %1733 = vadd.xlane.f32.xlu1 %v7029_v8  ;;  %v1670_v35 = vpop.xlane.xlu1 %1669 }
 0x4a7   : > { %v7032_v30 = vpop.eup %5858 }
 0x4a8   : > { %1729 = vadd.xlane.f32.xlu1 %v7032_v30  ;;  %v1666_v22 = vpop.xlane.xlu1 %1665 }
 0x4ab   : > { %2025 = vrot.lane.b32.xlu0 %v6683_v50, %s6288_s27 }
 0x4ac   : > { %v1678_v49 = vpop.xlane.xlu1 %1677 }
 0x4ad   : > { %v1694_v38 = vsub.f32 %v6904_v61, %v1678_v49 }
 0x4b9   : > { %2027 = vrot.lane.b32.xlu1 %v6693_v52, %s6288_s27 }
 0x4ba   : > { %v1660_v60 = vpop.xlane.xlu0 %1659 }
 0x4bb   : > { %v1685_v17 = vsub.f32 %v6916_v2, %v1660_v60 }
 0x4bd   : > { %v1707_v31 = vmul.f32 1.442695, %v1685_v17  ;;  %v1705_v17 = vmul.f32 1.442695, %v1684_v53  ;;  %v1725_v53 = vmul.f32 1.442695, %v1694_v38 }
 0x4be   : > { %v1656_v63 = vpop.xlane.xlu0 %1655 }
 0x4bf   : > { %5860 = vpow2.f32 %v1707_v31  ;;  %v1683_v0 = vsub.f32 %v6920_v5, %v1656_v63 }
 0x4c1   : > { %v1703_v32 = vmul.f32 1.442695, %v1683_v0 }
 0x4c2   : > { %v1668_v50 = vpop.xlane.xlu0 %1667 }
 0x4c3   : > { %5862 = vpow2.f32 %v1703_v32  ;;  %v1689_v31 = vsub.f32 %v6928_v9, %v1668_v50  ;;  %v1690_v9 = vsub.f32 %v6896_v57, %v1670_v35 }
 0x4c4   : > { %5864 = vpow2.f32 %v1709_v26 }
 0x4c5   : > { %v1717_v26 = vmul.f32 1.442695, %v1690_v9 }
 0x4c6   : > { %v1664_v46 = vpop.xlane.xlu0 %1663 }
 0x4c7   : > { %v1687_v32 = vsub.f32 %v6936_v16, %v1664_v46 }
 0x4c9   : > { %v7044_v52 = vpop.eup %5860  ;;  %v1711_v50 = vmul.f32 1.442695, %v1687_v32 }
 0x4ca   : > { %1739 = vadd.xlane.f32.xlu0 %v7044_v52  ;;  %v1676_v2 = vpop.xlane.xlu0 %1675 }
 0x4cb   : > { %v1693_v29 = vsub.f32 %v6940_v54, %v1676_v2  ;;  %v1715_v54 = vmul.f32 1.442695, %v1689_v31  ;;  %v1674_v2 = vpop.xlane.xlu1 %1673 }
 0x4cc   : > { %v1692_v35 = vsub.f32 %v6908_v33, %v1674_v2 }
 0x4cd   : > { %v7049_v60 = vpop.eup %5862  ;;  %v1723_v5 = vmul.f32 1.442695, %v1693_v29 }
 0x4ce   : > { %1735 = vadd.xlane.f32.xlu0 %v7049_v60  ;;  %v1672_v63 = vpop.xlane.xlu0 %1671  ;;  %v7055_v51 = vpop.eup %5864 }
 0x4cf   : > { %5866 = vpow2.f32 %v1723_v5  ;;  %v1691_v56 = vsub.f32 %v6948_v12, %v1672_v63  ;;  %v1688_v12 = vsub.f32 %v6900_v59, %v1666_v22  ;;  %v1721_v22 = vmul.f32 1.442695, %v1692_v35 }
 0x4d0   : > { %5868 = vpow2.f32 %v1705_v17 }
 0x4d1   : > { %v1719_v0 = vmul.f32 1.442695, %v1691_v56  ;;  %v1713_v57 = vmul.f32 1.442695, %v1688_v12 }
 0x4d2   : > { %1741 = vadd.xlane.f32.xlu0 %v7055_v51 }
 0x4d3   : > { %5870 = vpow2.f32 %v1719_v0 }
 0x4d4   : > { %5872 = vpow2.f32 %v1715_v54 }
 0x4d5   : > { %5874 = vpow2.f32 %v1725_v53 }
 0x4d6   : > { %5876 = vpow2.f32 %v1711_v50 }
 0x4d7   : > { %5878 = vpow2.f32 %v1717_v26 }
 0x4d8   : > { %5880 = vpow2.f32 %v1713_v57 }
 0x4d9   : > { %v7060_v61 = vpop.eup %5866  ;;  %5882 = vpow2.f32 %v1721_v22 }
 0x4da   : > { %1755 = vadd.xlane.f32.xlu0 %v7060_v61  ;;  %v7064_v29 = vpop.eup %5868 }
 0x4dd   : > { %v7066_v16 = vpop.eup %5870  ;;  %1737 = vadd.xlane.f32.xlu1 %v7064_v29 }
 0x4de   : > { %1751 = vadd.xlane.f32.xlu0 %v7066_v16  ;;  %v7071_v46 = vpop.eup %5872  ;;  %v1266_v49 = vpop.xlane.xlu0 %1265 }
 0x4df   : > { %v7073_v59 = vpop.eup %5874 }
 0x4e0   : > { %v7077_v5 = vpop.eup %5876 }
 0x4e1   : > { %1747 = vadd.xlane.f32.xlu1 %v7071_v46  ;;  %v7080_v31 = vpop.eup %5878 }
 0x4e2   : > { %1757 = vadd.xlane.f32.xlu0 %v7073_v59  ;;  %v1262_v17 = vpop.xlane.xlu0 %1261  ;;  %v7083_v56 = vpop.eup %5880 }
 0x4e3   : > { %v7086_v32 = vpop.eup %5882 }
 0x4e5   : > { %1743 = vadd.xlane.f32.xlu1 %v7077_v5 }
 0x4e6   : > { %v1268_v33 = vpop.xlane.xlu1 %1267 }
 0x4e7   : > { %5884 = vrcp.f32 %v1268_v33 }
 0x4e8   : > { %5886 = vrcp.f32 %v1262_v17 }
 0x4e9   : > { %1749 = vadd.xlane.f32.xlu1 %v7080_v31  ;;  %5888 = vrcp.f32 %v1266_v49 }
 0x4ea   : > { %v1264_v63 = vpop.xlane.xlu1 %1263  ;;  %v1274_v38 = vpop.xlane.xlu0 %1273 }
 0x4eb   : > { %5890 = vrcp.f32 %v1264_v63 }
 0x4ed   : > { %1745 = vadd.xlane.f32.xlu1 %v7083_v56 }
 0x4ee   : > { %v1276_v0 = vpop.xlane.xlu1 %1275  ;;  %v1270_v54 = vpop.xlane.xlu0 %1269 }
 0x4ef   : > { %5892 = vrcp.f32 %v1276_v0 }
 0x4f0   : > { %5894 = vrcp.f32 %v1270_v54 }
 0x4f1   : > { %1753 = vadd.xlane.f32.xlu1 %v7086_v32  ;;  %v5885_v53 = vpop.eup %5884  ;;  %5896 = vrcp.f32 %v1274_v38 }
 0x4f2   : > { %v1272_v9 = vpop.xlane.xlu1 %1271  ;;  %v1282_v50 = vpop.xlane.xlu0 %1281  ;;  %v1312_v57 = vmul.f32 %v5885_v53, %v6969_v24 }
 0x4f3   : > { %v5887_v26 = vpop.eup %5886  ;;  %5898 = vrcp.f32 %v1272_v9 }
 0x4f4   : > { %v5889_v12 = vpop.eup %5888  ;;  %v1309_v22 = vmul.f32 %v5887_v26, %v6964_v21  ;;  %v6236_v21 = vld [vmem:[#allocation5] sm:$0xff] }
 0x4f5   : > { %v5891_v2 = vpop.eup %5890  ;;  %v1311_v33 = vmul.f32 %v5889_v12, %v6959_v1  ;;  %v6237_v12 = vld [vmem:[#allocation5 + $0x20] sm:$0xff] }
 0x4f6   : > { %v1284_v35 = vpop.xlane.xlu1 %1283  ;;  %v1278_v49 = vpop.xlane.xlu0 %1277  ;;  %v1310_v17 = vmul.f32 %v5891_v2, %v6974_v28 }
 0x4f7   : > { %5900 = vrcp.f32 %v1284_v35  ;;  %v1326_v38 = vpack.c.bf16 %v1312_v57, %v1311_v33 }
 0x4f8   : > { %2029 = vrot.lane.b32.xlu0 %v6699_v13, %s6288_s27  ;;  %v1325_v63 = vpack.c.bf16 %v1310_v17, %v1309_v22  ;;  %5902 = vrcp.f32 %v1278_v49  ;;  %v6239_v17 = vld [vmem:[#allocation5 + $0x10] sm:$0xff] }
 0x4f9   : > { %v5893_v0 = vpop.eup %5892  ;;  %5904 = vrcp.f32 %v1282_v50 }
 0x4fa   : > { %v1280_v54 = vpop.xlane.xlu1 %1279  ;;  %5430 = vmatprep.mubr.bf16.mxu0 %v1325_v63  ;;  %v5895_v24 = vpop.eup %5894  ;;  %v1316_v13 = vmul.f32 %v5893_v0, %v6981_v45  ;;  %v6240_v63 = vld [vmem:[#allocation5 + $0x60] sm:$0xff]  ;;  %v6241_v0 = vld [vmem:[#allocation5 + $0x30] sm:$0xff] }
 0x4fb   : > { %5906 = vrcp.f32 %v1280_v54  ;;  %5431 = vmatmul.mubr.bf16.vlgmr.msra.gmra.mrb[32].mxu0 %v1326_v38  ;;  %v5897_v53 = vpop.eup %5896  ;;  %v1313_v9 = vmul.f32 %v5895_v24, %v6983_v47  ;;  %v7126_v54 = vld [vmem:[#allocation5 + $0x28] sm:$0xff] }
 0x4fc   : > { %5479 = vmatpush3.bf16.msra.mxu0 %v6778_v42  ;;  %2001 = vrot.lane.b32.xlu0 %v6236_v21, %s6290_s29  ;;  %v1315_v26 = vmul.f32 %v5897_v53, %v6976_v10  ;;  %v6243_v21 = vld [vmem:[#allocation5 + $0x70] sm:$0xff] }
 0x4fd   : > { %v5899_v1 = vpop.eup %5898  ;;  %5480 = vmatprep.subr.bf16.mxu0 %v6922_v6 }
 0x4fe   : > { %v1290_v28 = vpop.xlane.xlu1 %1289  ;;  %v1314_v50 = vmul.f32 %v5899_v1, %v6989_v40  ;;  %v1328_v2 = vpack.c.bf16 %v1316_v13, %v1315_v26  ;;  %v1286_v35 = vpop.xlane.xlu0 %1285  ;;  %v7158_v26 = vld [vmem:[#allocation5 + $0x10] sm:$0xff] }
 0x500   : > { %5481 = vmatpush3.bf16.msra.mxu0 %v6922_v6  ;;  %2005 = vrot.lane.b32.xlu0 %v6237_v12, %s6290_s29  ;;  %v1327_v42 = vpack.c.bf16 %v1314_v50, %v1313_v9  ;;  %v6238_v6 = vld [vmem:[#allocation5 + $0x40] sm:$0xff]  ;;  %v7140_v50 = vld [vmem:[#allocation5 + $0x18] sm:$0xff] }
 0x501   : > { %5482 = vmatprep.subr.bf16.mxu0 %v6911_v37  ;;  %v5901_v57 = vpop.eup %5900 }
 0x502   : > { %v1292_v49 = vpop.xlane.xlu1 %1291  ;;  %2031 = vrot.lane.b32.xlu1 %v6707_v3, %s6288_s27  ;;  %5434 = vmatprep.mubr.bf16.mxu0 %v1327_v42  ;;  %v5903_v45 = vpop.eup %5902  ;;  %v1320_v40 = vmul.f32 %v5901_v57, %v6996_v41 }
 0x503   : > { %5435 = vmatmul.mubr.bf16.gmra.mrb[36].mxu0 %v1328_v2  ;;  %v5905_v47 = vpop.eup %5904  ;;  %5908 = vrcp.f32 %v1292_v49  ;;  %v1317_v3 = vmul.f32 %v5903_v45, %v6998_v19  ;;  %v7119_v19 = vld [vmem:[#allocation5 + $0x8] sm:$0xff] }
 0x504   : > { %5483 = vmatpush3.bf16.msra.mxu0 %v6911_v37  ;;  %2009 = vrot.lane.b32.xlu0 %v6238_v6, %s6290_s29  ;;  %5910 = vrcp.f32 %v1286_v35  ;;  %v1319_v37 = vmul.f32 %v5905_v47, %v6991_v43  ;;  %v6242_v43 = vld [vmem:[#allocation5 + $0x50] sm:$0xff] }
 0x505   : > { %v5907_v10 = vpop.eup %5906  ;;  %5484 = vmatprep.subr.bf16.mxu0 %v6931_v15  ;;  %5912 = vrcp.f32 %v1290_v28  ;;  %v1989_v28 = vld [vmem:[#allocation5 + $0x48] sm:$0xff] }
 0x506   : > { %v1288_v22 = vpop.xlane.xlu1 %1287  ;;  %2003 = vrot.lane.b32.xlu1 %v6239_v17, %s6290_s29  ;;  %v1318_v33 = vmul.f32 %v5907_v10, %v7002_v48  ;;  %v1330_v41 = vpack.c.bf16 %v1320_v40, %v1319_v37  ;;  %v2067_v37 = vsel %vm1035_vm1, %v7021_v4, 0 }
 0x507   : > { %5914 = vrcp.f32 %v1288_v22 }
 0x508   : > { %5485 = vmatpush3.bf16.msra.mxu0 %v6931_v15  ;;  %2013 = vrot.lane.b32.xlu0 %v6240_v63, %s6290_s29  ;;  %v1329_v38 = vpack.c.bf16 %v1318_v33, %v1317_v3  ;;  %v2058_v33 = vsel %vm1035_vm1, %v6944_v36, 0 }
 0x509   : > { %5486 = vmatprep.subr.bf16.mxu0 %v6913_v23 }
 0x50a   : > { %2007 = vrot.lane.b32.xlu1 %v6241_v0, %s6290_s29  ;;  %5438 = vmatprep.mubr.bf16.mxu0 %v1329_v38 }
 0x50b   : > { %5439 = vmatmul.mubr.bf16.gmra.mrb[40].mxu0 %v1330_v41 }
 0x50c   : > { %5487 = vmatpush3.bf16.msra.mxu0 %v6913_v23  ;;  %2338 = vrot.lane.b32.xlu0 %v7119_v19, %s6290_s29 }
 0x50d   : > { %5488 = vmatprep.subr.bf16.mxu0 %v6924_v7  ;;  %v5909_v15 = vpop.eup %5908 }
 0x50e   : > { %2011 = vrot.lane.b32.xlu1 %v6242_v43, %s6290_s29  ;;  %v5911_v48 = vpop.eup %5910  ;;  %v1324_v23 = vmul.f32 %v5909_v15, %v7011_v27 }
 0x50f   : > { %v5913_v24 = vpop.eup %5912  ;;  %v1321_v1 = vmul.f32 %v5911_v48, %v7007_v44  ;;  %v1991_v44 = vld [vmem:[#allocation5 + $0x68] sm:$0xff] }
 0x510   : > { %5489 = vmatpush3.bf16.msra.mxu0 %v6924_v7  ;;  %2342 = vrot.lane.b32.xlu0 %v7126_v54, %s6290_s29  ;;  %v1323_v9 = vmul.f32 %v5913_v24, %v7005_v14  ;;  %v7152_v14 = vld [vmem:[#allocation5] sm:$0xff] }
 0x511   : > { %v5915_v53 = vpop.eup %5914  ;;  %5490 = vmatprep.subr.bf16.mxu0 %v6933_v55 }
 0x512   : > { %2015 = vrot.lane.b32.xlu1 %v6243_v21, %s6290_s29  ;;  %v1322_v13 = vmul.f32 %v5915_v53, %v7014_v11  ;;  %v1332_v27 = vpack.c.bf16 %v1324_v23, %v1323_v9  ;;  %v1990_v11 = vld [vmem:[#allocation5 + $0x58] sm:$0xff] }
 0x514   : > { %5491 = vmatpush3.bf16.msra.mxu0 %v6933_v55  ;;  %2346 = vrot.lane.b32.xlu0 %v1989_v28, %s6290_s29  ;;  %v1331_v7 = vpack.c.bf16 %v1322_v13, %v1321_v1  ;;  %v7148_v55 = vld [vmem:[#allocation5 + $0x38] sm:$0xff] }
 0x515   : > { %5492 = vmatprep.subr.bf16.mxu0 %v6951_v20 }
 0x516   : > { %2340 = vrot.lane.b32.xlu1 %v7140_v50, %s6290_s29  ;;  %5442 = vmatprep.mubr.bf16.mxu0 %v1331_v7 }
 0x517   : > { %5443 = vmatmul.mubr.bf16.gmra.mrb[44].mxu0 %v1332_v27 }
 0x518   : > { %5493 = vmatpush3.bf16.msra.mxu0 %v6951_v20  ;;  %2350 = vrot.lane.b32.xlu0 %v1991_v44, %s6290_s29  ;;  %v1992_v20 = vld [vmem:[#allocation5 + $0x78] sm:$0xff] }
 0x519   : > { %5694 = vmatprep.subr.msk.bf16.mxu0 %vm1035_vm1, %v6944_v36 }
 0x51a   : > { %2344 = vrot.lane.b32.xlu1 %v7148_v55, %s6290_s29 }
 0x51c   : > { %2548 = vrot.lane.b32.xlu0 %v7152_v14, %s6291_s30 }
 0x51e   : > { %2348 = vrot.lane.b32.xlu1 %v1990_v11, %s6290_s29  ;;  %v1732_v12 = vpop.xlane.xlu1 %1731 }
 0x522   : > { %2352 = vrot.lane.b32.xlu1 %v1992_v20, %s6290_s29  ;;  %v1728_v42 = vpop.xlane.xlu0 %1727 }
 0x526   : > { %2550 = vrot.lane.b32.xlu1 %v7158_v26, %s6291_s30 }
 0x531   : > { %v1734_v2 = vpop.xlane.xlu1 %1733 }
 0x532   : > { %5916 = vrcp.f32 %v1734_v2 }
 0x533   : > { %5918 = vrcp.f32 %v1728_v42 }
 0x534   : > { %5920 = vrcp.f32 %v1732_v12 }
 0x535   : > { %v1730_v57 = vpop.xlane.xlu1 %1729 }
 0x536   : > { %5922 = vrcp.f32 %v1730_v57 }
 0x539   : > { %v2028_v63 = vpop.permute.xlu1 %2027 }
 0x53c   : > { %v5917_v35 = vpop.eup %5916 }
 0x53d   : > { %v5919_v49 = vpop.eup %5918  ;;  %v1778_v6 = vmul.f32 %v5917_v35, %v7029_v8  ;;  %v2061_v8 = vsel %vm1035_vm1, %v6942_v34, 0 }
 0x53e   : > { %v5921_v45 = vpop.eup %5920  ;;  %v1775_v10 = vmul.f32 %v5919_v49, %v7024_v39  ;;  %v2026_v39 = vpop.permute.xlu0 %2025 }
 0x53f   : > { %v1777_v22 = vmul.f32 %v5921_v45, %v7019_v18  ;;  %v2064_v18 = vsel %vm1035_vm1, %v7037_v25, 0  ;;  %v2070_v38 = vsel %vm1035_vm1, %v2026_v39, 0 }
 0x540   : > { %v5923_v47 = vpop.eup %5922 }
 0x541   : > { %v1776_v40 = vmul.f32 %v5923_v47, %v7032_v30  ;;  %v1792_v3 = vpack.c.bf16 %v1778_v6, %v1777_v22 }
 0x543   : > { %v1791_v17 = vpack.c.bf16 %v1776_v40, %v1775_v10 }
 0x545   : > { %5494 = vmatprep.mubr.bf16.mxu0 %v1791_v17 }
 0x546   : > { %5495 = vmatmul.mubr.bf16.vlgmr.msra.gmra.mrb[48].mxu0 %v1792_v3 }
 0x547   : > { %5511 = vmatpush3.bf16.xpose.msra.mxu0 %v2058_v33 }
 0x548   : > { %5695 = vmatprep.subr.msk.bf16.mxu0 %vm1035_vm1, %v6942_v34 }
 0x54f   : > { %5513 = vmatpush3.bf16.xpose.msra.mxu0 %v2061_v8 }
 0x550   : > { %5696 = vmatprep.subr.msk.bf16.mxu0 %vm1035_vm1, %v7037_v25 }
 0x557   : > { %5515 = vmatpush3.bf16.xpose.msra.mxu0 %v2064_v18  ;;  %v1740_v30 = vpop.xlane.xlu0 %1739 }
 0x558   : > { %5697 = vmatprep.subr.msk.bf16.mxu0 %vm1035_vm1, %v7021_v4  ;;  %v2073_v4 = vsel %vm1035_vm1, %v2028_v63, 0 }
 0x55b   : > { %v1736_v36 = vpop.xlane.xlu0 %1735 }
 0x55f   : > { %5517 = vmatpush3.bf16.xpose.msra.mxu0 %v2067_v37  ;;  %v1742_v34 = vpop.xlane.xlu0 %1741 }
 0x560   : > { %5698 = vmatprep.subr.msk.bf16.mxu0 %vm1035_vm1, %v2026_v39  ;;  %5924 = vrcp.f32 %v1742_v34 }
 0x561   : > { %5926 = vrcp.f32 %v1736_v36 }
 0x562   : > { %5928 = vrcp.f32 %v1740_v30 }
 0x567   : > { %5519 = vmatpush3.bf16.xpose.msra.mxu0 %v2070_v38  ;;  %v1756_v41 = vpop.xlane.xlu0 %1755 }
 0x568   : > { %5699 = vmatprep.subr.msk.bf16.mxu0 %vm1035_vm1, %v2028_v63 }
 0x56a   : > { %v1738_v25 = vpop.xlane.xlu1 %1737  ;;  %v5925_v48 = vpop.eup %5924 }
 0x56b   : > { %5930 = vrcp.f32 %v1738_v25  ;;  %v1752_v0 = vpop.xlane.xlu0 %1751  ;;  %v5927_v53 = vpop.eup %5926  ;;  %v1782_v28 = vmul.f32 %v5925_v48, %v7055_v51 }
 0x56c   : > { %v5929_v21 = vpop.eup %5928  ;;  %v1779_v7 = vmul.f32 %v5927_v53, %v7049_v60 }
 0x56d   : > { %v1781_v11 = vmul.f32 %v5929_v21, %v7044_v52 }
 0x56e   : > { %v1748_v15 = vpop.xlane.xlu1 %1747 }
 0x56f   : > { %5521 = vmatpush3.bf16.xpose.msra.mxu0 %v2073_v4  ;;  %v1758_v43 = vpop.xlane.xlu0 %1757  ;;  %v1794_v12 = vpack.c.bf16 %v1782_v28, %v1781_v11 }
 0x572   : > { %v1744_v24 = vpop.xlane.xlu1 %1743 }
 0x573   : > { %v2030_v23 = vpop.permute.xlu0 %2029 }
 0x574   : > { %5700 = vmatprep.subr.msk.bf16.mxu0 %vm1035_vm1, %v2030_v23  ;;  %v2076_v1 = vsel %vm1035_vm1, %v2030_v23, 0 }
 0x575   : > { %v5931_v13 = vpop.eup %5930 }
 0x576   : > { %v1750_v9 = vpop.xlane.xlu1 %1749  ;;  %v1780_v27 = vmul.f32 %v5931_v13, %v7064_v29 }
 0x577   : > { %5523 = vmatpush3.bf16.xpose.msra.mxu0 %v2076_v1  ;;  %v2002_v44 = vpop.permute.xlu0 %2001  ;;  %5932 = vrcp.f32 %v1750_v9 }
 0x578   : > { %v1793_v20 = vpack.c.bf16 %v1780_v27, %v1779_v7  ;;  %5934 = vrcp.f32 %v1744_v24 }
 0x579   : > { %5936 = vrcp.f32 %v1748_v15 }
 0x57a   : > { %v1746_v42 = vpop.xlane.xlu1 %1745  ;;  %5498 = vmatprep.mubr.bf16.mxu0 %v1793_v20 }
 0x57b   : > { %5938 = vrcp.f32 %v1746_v42  ;;  %5499 = vmatmul.mubr.bf16.gmra.mrb[52].mxu0 %v1794_v12  ;;  %v2006_v2 = vpop.permute.xlu0 %2005 }
 0x57c   : > { %5940 = vrcp.f32 %v1752_v0 }
 0x57e   : > { %v1754_v51 = vpop.xlane.xlu1 %1753 }
 0x57f   : > { %5942 = vrcp.f32 %v1754_v51  ;;  %v2010_v60 = vpop.permute.xlu0 %2009 }
 0x580   : > { %5944 = vrcp.f32 %v1758_v43 }
 0x581   : > { %v5933_v29 = vpop.eup %5932  ;;  %5946 = vrcp.f32 %v1756_v41 }
 0x582   : > { %v2032_v57 = vpop.permute.xlu1 %2031  ;;  %v5935_v35 = vpop.eup %5934  ;;  %v1786_v6 = vmul.f32 %v5933_v29, %v7080_v31 }
 0x583   : > { %5701 = vmatprep.subr.msk.bf16.mxu0 %vm1035_vm1, %v2032_v57  ;;  %v2014_v52 = vpop.permute.xlu0 %2013  ;;  %v2079_v49 = vsel %vm1035_vm1, %v2032_v57, 0  ;;  %v5937_v45 = vpop.eup %5936  ;;  %v1783_v40 = vmul.f32 %v5935_v35, %v7077_v5 }
 0x584   : > { %5525 = vmatpush3.bf16.xpose.msra.mxu0 %v2079_v49  ;;  %v1785_v33 = vmul.f32 %v5937_v45, %v7071_v46 }
 0x585   : > { %v5939_v47 = vpop.eup %5938 }
 0x586   : > { %v2004_v10 = vpop.permute.xlu1 %2003  ;;  %v1784_v22 = vmul.f32 %v5939_v47, %v7083_v56  ;;  %v5941_v17 = vpop.eup %5940  ;;  %v1796_v18 = vpack.c.bf16 %v1786_v6, %v1785_v33 }
 0x587   : > { %v2339_v3 = vpop.permute.xlu0 %2338  ;;  %v1787_v37 = vmul.f32 %v5941_v17, %v7066_v16 }
 0x588   : > { %5542 = vmatprep.subr.bf16.mxu1 %v2339_v3  ;;  %v1795_v8 = vpack.c.bf16 %v1784_v22, %v1783_v40 }
 0x589   : > { %v5943_v39 = vpop.eup %5942  ;;  %5543 = vmatpush3.bf16.msra.mxu1 %v2339_v3 }
 0x58a   : > { %v5945_v30 = vpop.eup %5944  ;;  %v2008_v36 = vpop.permute.xlu1 %2007  ;;  %5502 = vmatprep.mubr.bf16.mxu0 %v1795_v8  ;;  %v1788_v31 = vmul.f32 %v5943_v39, %v7086_v32 }
 0x58b   : > { %5503 = vmatmul.mubr.bf16.gmra.mrb[56].mxu0 %v1796_v18  ;;  %v5947_v5 = vpop.eup %5946  ;;  %v1790_v56 = vmul.f32 %v5945_v30, %v7073_v59  ;;  %v2343_v0 = vpop.permute.xlu0 %2342 }
 0x58c   : > { %v1797_v34 = vpack.c.bf16 %v1788_v31, %v1787_v37  ;;  %v1789_v46 = vmul.f32 %v5947_v5, %v7060_v61 }
 0x58e   : > { %v2012_v63 = vpop.permute.xlu1 %2011  ;;  %5506 = vmatprep.mubr.bf16.mxu0 %v1797_v34  ;;  %v1798_v38 = vpack.c.bf16 %v1790_v56, %v1789_v46 }
 0x58f   : > { %v2347_v59 = vpop.permute.xlu0 %2346 }
 0x592   : > { %v2016_v41 = vpop.permute.xlu1 %2015 }
 0x593   : > { %5507 = vmatmul.mubr.bf16.gmra.mrb[60].mxu0 %v1798_v38  ;;  %v2351_v32 = vpop.permute.xlu0 %2350 }
 0x594   : > { %5526 = vmatprep.mubr.msk.bf16.mxu0 %vm1035_vm1, %v2002_v44 }
 0x596   : > { %v2341_v25 = vpop.permute.xlu1 %2340 }
 0x597   : > { %5544 = vmatprep.subr.bf16.mxu1 %v2341_v25  ;;  %v7207_v4 = vpop.permute.xlu0 %2548 }
 0x598   : > { %5545 = vmatpush3.bf16.msra.mxu1 %v2341_v25 }
 0x599   : > { %5546 = vmatprep.subr.bf16.mxu1 %v2343_v0 }
 0x59a   : > { %v2345_v16 = vpop.permute.xlu1 %2344 }
 0x59b   : > { %5527 = vmatmul.mubr.msk.bf16.vlgmr.msra.gmra.mrb[64].mxu0 %vm1035_vm1, %v2004_v10 }
 0x59c   : > { %5530 = vmatprep.mubr.msk.bf16.mxu0 %vm1035_vm1, %v2006_v2  ;;  %5547 = vmatpush3.bf16.msra.mxu1 %v2343_v0 }
 0x59d   : > { %5548 = vmatprep.subr.bf16.mxu1 %v2345_v16 }
 0x59e   : > { %v2349_v61 = vpop.permute.xlu1 %2348 }
 0x5a0   : > { %5549 = vmatpush3.bf16.msra.mxu1 %v2345_v16 }
 0x5a1   : > { %5550 = vmatprep.subr.bf16.mxu1 %v2347_v59 }
 0x5a2   : > { %v2353_v15 = vpop.permute.xlu1 %2352 }
 0x5a3   : > { %5531 = vmatmul.mubr.msk.bf16.gmra.mrb[68].mxu0 %vm1035_vm1, %v2008_v36 }
 0x5a4   : > { %5534 = vmatprep.mubr.msk.bf16.mxu0 %vm1035_vm1, %v2010_v60  ;;  %5551 = vmatpush3.bf16.msra.mxu1 %v2347_v59 }
 0x5a5   : > { %5552 = vmatprep.subr.bf16.mxu1 %v2349_v61 }
 0x5a8   : > { %5553 = vmatpush3.bf16.msra.mxu1 %v2349_v61 }
 0x5a9   : > { %5554 = vmatprep.subr.bf16.mxu1 %v2351_v32 }
 0x5ab   : > { %5535 = vmatmul.mubr.msk.bf16.gmra.mrb[72].mxu0 %vm1035_vm1, %v2012_v63 }
 0x5ac   : > { %5538 = vmatprep.mubr.msk.bf16.mxu0 %vm1035_vm1, %v2014_v52  ;;  %5555 = vmatpush3.bf16.msra.mxu1 %v2351_v32 }
 0x5ad   : > { %5556 = vmatprep.subr.bf16.mxu1 %v2353_v15 }
 0x5b0   : > { %5557 = vmatpush3.bf16.msra.mxu1 %v2353_v15 }
 0x5b1   : > { %5702 = vmatprep.subr.msk.bf16.mxu1 %vm1035_vm1, %v7207_v4 }
 0x5b3   : > { %5539 = vmatmul.mubr.msk.bf16.gmra.mrb[76].mxu0 %vm1035_vm1, %v2016_v41 }
 0x5ce   : > { %v5432_v43 = vpop.f32.mrb[32].mxu0 }
 0x5cf   : > { %v1367_v48 = vpop.f32.mrb[33].mxu0 }
 0x5d0   : > { %v5433_v24 = vpop.f32.mrb[34].mxu0 }
 0x5d1   : > { %v1431_v53 = vpack.c.bf16 %v5433_v24, %v5432_v43  ;;  %v1370_v23 = vpop.f32.mrb[35].mxu0 }
 0x5d2   : > { %v1430_v21 = vpack.c.bf16 %v1370_v23, %v1367_v48 }
 0x5d3   : > { %1439 = vst.msk [vmem:[#allocation6 + $0x8] sm:$0xff] %vm1035_vm1, %v1431_v53 }
 0x5d4   : > { %1438 = vst.msk [vmem:[#allocation6] sm:$0xff] %vm1035_vm1, %v1430_v21 }
 0x5d6   : > { %v5436_v1 = vpop.f32.mrb[36].mxu0 }
 0x5d7   : > { %v1383_v13 = vpop.f32.mrb[37].mxu0 }
 0x5d8   : > { %v5437_v28 = vpop.f32.mrb[38].mxu0 }
 0x5d9   : > { %v1433_v9 = vpack.c.bf16 %v5437_v28, %v5436_v1  ;;  %v1386_v7 = vpop.f32.mrb[39].mxu0 }
 0x5da   : > { %v1432_v27 = vpack.c.bf16 %v1386_v7, %v1383_v13 }
 0x5db   : > { %1441 = vst.msk [vmem:[#allocation6 + $0x18] sm:$0xff] %vm1035_vm1, %v1433_v9 }
 0x5dc   : > { %1440 = vst.msk [vmem:[#allocation6 + $0x10] sm:$0xff] %vm1035_vm1, %v1432_v27 }
 0x5de   : > { %v5440_v44 = vpop.f32.mrb[40].mxu0 }
 0x5df   : > { %v1399_v11 = vpop.f32.mrb[41].mxu0 }
 0x5e0   : > { %v5441_v20 = vpop.f32.mrb[42].mxu0 }
 0x5e1   : > { %v1435_v12 = vpack.c.bf16 %v5441_v20, %v5440_v44  ;;  %v1402_v42 = vpop.f32.mrb[43].mxu0 }
 0x5e2   : > { %v1434_v2 = vpack.c.bf16 %v1402_v42, %v1399_v11 }
 0x5e3   : > { %1443 = vst.msk [vmem:[#allocation6 + $0x28] sm:$0xff] %vm1035_vm1, %v1435_v12 }
 0x5e4   : > { %1442 = vst.msk [vmem:[#allocation6 + $0x20] sm:$0xff] %vm1035_vm1, %v1434_v2 }
 0x5ea   : > { %v5444_v51 = vpop.f32.mrb[44].mxu0 }
 0x5eb   : > { %v1415_v60 = vpop.f32.mrb[45].mxu0 }
 0x5ec   : > { %v5445_v29 = vpop.f32.mrb[46].mxu0 }
 0x5ed   : > { %v1437_v57 = vpack.c.bf16 %v5445_v29, %v5444_v51  ;;  %v1418_v35 = vpop.f32.mrb[47].mxu0 }
 0x5ee   : > { %v1436_v52 = vpack.c.bf16 %v1418_v35, %v1415_v60 }
 0x5ef   : > { %1445 = vst.msk [vmem:[#allocation6 + $0x38] sm:$0xff] %vm1035_vm1, %v1437_v57 }
 0x5f0   : > { %1444 = vst.msk [vmem:[#allocation6 + $0x30] sm:$0xff] %vm1035_vm1, %v1436_v52  ;;  %v7312_v52 = vld [vmem:[#allocation5 + $0x30] sm:$0xff] }
 0x619   : > { %v7220_v49 = vpop.f32.mrb[48].mxu0 }
 0x61a   : > { %v7222_v45 = vpop.f32.mrb[49].mxu0 }
 0x61b   : > { %v7224_v47 = vpop.f32.mrb[50].mxu0 }
 0x61c   : > { %v7228_v10 = vpop.f32.mrb[51].mxu0 }
 0x64e   : > { %v7232_v22 = vpop.f32.mrb[52].mxu0 }
 0x64f   : > { %v7234_v17 = vpop.f32.mrb[53].mxu0 }
 0x650   : > { %v7236_v3 = vpop.f32.mrb[54].mxu0 }
 0x651   : > { %v7240_v8 = vpop.f32.mrb[55].mxu0 }
 0x65e   : > { %v7244_v18 = vpop.f32.mrb[56].mxu0 }
 0x65f   : > { %v7246_v30 = vpop.f32.mrb[57].mxu0 }
 0x660   : > { %v7248_v36 = vpop.f32.mrb[58].mxu0 }
 0x661   : > { %v7252_v31 = vpop.f32.mrb[59].mxu0 }
 0x666   : > { %v7256_v34 = vpop.f32.mrb[60].mxu0 }
 0x667   : > { %v7258_v56 = vpop.f32.mrb[61].mxu0 }
 0x668   : > { %v7260_v63 = vpop.f32.mrb[62].mxu0 }
 0x669   : > { %v7264_v38 = vpop.f32.mrb[63].mxu0 }
 0x66e   : > { %v5528_v25 = vpop.f32.mrb[64].mxu0 }
 0x66f   : > { %v2124_v0 = vadd.f32 %v5528_v25, %v6801_v58  ;;  %v2115_v16 = vpop.f32.mrb[65].mxu0  ;;  %v7316_v25 = vld [vmem:[#allocation5 + $0x20] sm:$0xff] }
 0x670   : > { %v5529_v59 = vpop.f32.mrb[66].mxu0  ;;  %v2116_v15 = vadd.f32 %v2115_v16, %v6801_v58 }
 0x671   : > { %2182 = vmax.xlane.f32.xlu0 %v2124_v0  ;;  %v2118_v61 = vpop.f32.mrb[67].mxu0  ;;  %v2127_v48 = vadd.f32 %v5529_v59, %v6801_v58 }
 0x672   : > { %v2119_v32 = vadd.f32 %v2118_v61, %v6801_v58  ;;  %v7328_v61 = vpop.permute.xlu1 %2550 }
 0x674   : > { %2180 = vmax.xlane.f32.xlu1 %v2119_v32 }
 0x675   : > { %2178 = vmax.xlane.f32.xlu0 %v2116_v15 }
 0x676   : > { %v5532_v43 = vpop.f32.mrb[68].mxu0 }
 0x677   : > { %v2131_v24 = vpop.f32.mrb[69].mxu0  ;;  %v7276_v1 = vadd.f32 %v5532_v43, %v6801_v58 }
 0x678   : > { %v5533_v53 = vpop.f32.mrb[70].mxu0  ;;  %v7284_v9 = vadd.f32 %v2131_v24, %v6801_v58 }
 0x679   : > { %v7273_v23 = vadd.f32 %v5533_v53, %v6801_v58  ;;  %2184 = vmax.xlane.f32.xlu0 %v2127_v48  ;;  %v2134_v21 = vpop.f32.mrb[71].mxu0 }
 0x67a   : > { %v7280_v13 = vadd.f32 %v2134_v21, %v6801_v58 }
 0x67b   : > { %2192 = vmax.xlane.f32.xlu1 %v7273_v23 }
 0x67d   : > { %2190 = vmax.xlane.f32.xlu0 %v7276_v1 }
 0x67e   : > { %v5536_v28 = vpop.f32.mrb[72].mxu0 }
 0x67f   : > { %2188 = vmax.xlane.f32.xlu1 %v7280_v13  ;;  %v2147_v7 = vpop.f32.mrb[73].mxu0  ;;  %v7292_v20 = vadd.f32 %v5536_v28, %v6801_v58 }
 0x680   : > { %v5537_v27 = vpop.f32.mrb[74].mxu0  ;;  %v7300_v2 = vadd.f32 %v2147_v7, %v6801_v58 }
 0x681   : > { %v7288_v44 = vadd.f32 %v5537_v27, %v6801_v58  ;;  %2186 = vmax.xlane.f32.xlu0 %v7284_v9  ;;  %v2150_v11 = vpop.f32.mrb[75].mxu0 }
 0x682   : > { %v7296_v12 = vadd.f32 %v2150_v11, %v6801_v58 }
 0x683   : > { %2200 = vmax.xlane.f32.xlu1 %v7288_v44 }
 0x685   : > { %2198 = vmax.xlane.f32.xlu0 %v7292_v20 }
 0x686   : > { %v5540_v42 = vpop.f32.mrb[76].mxu0 }
 0x687   : > { %2196 = vmax.xlane.f32.xlu1 %v7296_v12  ;;  %v2163_v51 = vpop.f32.mrb[77].mxu0  ;;  %v7305_v57 = vadd.f32 %v5540_v42, %v6801_v58 }
 0x688   : > { %v5541_v60 = vpop.f32.mrb[78].mxu0  ;;  %v7309_v35 = vadd.f32 %v2163_v51, %v6801_v58 }
 0x689   : > { %2194 = vmax.xlane.f32.xlu0 %v7300_v2  ;;  %v2166_v29 = vpop.f32.mrb[79].mxu0  ;;  %v7321_v16 = vadd.f32 %v5541_v60, %v6801_v58 }
 0x68a   : > { %v7325_v59 = vadd.f32 %v2166_v29, %v6801_v58 }
 0x68d   : > { %2206 = vmax.xlane.f32.xlu0 %v7305_v57 }
 0x691   : > { %2202 = vmax.xlane.f32.xlu0 %v7309_v35 }
 0x698   : > { %2554 = vrot.lane.b32.xlu1 %v7312_v52, %s6291_s30 }
 0x6a7   : > { %2552 = vrot.lane.b32.xlu0 %v7316_v25, %s6291_s30 }
 0x6bc   : > { %2208 = vmax.xlane.f32.xlu1 %v7321_v16 }
 0x6c0   : > { %2204 = vmax.xlane.f32.xlu1 %v7325_v59 }
 0x6fe   : > { %v2183_v43 = vpop.xlane.xlu0 %2182 }
 0x6ff   : > { %v2212_v24 = vsub.f32 %v2124_v0, %v2183_v43  ;;  %v7344_v43 = vld [vmem:[#allocation5 + $0x50] sm:$0xff] }
 0x701   : > { %v2230_v53 = vmul.f32 1.442695, %v2212_v24  ;;  %v2181_v21 = vpop.xlane.xlu1 %2180 }
 0x702   : > { %v2211_v28 = vsub.f32 %v2119_v32, %v2181_v21  ;;  %v2179_v7 = vpop.xlane.xlu0 %2178 }
 0x703   : > { %5948 = vpow2.f32 %v2230_v53  ;;  %v2210_v27 = vsub.f32 %v2116_v15, %v2179_v7 }
 0x704   : > { %v2228_v11 = vmul.f32 1.442695, %v2211_v28 }
 0x705   : > { %v2226_v42 = vmul.f32 1.442695, %v2210_v27 }
 0x706   : > { %5950 = vpow2.f32 %v2228_v11  ;;  %v2185_v51 = vpop.xlane.xlu0 %2184 }
 0x707   : > { %5952 = vpow2.f32 %v2226_v42  ;;  %v2213_v60 = vsub.f32 %v2127_v48, %v2185_v51  ;;  %v7342_v48 = vld [vmem:[#allocation5 + $0x40] sm:$0xff] }
 0x708   : > { %v2193_v53 = vpop.xlane.xlu1 %2192 }
 0x709   : > { %v2232_v29 = vmul.f32 1.442695, %v2213_v60  ;;  %v2217_v5 = vsub.f32 %v7273_v23, %v2193_v53 }
 0x70a   : > { %v2191_v15 = vpop.xlane.xlu0 %2190 }
 0x70b   : > { %5954 = vpow2.f32 %v2232_v29  ;;  %v2216_v28 = vsub.f32 %v7276_v1, %v2191_v15  ;;  %v2240_v40 = vmul.f32 1.442695, %v2217_v5 }
 0x70c   : > { %v2189_v7 = vpop.xlane.xlu1 %2188 }
 0x70d   : > { %v7330_v41 = vpop.eup %5948  ;;  %v2238_v11 = vmul.f32 1.442695, %v2216_v28  ;;  %v2215_v51 = vsub.f32 %v7280_v13, %v2189_v7 }
 0x70e   : > { %2262 = vadd.xlane.f32.xlu1 %v7330_v41  ;;  %v2187_v24 = vpop.xlane.xlu0 %2186 }
 0x70f   : > { %v2214_v42 = vsub.f32 %v7284_v9, %v2187_v24  ;;  %5956 = vpow2.f32 %v2238_v11  ;;  %v2236_v39 = vmul.f32 1.442695, %v2215_v51 }
 0x710   : > { %v7333_v46 = vpop.eup %5950  ;;  %v2201_v60 = vpop.xlane.xlu1 %2200 }
 0x711   : > { %v7335_v0 = vpop.eup %5952  ;;  %2260 = vadd.xlane.f32.xlu0 %v7333_v46  ;;  %v2234_v37 = vmul.f32 1.442695, %v2214_v42  ;;  %v2221_v23 = vsub.f32 %v7288_v44, %v2201_v60 }
 0x712   : > { %2258 = vadd.xlane.f32.xlu1 %v7335_v0  ;;  %v2199_v21 = vpop.xlane.xlu0 %2198 }
 0x713   : > { %v2220_v33 = vsub.f32 %v7292_v20, %v2199_v21  ;;  %5958 = vpow2.f32 %v2234_v37 }
 0x714   : > { %v2197_v6 = vpop.xlane.xlu1 %2196  ;;  %5960 = vpow2.f32 %v2236_v39 }
 0x715   : > { %v7339_v32 = vpop.eup %5954  ;;  %v2246_v15 = vmul.f32 1.442695, %v2220_v33  ;;  %5962 = vpow2.f32 %v2240_v40  ;;  %v2248_v33 = vmul.f32 1.442695, %v2221_v23  ;;  %v2219_v37 = vsub.f32 %v7296_v12, %v2197_v6 }
 0x716   : > { %2264 = vadd.xlane.f32.xlu1 %v7339_v32  ;;  %v2195_v27 = vpop.xlane.xlu0 %2194 }
 0x717   : > { %v2218_v9 = vsub.f32 %v7300_v2, %v2195_v27  ;;  %5964 = vpow2.f32 %v2246_v15  ;;  %v2515_v15 = vld [vmem:[#allocation5 + $0x70] sm:$0xff] }
 0x718   : > { %v7361_v5 = vpop.permute.xlu1 %2554 }
 0x719   : > { %v2242_v53 = vmul.f32 1.442695, %v2218_v9  ;;  %v7359_v7 = vpop.eup %5956  ;;  %v2514_v9 = vld [vmem:[#allocation5 + $0x60] sm:$0xff] }
 0x71a   : > { %v2207_v29 = vpop.xlane.xlu0 %2206 }
 0x71b   : > { %v2224_v1 = vsub.f32 %v7305_v57, %v2207_v29  ;;  %v2244_v57 = vmul.f32 1.442695, %v2219_v37 }
 0x71d   : > { %v2254_v13 = vmul.f32 1.442695, %v2224_v1  ;;  %v7365_v40 = vpop.eup %5958 }
 0x71e   : > { %v2203_v24 = vpop.xlane.xlu0 %2202  ;;  %v7367_v2 = vpop.eup %5960 }
 0x71f   : > { %v2222_v28 = vsub.f32 %v7309_v35, %v2203_v24  ;;  %5966 = vpow2.f32 %v2254_v13  ;;  %v7372_v21 = vpop.eup %5962 }
 0x720   : > { %5968 = vpow2.f32 %v2242_v53 }
 0x721   : > { %v2250_v39 = vmul.f32 1.442695, %v2222_v28  ;;  %v7374_v6 = vpop.eup %5964 }
 0x723   : > { %5970 = vpow2.f32 %v2250_v39  ;;  %v2589_v39 = vsel %vm1035_vm1, %v7207_v4, 0 }
 0x724   : > { %5972 = vpow2.f32 %v2248_v33 }
 0x727   : > { %2556 = vrot.lane.b32.xlu0 %v7342_v48, %s6291_s30  ;;  %2558 = vrot.lane.b32.xlu1 %v7344_v43, %s6291_s30 }
 0x729   : > { %v7379_v11 = vpop.eup %5966 }
 0x72a   : > { %v7381_v42 = vpop.eup %5968 }
 0x72d   : > { %v7385_v51 = vpop.eup %5970 }
 0x72e   : > { %v7387_v60 = vpop.eup %5972 }
 0x746   : > { %2270 = vadd.xlane.f32.xlu0 %v7359_v7 }
 0x749   : > { %v2209_v20 = vpop.xlane.xlu1 %2208 }
 0x74a   : > { %v2225_v44 = vsub.f32 %v7321_v16, %v2209_v20  ;;  %2266 = vadd.xlane.f32.xlu0 %v7365_v40 }
 0x74b   : > { %2268 = vadd.xlane.f32.xlu1 %v7367_v2 }
 0x74c   : > { %v2256_v35 = vmul.f32 1.442695, %v2225_v44 }
 0x74d   : > { %v2205_v27 = vpop.xlane.xlu1 %2204 }
 0x74e   : > { %5974 = vpow2.f32 %v2256_v35  ;;  %v2223_v12 = vsub.f32 %v7325_v59, %v2205_v27  ;;  %2272 = vadd.xlane.f32.xlu0 %v7372_v21 }
 0x74f   : > { %2278 = vadd.xlane.f32.xlu1 %v7374_v6  ;;  %5976 = vpow2.f32 %v2244_v57 }
 0x750   : > { %v2252_v16 = vmul.f32 1.442695, %v2223_v12 }
 0x752   : > { %2286 = vadd.xlane.f32.xlu0 %v7379_v11  ;;  %5978 = vpow2.f32 %v2252_v16 }
 0x753   : > { %2274 = vadd.xlane.f32.xlu1 %v7381_v42 }
 0x756   : > { %2282 = vadd.xlane.f32.xlu0 %v7385_v51 }
 0x757   : > { %2280 = vadd.xlane.f32.xlu1 %v7387_v60 }
 0x758   : > { %v7391_v59 = vpop.eup %5974 }
 0x759   : > { %v7393_v29 = vpop.eup %5976 }
 0x75a   : > { %2288 = vadd.xlane.f32.xlu0 %v7391_v59 }
 0x75b   : > { %2276 = vadd.xlane.f32.xlu1 %v7393_v29 }
 0x75c   : > { %v7397_v1 = vpop.eup %5978 }
 0x75f   : > { %2284 = vadd.xlane.f32.xlu1 %v7397_v1 }
 0x770   : > { %2562 = vrot.lane.b32.xlu1 %v2515_v15, %s6291_s30  ;;  %2560 = vrot.lane.b32.xlu0 %v2514_v9, %s6291_s30 }
 0x774   : > { %2534 = vrot.lane.b32.xlu1 %v7158_v26, %s6292_s13  ;;  %2532 = vrot.lane.b32.xlu0 %v7152_v14, %s6292_s13  ;;  %v2553_v14 = vpop.permute.xlu0 %2552 }
 0x778   : > { %2538 = vrot.lane.b32.xlu1 %v7312_v52, %s6292_s13  ;;  %2536 = vrot.lane.b32.xlu0 %v7316_v25, %s6292_s13 }
 0x77c   : > { %2542 = vrot.lane.b32.xlu1 %v7344_v43, %s6292_s13  ;;  %2540 = vrot.lane.b32.xlu0 %v7342_v48, %s6292_s13 }
 0x780   : > { %2546 = vrot.lane.b32.xlu1 %v2515_v15, %s6292_s13  ;;  %2544 = vrot.lane.b32.xlu0 %v2514_v9, %s6292_s13 }
 0x784   : > { %2871 = vrot.lane.b32.xlu1 %v7140_v50, %s6292_s13  ;;  %2869 = vrot.lane.b32.xlu0 %v7119_v19, %s6292_s13 }
 0x788   : > { %2873 = vrot.lane.b32.xlu0 %v7126_v54, %s6292_s13 }
 0x78c   : > { %2875 = vrot.lane.b32.xlu0 %v7148_v55, %s6292_s13 }
 0x79b   : > { %v2263_v26 = vpop.xlane.xlu1 %2262 }
 0x79e   : > { %v2261_v52 = vpop.xlane.xlu0 %2260 }
 0x79f   : > { %5980 = vrcp.f32 %v2261_v52  ;;  %v2259_v25 = vpop.xlane.xlu1 %2258 }
 0x7a0   : > { %5982 = vrcp.f32 %v2259_v25 }
 0x7a1   : > { %5984 = vrcp.f32 %v2263_v26 }
 0x7a2   : > { %v2557_v4 = vpop.permute.xlu0 %2556 }
 0x7a3   : > { %v2265_v48 = vpop.xlane.xlu1 %2264 }
 0x7a4   : > { %5986 = vrcp.f32 %v2265_v48 }
 0x7a9   : > { %v5981_v43 = vpop.eup %5980 }
 0x7aa   : > { %v5983_v50 = vpop.eup %5982  ;;  %v2307_v24 = vmul.f32 %v5981_v43, %v7333_v46  ;;  %v2592_v46 = vsel %vm1035_vm1, %v7328_v61, 0 }
 0x7ab   : > { %v2306_v19 = vmul.f32 %v5983_v50, %v7335_v0  ;;  %v5985_v13 = vpop.eup %5984  ;;  %v2598_v0 = vsel %vm1035_vm1, %v7361_v5, 0 }
 0x7ac   : > { %v2308_v55 = vmul.f32 %v5985_v13, %v7330_v41  ;;  %v2595_v41 = vsel %vm1035_vm1, %v2553_v14, 0 }
 0x7ad   : > { %v2322_v54 = vpack.c.bf16 %v2307_v24, %v2306_v19 }
 0x7ae   : > { %v5987_v28 = vpop.eup %5986 }
 0x7af   : > { %v2309_v23 = vmul.f32 %v5987_v28, %v7339_v32  ;;  %5558 = vmatprep.mubr.bf16.mxu1 %v2322_v54  ;;  %v2601_v32 = vsel %vm1035_vm1, %v2557_v4, 0 }
 0x7b1   : > { %v2323_v53 = vpack.c.bf16 %v2309_v23, %v2308_v55 }
 0x7b3   : > { %5559 = vmatmul.mubr.bf16.vlgmr.msra.gmra.mrb[32].mxu1 %v2323_v53 }
 0x7b4   : > { %5575 = vmatpush3.bf16.xpose.msra.mxu1 %v2589_v39 }
 0x7b5   : > { %5703 = vmatprep.subr.msk.bf16.mxu1 %vm1035_vm1, %v7328_v61  ;;  %v2559_v61 = vpop.permute.xlu1 %2558 }
 0x7b6   : > { %v2604_v44 = vsel %vm1035_vm1, %v2559_v61, 0 }
 0x7bc   : > { %5577 = vmatpush3.bf16.xpose.msra.mxu1 %v2592_v46 }
 0x7bd   : > { %5704 = vmatprep.subr.msk.bf16.mxu1 %vm1035_vm1, %v2553_v14 }
 0x7c4   : > { %5579 = vmatpush3.bf16.xpose.msra.mxu1 %v2595_v41 }
 0x7c5   : > { %5705 = vmatprep.subr.msk.bf16.mxu1 %vm1035_vm1, %v7361_v5 }
 0x7cc   : > { %5581 = vmatpush3.bf16.xpose.msra.mxu1 %v2598_v0 }
 0x7cd   : > { %5706 = vmatprep.subr.msk.bf16.mxu1 %vm1035_vm1, %v2557_v4 }
 0x7d3   : > { %v2271_v33 = vpop.xlane.xlu0 %2270 }
 0x7d4   : > { %5583 = vmatpush3.bf16.xpose.msra.mxu1 %v2601_v32 }
 0x7d5   : > { %5707 = vmatprep.subr.msk.bf16.mxu1 %vm1035_vm1, %v2559_v61 }
 0x7d7   : > { %v2267_v37 = vpop.xlane.xlu0 %2266 }
 0x7d8   : > { %5988 = vrcp.f32 %v2267_v37  ;;  %v2269_v20 = vpop.xlane.xlu1 %2268 }
 0x7d9   : > { %5990 = vrcp.f32 %v2269_v20 }
 0x7da   : > { %5992 = vrcp.f32 %v2271_v33 }
 0x7db   : > { %v2273_v57 = vpop.xlane.xlu0 %2272 }
 0x7dc   : > { %5585 = vmatpush3.bf16.xpose.msra.mxu1 %v2604_v44  ;;  %5994 = vrcp.f32 %v2273_v57  ;;  %v2279_v5 = vpop.xlane.xlu1 %2278 }
 0x7df   : > { %v2287_v35 = vpop.xlane.xlu0 %2286 }
 0x7e0   : > { %v2275_v27 = vpop.xlane.xlu1 %2274 }
 0x7e2   : > { %v5989_v12 = vpop.eup %5988 }
 0x7e3   : > { %v5991_v16 = vpop.eup %5990  ;;  %v2283_v15 = vpop.xlane.xlu0 %2282  ;;  %v2310_v9 = vmul.f32 %v5989_v12, %v7365_v40 }
 0x7e4   : > { %v5993_v14 = vpop.eup %5992  ;;  %v2281_v26 = vpop.xlane.xlu1 %2280  ;;  %v2311_v52 = vmul.f32 %v5991_v16, %v7367_v2 }
 0x7e5   : > { %5996 = vrcp.f32 %v2281_v26  ;;  %v2312_v50 = vmul.f32 %v5993_v14, %v7359_v7 }
 0x7e6   : > { %v5995_v25 = vpop.eup %5994  ;;  %v2324_v48 = vpack.c.bf16 %v2311_v52, %v2310_v9  ;;  %5998 = vrcp.f32 %v2275_v27 }
 0x7e7   : > { %v2289_v43 = vpop.xlane.xlu0 %2288  ;;  %v2313_v24 = vmul.f32 %v5995_v25, %v7372_v21  ;;  %6000 = vrcp.f32 %v2279_v5 }
 0x7e8   : > { %v2277_v19 = vpop.xlane.xlu1 %2276  ;;  %5562 = vmatprep.mubr.bf16.mxu1 %v2324_v48 }
 0x7e9   : > { %6002 = vrcp.f32 %v2277_v19  ;;  %v2325_v13 = vpack.c.bf16 %v2313_v24, %v2312_v50 }
 0x7ea   : > { %6004 = vrcp.f32 %v2283_v15 }
 0x7eb   : > { %5563 = vmatmul.mubr.bf16.gmra.mrb[36].mxu1 %v2325_v13  ;;  %v2561_v40 = vpop.permute.xlu0 %2560 }
 0x7ec   : > { %v2285_v54 = vpop.xlane.xlu1 %2284  ;;  %5708 = vmatprep.subr.msk.bf16.mxu1 %vm1035_vm1, %v2561_v40  ;;  %v2607_v2 = vsel %vm1035_vm1, %v2561_v40, 0 }
 0x7ed   : > { %6006 = vrcp.f32 %v2285_v54  ;;  %5587 = vmatpush3.bf16.xpose.msra.mxu1 %v2607_v2 }
 0x7ee   : > { %6008 = vrcp.f32 %v2289_v43 }
 0x7ef   : > { %v2533_v28 = vpop.permute.xlu0 %2532  ;;  %v5997_v7 = vpop.eup %5996  ;;  %6010 = vrcp.f32 %v2287_v35 }
 0x7f0   : > { %v2563_v21 = vpop.permute.xlu1 %2562  ;;  %v5999_v55 = vpop.eup %5998  ;;  %v2317_v46 = vmul.f32 %v5997_v7, %v7387_v60 }
 0x7f1   : > { %5709 = vmatprep.subr.msk.bf16.mxu1 %vm1035_vm1, %v2563_v21  ;;  %v6001_v23 = vpop.eup %6000  ;;  %v2610_v0 = vsel %vm1035_vm1, %v2563_v21, 0  ;;  %v2314_v4 = vmul.f32 %v5999_v55, %v7381_v42 }
 0x7f2   : > { %v2316_v61 = vmul.f32 %v6001_v23, %v7374_v6 }
 0x7f3   : > { %v6003_v53 = vpop.eup %6002  ;;  %v2537_v39 = vpop.permute.xlu0 %2536 }
 0x7f4   : > { %v2535_v41 = vpop.permute.xlu1 %2534  ;;  %v2315_v32 = vmul.f32 %v6003_v53, %v7393_v29  ;;  %v6005_v33 = vpop.eup %6004  ;;  %v2327_v57 = vpack.c.bf16 %v2317_v46, %v2316_v61 }
 0x7f5   : > { %5589 = vmatpush3.bf16.xpose.msra.mxu1 %v2610_v0  ;;  %v2318_v60 = vmul.f32 %v6005_v33, %v7385_v51 }
 0x7f6   : > { %v2326_v37 = vpack.c.bf16 %v2315_v32, %v2314_v4 }
 0x7f7   : > { %v6007_v20 = vpop.eup %6006  ;;  %v2541_v44 = vpop.permute.xlu0 %2540 }
 0x7f8   : > { %v6009_v5 = vpop.eup %6008  ;;  %v2539_v35 = vpop.permute.xlu1 %2538  ;;  %5566 = vmatprep.mubr.bf16.mxu1 %v2326_v37  ;;  %v2319_v27 = vmul.f32 %v6007_v20, %v7397_v1 }
 0x7f9   : > { %5567 = vmatmul.mubr.bf16.gmra.mrb[40].mxu1 %v2327_v57  ;;  %v6011_v12 = vpop.eup %6010  ;;  %v2321_v29 = vmul.f32 %v6009_v5, %v7391_v59 }
 0x7fa   : > { %v2328_v42 = vpack.c.bf16 %v2319_v27, %v2318_v60  ;;  %v2320_v6 = vmul.f32 %v6011_v12, %v7379_v11 }
 0x7fb   : > { %v2545_v16 = vpop.permute.xlu0 %2544 }
 0x7fc   : > { %v2543_v15 = vpop.permute.xlu1 %2542  ;;  %5570 = vmatprep.mubr.bf16.mxu1 %v2328_v42  ;;  %v2329_v14 = vpack.c.bf16 %v2321_v29, %v2320_v6 }
 0x7ff   : > { %v2870_v9 = vpop.permute.xlu0 %2869 }
 0x800   : > { %v2547_v26 = vpop.permute.xlu1 %2546  ;;  %5606 = vmatprep.subr.bf16.mxu0 %v2870_v9 }
 0x801   : > { %5571 = vmatmul.mubr.bf16.gmra.mrb[44].mxu1 %v2329_v14  ;;  %5607 = vmatpush3.bf16.msra.mxu0 %v2870_v9 }
 0x802   : > { %5590 = vmatprep.mubr.msk.bf16.mxu1 %vm1035_vm1, %v2533_v28 }
 0x803   : > { %v2874_v51 = vpop.permute.xlu0 %2873 }
 0x804   : > { %v2872_v1 = vpop.permute.xlu1 %2871 }
 0x805   : > { %5608 = vmatprep.subr.bf16.mxu0 %v2872_v1 }
 0x806   : > { %5609 = vmatpush3.bf16.msra.mxu0 %v2872_v1 }
 0x807   : > { %5610 = vmatprep.subr.bf16.mxu0 %v2874_v51  ;;  %v2876_v59 = vpop.permute.xlu0 %2875 }
 0x809   : > { %5591 = vmatmul.mubr.msk.bf16.vlgmr.msra.gmra.mrb[48].mxu1 %vm1035_vm1, %v2535_v41 }
 0x80a   : > { %5594 = vmatprep.mubr.msk.bf16.mxu1 %vm1035_vm1, %v2537_v39  ;;  %5611 = vmatpush3.bf16.msra.mxu0 %v2874_v51 }
 0x80b   : > { %5612 = vmatprep.subr.bf16.mxu0 %v2876_v59 }
 0x80e   : > { %5613 = vmatpush3.bf16.msra.mxu0 %v2876_v59 }
 0x811   : > { %5595 = vmatmul.mubr.msk.bf16.gmra.mrb[52].mxu1 %vm1035_vm1, %v2539_v35 }
 0x812   : > { %5598 = vmatprep.mubr.msk.bf16.mxu1 %vm1035_vm1, %v2541_v44 }
 0x819   : > { %5599 = vmatmul.mubr.msk.bf16.gmra.mrb[56].mxu1 %vm1035_vm1, %v2543_v15 }
 0x81a   : > { %5602 = vmatprep.mubr.msk.bf16.mxu1 %vm1035_vm1, %v2545_v16 }
 0x821   : > { %5603 = vmatmul.mubr.msk.bf16.gmra.mrb[60].mxu1 %vm1035_vm1, %v2547_v26 }
 0x822   : > { %3666 = vmatprep.mubr.bf16.mxu1 %v9152_v62 }
 0x886   : > { %v7469_v11 = vpop.f32.mrb[32].mxu1 }
 0x887   : > { %v7471_v52 = vpop.f32.mrb[33].mxu1 }
 0x888   : > { %v7473_v25 = vpop.f32.mrb[34].mxu1 }
 0x889   : > { %v7477_v43 = vpop.f32.mrb[35].mxu1 }
 0x8be   : > { %v7481_v24 = vpop.f32.mrb[36].mxu1 }
 0x8bf   : > { %v7483_v19 = vpop.f32.mrb[37].mxu1 }
 0x8c0   : > { %v7485_v13 = vpop.f32.mrb[38].mxu1 }
 0x8c1   : > { %v7489_v54 = vpop.f32.mrb[39].mxu1 }
 0x8cc   : > { %v7493_v28 = vpop.f32.mrb[40].mxu1 }
 0x8cd   : > { %v7495_v7 = vpop.f32.mrb[41].mxu1 }
 0x8ce   : > { %v7497_v21 = vpop.f32.mrb[42].mxu1 }
 0x8cf   : > { %v7501_v23 = vpop.f32.mrb[43].mxu1 }
 0x8d4   : > { %v7505_v39 = vpop.f32.mrb[44].mxu1 }
 0x8d5   : > { %v7507_v46 = vpop.f32.mrb[45].mxu1 }
 0x8d6   : > { %9160 = vst [vmem:[#allocation7_spill] sm:$0xff] %v7507_v46  ;;  %v7509_v41 = vpop.f32.mrb[46].mxu1 }
 0x8d7   : > { %v7513_v4 = vpop.f32.mrb[47].mxu1 }
 0x8d8   : > { %9161 = vst [vmem:[#allocation8_spill] sm:$0xff] %v7513_v4 }
 0x8dc   : > { %v5592_v33 = vpop.f32.mrb[48].mxu1 }
 0x8dd   : > { %v2655_v61 = vadd.f32 %v5592_v33, %v6801_v58  ;;  %v2646_v37 = vpop.f32.mrb[49].mxu1 }
 0x8de   : > { %v5593_v20 = vpop.f32.mrb[50].mxu1  ;;  %v2647_v5 = vadd.f32 %v2646_v37, %v6801_v58 }
 0x8df   : > { %2713 = vmax.xlane.f32.xlu0 %v2655_v61  ;;  %v2649_v44 = vpop.f32.mrb[51].mxu1  ;;  %v2658_v60 = vadd.f32 %v5593_v20, %v6801_v58 }
 0x8e0   : > { %v2650_v57 = vadd.f32 %v2649_v44, %v6801_v58 }
 0x8e2   : > { %2711 = vmax.xlane.f32.xlu1 %v2650_v57 }
 0x8e3   : > { %2709 = vmax.xlane.f32.xlu0 %v2647_v5 }
 0x8e4   : > { %v5596_v35 = vpop.f32.mrb[52].mxu1 }
 0x8e5   : > { %v2662_v27 = vpop.f32.mrb[53].mxu1  ;;  %v2671_v29 = vadd.f32 %v5596_v35, %v6801_v58 }
 0x8e6   : > { %v5597_v12 = vpop.f32.mrb[54].mxu1  ;;  %v2663_v9 = vadd.f32 %v2662_v27, %v6801_v58 }
 0x8e7   : > { %v2674_v42 = vadd.f32 %v5597_v12, %v6801_v58  ;;  %2715 = vmax.xlane.f32.xlu0 %v2658_v60  ;;  %v2665_v16 = vpop.f32.mrb[55].mxu1 }
 0x8e8   : > { %v7524_v15 = vadd.f32 %v2665_v16, %v6801_v58 }
 0x8e9   : > { %2723 = vmax.xlane.f32.xlu1 %v2674_v42 }
 0x8eb   : > { %2721 = vmax.xlane.f32.xlu0 %v2671_v29 }
 0x8ec   : > { %v5600_v6 = vpop.f32.mrb[56].mxu1 }
 0x8ed   : > { %2719 = vmax.xlane.f32.xlu1 %v7524_v15  ;;  %v2678_v14 = vpop.f32.mrb[57].mxu1  ;;  %v7532_v59 = vadd.f32 %v5600_v6, %v6801_v58  ;;  %v2521_v6 = vld [vmem:[#allocation5 + $0x58] sm:$0xff] }
 0x8ee   : > { %v5601_v26 = vpop.f32.mrb[58].mxu1  ;;  %v7540_v20 = vadd.f32 %v2678_v14, %v6801_v58  ;;  %v2520_v14 = vld [vmem:[#allocation5 + $0x48] sm:$0xff] }
 0x8ef   : > { %v7529_v51 = vadd.f32 %v5601_v26, %v6801_v58  ;;  %2717 = vmax.xlane.f32.xlu0 %v2663_v9  ;;  %v2681_v1 = vpop.f32.mrb[59].mxu1 }
 0x8f0   : > { %v7536_v33 = vadd.f32 %v2681_v1, %v6801_v58 }
 0x8f1   : > { %2731 = vmax.xlane.f32.xlu1 %v7529_v51 }
 0x8f3   : > { %2729 = vmax.xlane.f32.xlu0 %v7532_v59 }
 0x8f4   : > { %v5604_v37 = vpop.f32.mrb[60].mxu1 }
 0x8f5   : > { %2727 = vmax.xlane.f32.xlu1 %v7536_v33  ;;  %v2694_v44 = vpop.f32.mrb[61].mxu1  ;;  %v7545_v12 = vadd.f32 %v5604_v37, %v6801_v58 }
 0x8f6   : > { %v5605_v35 = vpop.f32.mrb[62].mxu1  ;;  %v7549_v16 = vadd.f32 %v2694_v44, %v6801_v58 }
 0x8f7   : > { %2725 = vmax.xlane.f32.xlu0 %v7540_v20  ;;  %v2697_v27 = vpop.f32.mrb[63].mxu1  ;;  %v7555_v26 = vadd.f32 %v5605_v35, %v6801_v58 }
 0x8f8   : > { %v7559_v1 = vadd.f32 %v2697_v27, %v6801_v58 }
 0x8fb   : > { %2737 = vmax.xlane.f32.xlu0 %v7545_v12 }
 0x8ff   : > { %2733 = vmax.xlane.f32.xlu0 %v7549_v16 }
 0x906   : > { %2879 = vrot.lane.b32.xlu1 %v2521_v6, %s6292_s13 }
 0x915   : > { %2877 = vrot.lane.b32.xlu0 %v2520_v14, %s6292_s13 }
 0x92a   : > { %2739 = vmax.xlane.f32.xlu1 %v7555_v26 }
 0x92e   : > { %2735 = vmax.xlane.f32.xlu1 %v7559_v1 }
 0x96c   : > { %v2714_v37 = vpop.xlane.xlu0 %2713 }
 0x96d   : > { %v2743_v44 = vsub.f32 %v2655_v61, %v2714_v37 }
 0x96f   : > { %v2761_v62 = vmul.f32 1.442695, %v2743_v44  ;;  %v2712_v0 = vpop.xlane.xlu1 %2711 }
 0x970   : > { %v2710_v32 = vpop.xlane.xlu0 %2709  ;;  %v2742_v55 = vsub.f32 %v2650_v57, %v2712_v0 }
 0x971   : > { %6012 = vpow2.f32 %v2761_v62  ;;  %v2741_v6 = vsub.f32 %v2647_v5, %v2710_v32 }
 0x972   : > { %v2759_v48 = vmul.f32 1.442695, %v2742_v55 }
 0x973   : > { %v2757_v53 = vmul.f32 1.442695, %v2741_v6 }
 0x974   : > { %v2716_v14 = vpop.xlane.xlu0 %2715 }
 0x975   : > { %6014 = vpow2.f32 %v2757_v53  ;;  %v2744_v35 = vsub.f32 %v2658_v60, %v2716_v14 }
 0x976   : > { %v2724_v2 = vpop.xlane.xlu1 %2723 }
 0x977   : > { %v2763_v40 = vmul.f32 1.442695, %v2744_v35  ;;  %v2748_v50 = vsub.f32 %v2674_v42, %v2724_v2  ;;  %v2523_v35 = vld [vmem:[#allocation5 + $0x78] sm:$0xff] }
 0x978   : > { %v2722_v58 = vpop.xlane.xlu0 %2721 }
 0x979   : > { %6016 = vpow2.f32 %v2763_v40  ;;  %v2747_v27 = vsub.f32 %v2671_v29, %v2722_v58  ;;  %v2771_v62 = vmul.f32 1.442695, %v2748_v50  ;;  %v2522_v58 = vld [vmem:[#allocation5 + $0x68] sm:$0xff] }
 0x97a   : > { %v2720_v46 = vpop.xlane.xlu1 %2719  ;;  %6018 = vpow2.f32 %v2759_v48 }
 0x97b   : > { %v7562_v4 = vpop.eup %6012  ;;  %v2769_v61 = vmul.f32 1.442695, %v2747_v27  ;;  %v2746_v53 = vsub.f32 %v7524_v15, %v2720_v46 }
 0x97c   : > { %2793 = vadd.xlane.f32.xlu1 %v7562_v4  ;;  %v2718_v32 = vpop.xlane.xlu0 %2717 }
 0x97d   : > { %6020 = vpow2.f32 %v2769_v61  ;;  %v2745_v0 = vsub.f32 %v2663_v9, %v2718_v32  ;;  %v2767_v2 = vmul.f32 1.442695, %v2746_v53 }
 0x97e   : > { %6022 = vpow2.f32 %v2771_v62  ;;  %v2732_v60 = vpop.xlane.xlu1 %2731 }
 0x97f   : > { %v7566_v57 = vpop.eup %6014  ;;  %v2765_v55 = vmul.f32 1.442695, %v2745_v0  ;;  %v2752_v61 = vsub.f32 %v7529_v51, %v2732_v60 }
 0x980   : > { %2789 = vadd.xlane.f32.xlu1 %v7566_v57  ;;  %v2730_v40 = vpop.xlane.xlu0 %2729 }
 0x981   : > { %6024 = vpow2.f32 %v2765_v55  ;;  %v2779_v53 = vmul.f32 1.442695, %v2752_v61  ;;  %v2751_v0 = vsub.f32 %v7532_v59, %v2730_v40  ;;  %v9163_v61 = vpack.c.bf16 %v7477_v43, %v7471_v52 }
 0x982   : > { %6026 = vpow2.f32 %v2767_v2  ;;  %v2728_v9 = vpop.xlane.xlu1 %2727 }
 0x983   : > { %v7569_v5 = vpop.eup %6016  ;;  %v2750_v62 = vsub.f32 %v7536_v33, %v2728_v9 }
 0x984   : > { %2795 = vadd.xlane.f32.xlu1 %v7569_v5  ;;  %v2726_v48 = vpop.xlane.xlu0 %2725  ;;  %v7572_v50 = vpop.eup %6018 }
 0x985   : > { %v2749_v27 = vsub.f32 %v7540_v20, %v2726_v48  ;;  %v2775_v55 = vmul.f32 1.442695, %v2750_v62  ;;  %v9164_v62 = vpack.c.bf16 %v7228_v10, %v7222_v45 }
 0x986   : > { %v2880_v14 = vpop.permute.xlu1 %2879 }
 0x987   : > { %v7574_v46 = vpop.eup %6020  ;;  %v2773_v32 = vmul.f32 1.442695, %v2749_v27  ;;  %v9162_v27 = vpack.c.bf16 %v7224_v47, %v7220_v49 }
 0x988   : > { %2791 = vadd.xlane.f32.xlu1 %v7572_v50  ;;  %2801 = vadd.xlane.f32.xlu0 %v7574_v46  ;;  %v2738_v42 = vpop.xlane.xlu0 %2737  ;;  %v7578_v29 = vpop.eup %6022 }
 0x989   : > { %6028 = vpow2.f32 %v2773_v32  ;;  %v2755_v51 = vsub.f32 %v7545_v12, %v2738_v42  ;;  %v9165_v32 = vpack.c.bf16 %v7473_v25, %v7469_v11 }
 0x98a   : > { %6030 = vpow2.f32 %v2779_v53 }
 0x98b   : > { %v7580_v15 = vpop.eup %6024  ;;  %6032 = vpow2.f32 %v2775_v55  ;;  %v2785_v40 = vmul.f32 1.442695, %v2755_v51 }
 0x98c   : > { %2803 = vadd.xlane.f32.xlu0 %v7578_v29  ;;  %2797 = vadd.xlane.f32.xlu1 %v7580_v15  ;;  %v2734_v37 = vpop.xlane.xlu0 %2733  ;;  %v7584_v44 = vpop.eup %6026 }
 0x990   : > { %2799 = vadd.xlane.f32.xlu0 %v7584_v44  ;;  %v2878_v6 = vpop.permute.xlu0 %2877 }
 0x991   : > { %5614 = vmatprep.subr.bf16.mxu0 %v2878_v6 }
 0x992   : > { %5615 = vmatpush3.bf16.msra.mxu0 %v2878_v6  ;;  %v2777_v6 = vmul.f32 1.442695, %v2751_v0 }
 0x993   : > { %5616 = vmatprep.subr.bf16.mxu0 %v2880_v14  ;;  %v7597_v60 = vpop.eup %6028 }
 0x994   : > { %6034 = vpow2.f32 %v2777_v6  ;;  %v7600_v9 = vpop.eup %6030 }
 0x996   : > { %5617 = vmatpush3.bf16.msra.mxu0 %v2880_v14  ;;  %v2753_v14 = vsub.f32 %v7549_v16, %v2734_v37  ;;  %v7602_v16 = vpop.eup %6032 }
 0x998   : > { %v2781_v33 = vmul.f32 1.442695, %v2753_v14 }
 0x99d   : > { %2883 = vrot.lane.b32.xlu1 %v2523_v35, %s6292_s13 }
 0x99e   : > { %v7606_v12 = vpop.eup %6034 }
 0x9a6   : > { %2881 = vrot.lane.b32.xlu0 %v2522_v58, %s6292_s13 }
 0x9b7   : > { %v2740_v2 = vpop.xlane.xlu1 %2739 }
 0x9b8   : > { %v2756_v58 = vsub.f32 %v7555_v26, %v2740_v2 }
 0x9ba   : > { %v2787_v59 = vmul.f32 1.442695, %v2756_v58 }
 0x9bb   : > { %v2736_v35 = vpop.xlane.xlu1 %2735 }
 0x9bc   : > { %v2754_v20 = vsub.f32 %v7559_v1, %v2736_v35 }
 0x9be   : > { %v2783_v48 = vmul.f32 1.442695, %v2754_v20 }
 0x9c0   : > { %6036 = vpow2.f32 %v2783_v48 }
 0x9c1   : > { %2805 = vadd.xlane.f32.xlu1 %v7597_v60  ;;  %6038 = vpow2.f32 %v2781_v33 }
 0x9c2   : > { %6040 = vpow2.f32 %v2787_v59 }
 0x9c3   : > { %6042 = vpow2.f32 %v2785_v40 }
 0x9c5   : > { %2807 = vadd.xlane.f32.xlu0 %v7602_v16  ;;  %2811 = vadd.xlane.f32.xlu1 %v7600_v9 }
 0x9c9   : > { %2809 = vadd.xlane.f32.xlu0 %v7606_v12 }
 0x9ca   : > { %v7609_v26 = vpop.eup %6036 }
 0x9cb   : > { %2815 = vadd.xlane.f32.xlu1 %v7609_v26  ;;  %v7612_v1 = vpop.eup %6038 }
 0x9cc   : > { %v7615_v42 = vpop.eup %6040 }
 0x9cd   : > { %2813 = vadd.xlane.f32.xlu0 %v7612_v1  ;;  %v7618_v37 = vpop.eup %6042 }
 0x9cf   : > { %2819 = vadd.xlane.f32.xlu1 %v7615_v42 }
 0x9d1   : > { %2817 = vadd.xlane.f32.xlu0 %v7618_v37 }
 0x9e0   : > { %1946 = vrot.lane.b32.xlu1 %v9162_v27, %s6291_s30 }
 0x9e4   : > { %2475 = vrot.lane.b32.xlu1 %v9163_v61, %s6288_s27 }
 0x9e7   : > { %1944 = vrot.lane.b32.xlu0 %v9164_v62, %s6291_s30 }
 0x9e8   : > { %2477 = vrot.lane.b32.xlu1 %v9165_v32, %s6288_s27 }
 0xa09   : > { %v2794_v53 = vpop.xlane.xlu1 %2793 }
 0xa0d   : > { %v2790_v0 = vpop.xlane.xlu1 %2789 }
 0xa0e   : > { %6044 = vrcp.f32 %v2790_v0 }
 0xa11   : > { %v2796_v55 = vpop.xlane.xlu1 %2795 }
 0xa15   : > { %v2792_v49 = vpop.xlane.xlu1 %2791  ;;  %v2802_v47 = vpop.xlane.xlu0 %2801 }
 0xa16   : > { %6046 = vrcp.f32 %v2792_v49 }
 0xa17   : > { %6048 = vrcp.f32 %v2796_v55 }
 0xa18   : > { %6050 = vrcp.f32 %v2794_v53  ;;  %v6045_v45 = vpop.eup %6044 }
 0xa19   : > { %v2798_v52 = vpop.xlane.xlu1 %2797  ;;  %v2804_v43 = vpop.xlane.xlu0 %2803  ;;  %v2837_v25 = vmul.f32 %v6045_v45, %v7566_v57 }
 0xa1a   : > { %6052 = vrcp.f32 %v2798_v52 }
 0xa1d   : > { %v2800_v2 = vpop.xlane.xlu0 %2799  ;;  %v2884_v58 = vpop.permute.xlu1 %2883 }
 0xa1e   : > { %6054 = vrcp.f32 %v2800_v2 }
 0xa1f   : > { %6056 = vrcp.f32 %v2804_v43 }
 0xa20   : > { %v6047_v10 = vpop.eup %6046  ;;  %6058 = vrcp.f32 %v2802_v47 }
 0xa21   : > { %v6049_v6 = vpop.eup %6048  ;;  %v2882_v11 = vpop.permute.xlu0 %2881  ;;  %v2838_v14 = vmul.f32 %v6047_v10, %v7572_v50 }
 0xa22   : > { %5618 = vmatprep.subr.bf16.mxu0 %v2882_v11  ;;  %v6051_v35 = vpop.eup %6050  ;;  %v2840_v51 = vmul.f32 %v6049_v6, %v7569_v5 }
 0xa23   : > { %5619 = vmatpush3.bf16.msra.mxu0 %v2882_v11  ;;  %v2853_v20 = vpack.c.bf16 %v2838_v14, %v2837_v25  ;;  %v2839_v48 = vmul.f32 %v6051_v35, %v7562_v4 }
 0xa24   : > { %5620 = vmatprep.subr.bf16.mxu0 %v2884_v58  ;;  %v6053_v33 = vpop.eup %6052 }
 0xa25   : > { %5622 = vmatprep.mubr.bf16.mxu0 %v2853_v20  ;;  %v2854_v40 = vpack.c.bf16 %v2840_v51, %v2839_v48  ;;  %v2841_v57 = vmul.f32 %v6053_v33, %v7580_v15 }
 0xa27   : > { %5621 = vmatpush3.bf16.msra.mxu0 %v2884_v58 }
 0xa28   : > { %v6055_v59 = vpop.eup %6054 }
 0xa29   : > { %v6057_v27 = vpop.eup %6056  ;;  %v2842_v50 = vmul.f32 %v6055_v59, %v7584_v44 }
 0xa2a   : > { %5623 = vmatmul.mubr.bf16.vlgmr.msra.gmra.mrb[80].mxu0 %v2854_v40  ;;  %v6059_v61 = vpop.eup %6058  ;;  %v2844_v32 = vmul.f32 %v6057_v27, %v7578_v29 }
 0xa2b   : > { %v2855_v62 = vpack.c.bf16 %v2842_v50, %v2841_v57  ;;  %v2843_v5 = vmul.f32 %v6059_v61, %v7574_v46  ;;  %v5756_v50 = vld [vmem:[%s9142_s4] sm:$0xff]  }
 0xa2c   : > { %5638 = vmatprep.subr.bf16.mxu0 %v5756_v50 }
 0xa2d   : > { %5626 = vmatprep.mubr.bf16.mxu0 %v2855_v62  ;;  %v2856_v53 = vpack.c.bf16 %v2844_v32, %v2843_v5  ;;  %5639 = vmatpush3.bf16.msra.mxu0 %v5756_v50 }
 0xa32   : > { %5627 = vmatmul.mubr.bf16.gmra.mrb[84].mxu0 %v2856_v53 }
 0xa4e   : > { %v2806_v0 = vpop.xlane.xlu1 %2805 }
 0xa4f   : > { %6060 = vrcp.f32 %v2806_v0 }
 0xa52   : > { %v2812_v4 = vpop.xlane.xlu1 %2811  ;;  %v2808_v55 = vpop.xlane.xlu0 %2807 }
 0xa53   : > { %6062 = vrcp.f32 %v2808_v55 }
 0xa54   : > { %6064 = vrcp.f32 %v2812_v4  ;;  %v9166_v4 = vpack.c.bf16 %v7236_v3, %v7232_v22  ;;  %v9169_v22 = vpack.c.bf16 %v7489_v54, %v7483_v19  ;;  %v9171_v3 = vpack.c.bf16 %v7252_v31, %v7246_v30 }
 0xa55   : > { %v9174_v31 = vpack.c.bf16 %v7260_v63, %v7256_v34 }
 0xa56   : > { %v2810_v49 = vpop.xlane.xlu0 %2809 }
 0xa57   : > { %6066 = vrcp.f32 %v2810_v49  ;;  %v9167_v49 = vpack.c.bf16 %v7240_v8, %v7234_v17  ;;  %v9170_v17 = vpack.c.bf16 %v7248_v36, %v7244_v18  ;;  %v9172_v8 = vpack.c.bf16 %v7497_v21, %v7493_v28 }
 0xa58   : > { %v2816_v15 = vpop.xlane.xlu1 %2815 }
 0xa59   : > { %6068 = vrcp.f32 %v2816_v15  ;;  %v6061_v47 = vpop.eup %6060 }
 0xa5a   : > { %v2814_v44 = vpop.xlane.xlu0 %2813  ;;  %v2845_v2 = vmul.f32 %v6061_v47, %v7597_v60 }
 0xa5b   : > { %6070 = vrcp.f32 %v2814_v44 }
 0xa5c   : > { %v2820_v52 = vpop.xlane.xlu1 %2819 }
 0xa5d   : > { %6072 = vrcp.f32 %v2820_v52  ;;  %v6063_v29 = vpop.eup %6062 }
 0xa5e   : > { %v2818_v43 = vpop.xlane.xlu0 %2817  ;;  %v6065_v46 = vpop.eup %6064  ;;  %v2846_v45 = vmul.f32 %v6063_v29, %v7602_v16  ;;  %v9168_v29 = vpack.c.bf16 %v7485_v13, %v7481_v24  ;;  %v9173_v24 = vpack.c.bf16 %v7501_v23, %v7495_v7  ;;  %v9175_v7 = vpack.c.bf16 %v7264_v38, %v7258_v56 }
 0xa5f   : > { %6074 = vrcp.f32 %v2818_v43  ;;  %v2848_v35 = vmul.f32 %v6065_v46, %v7600_v9 }
 0xa60   : > { %v1947_v10 = vpop.permute.xlu1 %1946  ;;  %v2857_v11 = vpack.c.bf16 %v2846_v45, %v2845_v2  ;;  %v9176_v45 = vpack.c.bf16 %v7509_v41, %v7505_v39 }
 0xa61   : > { %v6067_v6 = vpop.eup %6066  ;;  %1970 = vst.msk [vmem:[#allocation6 + $0x8] sm:$0xff] %vm1968_vm3, %v1947_v10  ;;  %v9177_v10 = vld [vmem:[#allocation8_spill] sm:$0xff] }
 0xa62   : > { %v1945_v25 = vpop.permute.xlu0 %1944  ;;  %v2847_v14 = vmul.f32 %v6067_v6, %v7606_v12  ;;  %5630 = vmatprep.mubr.bf16.mxu0 %v2857_v11  ;;  %v9178_v6 = vld [vmem:[#allocation7_spill] sm:$0xff] }
 0xa63   : > { %v6069_v58 = vpop.eup %6068  ;;  %1969 = vst.msk [vmem:[#allocation6] sm:$0xff] %vm1968_vm3, %v1945_v25  ;;  %v9179_v34 = vpack.c.bf16 %v9177_v10, %v9178_v6  ;;  %v6251_v10 = vld [vmem:[%s6385_s28 + $0x28] sm:$0xff] }
 0xa64   : > { %v2476_v20 = vpop.permute.xlu1 %2475  ;;  %v2858_v51 = vpack.c.bf16 %v2848_v35, %v2847_v14  ;;  %v2850_v33 = vmul.f32 %v6069_v58, %v7609_v26  ;;  %v5757_v26 = vld [vmem:[%s9142_s4 + $0x8] sm:$0xff]  }
 0xa65   : > { %v6071_v60 = vpop.eup %6070  ;;  %2500 = vst.msk [vmem:[#allocation6] sm:$0xff] %vm2499_vm4, %v2476_v20  ;;  %5640 = vmatprep.subr.bf16.mxu0 %v5757_v26 }
 0xa66   : > { %5631 = vmatmul.mubr.bf16.gmra.mrb[88].mxu0 %v2858_v51  ;;  %v2849_v16 = vmul.f32 %v6071_v60, %v7612_v1  ;;  %v5758_v1 = vld [vmem:[%s9142_s4 + $0x10] sm:$0xff]  }
 0xa67   : > { %v6073_v48 = vpop.eup %6072  ;;  %5641 = vmatpush3.bf16.msra.mxu0 %v5757_v26 }
 0xa68   : > { %v2478_v59 = vpop.permute.xlu1 %2477  ;;  %v2859_v40 = vpack.c.bf16 %v2850_v33, %v2849_v16  ;;  %v2852_v27 = vmul.f32 %v6073_v48, %v7615_v42  ;;  %5642 = vmatprep.subr.bf16.mxu0 %v5758_v1  ;;  %v5759_v42 = vld [vmem:[%s9142_s4 + $0x18] sm:$0xff]  }
 0xa69   : > { %v6075_v12 = vpop.eup %6074  ;;  %2501 = vst.msk [vmem:[#allocation6 + $0x8] sm:$0xff] %vm2499_vm4, %v2478_v59 }
 0xa6a   : > { %5634 = vmatprep.mubr.bf16.mxu0 %v2859_v40  ;;  %v2851_v9 = vmul.f32 %v6075_v12, %v7618_v37 }
 0xa6b   : > { %5643 = vmatpush3.bf16.msra.mxu0 %v5758_v1 }
 0xa6c   : > { %v2860_v57 = vpack.c.bf16 %v2852_v27, %v2851_v9  ;;  %5644 = vmatprep.subr.bf16.mxu0 %v5759_v42 }
 0xa6e   : > { %5635 = vmatmul.mubr.bf16.gmra.mrb[92].mxu0 %v2860_v57 }
 0xa6f   : > { %5645 = vmatpush3.bf16.msra.mxu0 %v5759_v42 }
 0xafd   : > { %v5624_v37 = vpop.f32.mrb[80].mxu0 }
 0xafe   : > { %v2927_v61 = vpop.f32.mrb[81].mxu0 }
 0xaff   : > { %v5625_v62 = vpop.f32.mrb[82].mxu0 }
 0xb00   : > { %v2991_v32 = vpack.c.bf16 %v5625_v62, %v5624_v37  ;;  %v2930_v5 = vpop.f32.mrb[83].mxu0 }
 0xb01   : > { %v2990_v53 = vpack.c.bf16 %v2930_v5, %v2927_v61  ;;  %v6244_v5 = vld [vmem:[%s6385_s28 + $0x10] sm:$0xff] }
 0xb02   : > { %3008 = vrot.lane.b32.xlu1 %v2991_v32, %s6286_s20  ;;  %v7756_v32 = vld [vmem:[%s9143_s5] ss:$0 sm:$0xff] }
 0xb03   : > { %3006 = vrot.lane.b32.xlu0 %v2990_v53, %s6286_s20 }
 0xb05   : > { %v5628_v0 = vpop.f32.mrb[84].mxu0 }
 0xb06   : > { %1950 = vrot.lane.b32.xlu1 %v9166_v4, %s6291_s30  ;;  %v2943_v55 = vpop.f32.mrb[85].mxu0  ;;  %v6245_v4 = vld [vmem:[%s6385_s28] sm:$0xff] }
 0xb07   : > { %1948 = vrot.lane.b32.xlu0 %v9167_v49, %s6291_s30  ;;  %v5629_v15 = vpop.f32.mrb[86].mxu0 }
 0xb08   : > { %v2993_v44 = vpack.c.bf16 %v5629_v15, %v5628_v0  ;;  %v2946_v47 = vpop.f32.mrb[87].mxu0 }
 0xb09   : > { %v2992_v52 = vpack.c.bf16 %v2946_v47, %v2943_v55 }
 0xb0a   : > { %2481 = vrot.lane.b32.xlu1 %v9168_v29, %s6288_s27 }
 0xb0b   : > { %2479 = vrot.lane.b32.xlu0 %v9169_v22, %s6288_s27  ;;  %v6247_v22 = vld [vmem:[%s6385_s28 + $0x8] sm:$0xff] }
 0xb0e   : > { %3012 = vrot.lane.b32.xlu1 %v2993_v44, %s6286_s20  ;;  %v6246_v44 = vld [vmem:[%s6385_s28 + $0x18] sm:$0xff] }
 0xb0f   : > { %3010 = vrot.lane.b32.xlu0 %v2992_v52, %s6286_s20 }
 0xb12   : > { %1954 = vrot.lane.b32.xlu1 %v9170_v17, %s6291_s30 }
 0xb13   : > { %1952 = vrot.lane.b32.xlu0 %v9171_v3, %s6291_s30 }
 0xb16   : > { %2485 = vrot.lane.b32.xlu1 %v9172_v8, %s6288_s27 }
 0xb17   : > { %2483 = vrot.lane.b32.xlu0 %v9173_v24, %s6288_s27 }
 0xb39   : > { %v5632_v19 = vpop.f32.mrb[88].mxu0 }
 0xb3a   : > { %v2959_v13 = vpop.f32.mrb[89].mxu0 }
 0xb3b   : > { %v5633_v54 = vpop.f32.mrb[90].mxu0 }
 0xb3c   : > { %v2995_v18 = vpack.c.bf16 %v5633_v54, %v5632_v19  ;;  %v2962_v36 = vpop.f32.mrb[91].mxu0 }
 0xb3d   : > { %v2994_v43 = vpack.c.bf16 %v2962_v36, %v2959_v13 }
 0xb3e   : > { %3016 = vrot.lane.b32.xlu1 %v2995_v18, %s6286_s20  ;;  %v6248_v18 = vld [vmem:[%s6385_s28 + $0x30] sm:$0xff] }
 0xb3f   : > { %3014 = vrot.lane.b32.xlu0 %v2994_v43, %s6286_s20 }
 0xb41   : > { %v5636_v30 = vpop.f32.mrb[92].mxu0 }
 0xb42   : > { %1958 = vrot.lane.b32.xlu1 %v9174_v31, %s6291_s30  ;;  %v2975_v28 = vpop.f32.mrb[93].mxu0 }
 0xb43   : > { %1956 = vrot.lane.b32.xlu0 %v9175_v7, %s6291_s30  ;;  %v5637_v21 = vpop.f32.mrb[94].mxu0 }
 0xb44   : > { %v2997_v23 = vpack.c.bf16 %v5637_v21, %v5636_v30  ;;  %v2978_v46 = vpop.f32.mrb[95].mxu0  ;;  %v6249_v30 = vld [vmem:[%s6385_s28 + $0x20] sm:$0xff] }
 0xb45   : > { %v2996_v2 = vpack.c.bf16 %v2978_v46, %v2975_v28 }
 0xb46   : > { %2489 = vrot.lane.b32.xlu1 %v9176_v45, %s6288_s27 }
 0xb47   : > { %2487 = vrot.lane.b32.xlu0 %v9179_v34, %s6288_s27 }
 0xb4a   : > { %3020 = vrot.lane.b32.xlu1 %v2997_v23, %s6286_s20  ;;  %v6250_v23 = vld [vmem:[%s6385_s28 + $0x38] sm:$0xff] }
 0xb4b   : > { %3018 = vrot.lane.b32.xlu0 %v2996_v2, %s6286_s20 }
 0xb74   : > { %v3009_v56 = vpop.permute.xlu1 %3008 }
 0xb75   : > { %3032 = vst.msk [vmem:[#allocation6 + $0x8] sm:$0xff] %vm3030_vm5, %v3009_v56  ;;  %v3007_v63 = vpop.permute.xlu0 %3006 }
 0xb76   : > { %3031 = vst.msk [vmem:[#allocation6] sm:$0xff] %vm3030_vm5, %v3007_v63 }
 0xb78   : > { %v1951_v38 = vpop.permute.xlu1 %1950 }
 0xb79   : > { %1972 = vst.msk [vmem:[#allocation6 + $0x18] sm:$0xff] %vm1968_vm3, %v1951_v38  ;;  %v1949_v39 = vpop.permute.xlu0 %1948 }
 0xb7a   : > { %1971 = vst.msk [vmem:[#allocation6 + $0x10] sm:$0xff] %vm1968_vm3, %v1949_v39 }
 0xb7c   : > { %v2482_v41 = vpop.permute.xlu1 %2481  ;;  %v3040_v14 = vld [vmem:[#allocation6 + $0x8] sm:$0xff] }
 0xb7d   : > { %2503 = vst.msk [vmem:[#allocation6 + $0x18] sm:$0xff] %vm2499_vm4, %v2482_v41  ;;  %v2480_v11 = vpop.permute.xlu0 %2479  ;;  %v3039_v25 = vld [vmem:[#allocation6] sm:$0xff] }
 0xb7e   : > { %2502 = vst.msk [vmem:[#allocation6 + $0x10] sm:$0xff] %vm2499_vm4, %v2480_v11  ;;  %5646 = vmatprep.mubr.msk.bf16.mxu0 %vm512_vm0, %v3039_v25  ;;  %v6252_v25 = vld [vmem:[%s6385_s28 + $0x50] sm:$0xff] }
 0xb7f   : > { %5647 = vmatmul.mubr.msk.bf16.vlgmr.msra.gmra.mrb[96].mxu0 %vm512_vm0, %v3040_v14 }
 0xb80   : > { %v3013_v35 = vpop.permute.xlu1 %3012 }
 0xb81   : > { %3034 = vst.msk [vmem:[#allocation6 + $0x18] sm:$0xff] %vm3030_vm5, %v3013_v35  ;;  %v3011_v58 = vpop.permute.xlu0 %3010 }
 0xb82   : > { %3033 = vst.msk [vmem:[#allocation6 + $0x10] sm:$0xff] %vm3030_vm5, %v3011_v58  ;;  %v6253_v58 = vld [vmem:[%s6385_s28 + $0x40] sm:$0xff] }
 0xb84   : > { %v1955_v20 = vpop.permute.xlu1 %1954 }
 0xb85   : > { %1974 = vst.msk [vmem:[#allocation6 + $0x28] sm:$0xff] %vm1968_vm3, %v1955_v20  ;;  %v1953_v51 = vpop.permute.xlu0 %1952 }
 0xb86   : > { %1973 = vst.msk [vmem:[#allocation6 + $0x20] sm:$0xff] %vm1968_vm3, %v1953_v51 }
 0xb88   : > { %v2486_v60 = vpop.permute.xlu1 %2485  ;;  %v3042_v48 = vld [vmem:[#allocation6 + $0x18] sm:$0xff] }
 0xb89   : > { %2505 = vst.msk [vmem:[#allocation6 + $0x28] sm:$0xff] %vm2499_vm4, %v2486_v60  ;;  %v2484_v16 = vpop.permute.xlu0 %2483  ;;  %v3041_v33 = vld [vmem:[#allocation6 + $0x10] sm:$0xff] }
 0xb8a   : > { %2504 = vst.msk [vmem:[#allocation6 + $0x20] sm:$0xff] %vm2499_vm4, %v2484_v16  ;;  %5650 = vmatprep.mubr.msk.bf16.mxu0 %vm512_vm0, %v3041_v33  ;;  %v6254_v16 = vld [vmem:[%s6385_s28 + $0x58] sm:$0xff] }
 0xb8b   : > { %5651 = vmatmul.mubr.msk.bf16.gmra.mrb[100].mxu0 %vm512_vm0, %v3042_v48 }
 0xbb0   : > { %v3017_v59 = vpop.permute.xlu1 %3016 }
 0xbb1   : > { %3036 = vst.msk [vmem:[#allocation6 + $0x28] sm:$0xff] %vm3030_vm5, %v3017_v59  ;;  %v3015_v40 = vpop.permute.xlu0 %3014 }
 0xbb2   : > { %3035 = vst.msk [vmem:[#allocation6 + $0x20] sm:$0xff] %vm3030_vm5, %v3015_v40  ;;  %v6255_v40 = vld [vmem:[%s6385_s28 + $0x48] sm:$0xff] }
 0xbb4   : > { %v1959_v12 = vpop.permute.xlu1 %1958 }
 0xbb5   : > { %1976 = vst.msk [vmem:[#allocation6 + $0x38] sm:$0xff] %vm1968_vm3, %v1959_v12  ;;  %v1957_v9 = vpop.permute.xlu0 %1956 }
 0xbb6   : > { %1975 = vst.msk [vmem:[#allocation6 + $0x30] sm:$0xff] %vm1968_vm3, %v1957_v9 }
 0xbb8   : > { %v2490_v27 = vpop.permute.xlu1 %2489  ;;  %v3044_v26 = vld [vmem:[#allocation6 + $0x28] sm:$0xff] }
 0xbb9   : > { %2507 = vst.msk [vmem:[#allocation6 + $0x38] sm:$0xff] %vm2499_vm4, %v2490_v27  ;;  %v2488_v57 = vpop.permute.xlu0 %2487  ;;  %v3043_v50 = vld [vmem:[#allocation6 + $0x20] sm:$0xff] }
 0xbba   : > { %2506 = vst.msk [vmem:[#allocation6 + $0x30] sm:$0xff] %vm2499_vm4, %v2488_v57  ;;  %5654 = vmatprep.mubr.msk.bf16.mxu0 %vm512_vm0, %v3043_v50 }
 0xbbb   : > { %5655 = vmatmul.mubr.msk.bf16.gmra.mrb[104].mxu0 %vm512_vm0, %v3044_v26 }
 0xbbc   : > { %v3021_v1 = vpop.permute.xlu1 %3020 }
 0xbbd   : > { %3038 = vst.msk [vmem:[#allocation6 + $0x38] sm:$0xff] %vm3030_vm5, %v3021_v1  ;;  %v3019_v42 = vpop.permute.xlu0 %3018 }
 0xbbe   : > { %3037 = vst.msk [vmem:[#allocation6 + $0x30] sm:$0xff] %vm3030_vm5, %v3019_v42 }
 0xbc4   : > { %v3046_v61 = vld [vmem:[#allocation6 + $0x38] sm:$0xff] }
 0xbc5   : > { %v3045_v37 = vld [vmem:[#allocation6 + $0x30] sm:$0xff] }
 0xbc6   : > { %5658 = vmatprep.mubr.msk.bf16.mxu0 %vm512_vm0, %v3045_v37  ;;  %v6256_v37 = vld [vmem:[%s6385_s28 + $0x70] sm:$0xff] }
 0xbc7   : > { %5659 = vmatmul.mubr.msk.bf16.gmra.mrb[108].mxu0 %vm512_vm0, %v3046_v61 }
 0xc52   : > { %v5648_v62 = vpop.f32.mrb[96].mxu0 }
 0xc53   : > { %v3202_v53 = vadd.f32 %v6244_v5, %v5648_v62  ;;  %v3137_v0 = vpop.f32.mrb[97].mxu0  ;;  %v6257_v5 = vld [vmem:[%s6385_s28 + $0x60] sm:$0xff] }
 0xc54   : > { %v3200_v55 = vadd.f32 %v6245_v4, %v3137_v0  ;;  %v5649_v49 = vpop.f32.mrb[98].mxu0 }
 0xc55   : > { %v7761_v15 = vadd.f32 %v7756_v32, %v3202_v53  ;;  %v3203_v47 = vadd.f32 %v6246_v44, %v5649_v49  ;;  %v3140_v52 = vpop.f32.mrb[99].mxu0 }
 0xc56   : > { %v7765_v29 = vadd.f32 %v7756_v32, %v3200_v55  ;;  %v3201_v17 = vadd.f32 %v6247_v22, %v3140_v52  ;;  %v6258_v55 = vld [vmem:[%s6385_s28 + $0x78] sm:$0xff]  ;;  %v6259_v52 = vld [vmem:[%s6385_s28 + $0x68] sm:$0xff] }
 0xc57   : > { %3241 = vst.msk [vmem:[#allocation2 + $0x10] sm:$0xff] %vm512_vm0, %v7761_v15  ;;  %v7771_v3 = vadd.f32 %v7756_v32, %v3203_v47  ;;  %v3263_v13 = vsel %vm512_vm0, %v7761_v15, 0.0 }
 0xc58   : > { %3239 = vst.msk [vmem:[#allocation2] sm:$0xff] %vm512_vm0, %v7765_v29  ;;  %v7776_v8 = vadd.f32 %v7756_v32, %v3201_v17  ;;  %v3257_v24 = vsel %vm512_vm0, %v7765_v29, 0.0 }
 0xc59   : > { %3242 = vst.msk [vmem:[#allocation2 + $0x18] sm:$0xff] %vm512_vm0, %v7771_v3  ;;  %3258 = vadd.xlane.f32.xlu0 %v3257_v24  ;;  %v3266_v7 = vsel %vm512_vm0, %v7771_v3, 0.0 }
 0xc5a   : > { %3240 = vst.msk [vmem:[#allocation2 + $0x8] sm:$0xff] %vm512_vm0, %v7776_v8  ;;  %v3260_v19 = vsel %vm512_vm0, %v7776_v8, 0.0 }
 0xc5b   : > { %3261 = vadd.xlane.f32.xlu1 %v3260_v19 }
 0xc5d   : > { %3264 = vadd.xlane.f32.xlu0 %v3263_v13 }
 0xc5e   : > { %v5652_v54 = vpop.f32.mrb[100].mxu0 }
 0xc5f   : > { %v3206_v36 = vadd.f32 %v6248_v18, %v5652_v54  ;;  %v3153_v43 = vpop.f32.mrb[101].mxu0 }
 0xc60   : > { %v3204_v31 = vadd.f32 %v6249_v30, %v3153_v43  ;;  %v5653_v28 = vpop.f32.mrb[102].mxu0 }
 0xc61   : > { %v7793_v21 = vadd.f32 %v7756_v32, %v3206_v36  ;;  %v3207_v46 = vadd.f32 %v6250_v23, %v5653_v28  ;;  %3267 = vadd.xlane.f32.xlu0 %v3266_v7  ;;  %v3156_v2 = vpop.f32.mrb[103].mxu0 }
 0xc62   : > { %v7797_v45 = vadd.f32 %v7756_v32, %v3204_v31  ;;  %v3205_v6 = vadd.f32 %v6251_v10, %v3156_v2 }
 0xc63   : > { %3245 = vst.msk [vmem:[#allocation2 + $0x30] sm:$0xff] %vm512_vm0, %v7793_v21  ;;  %v7803_v34 = vadd.f32 %v7756_v32, %v3207_v46  ;;  %v3275_v39 = vsel %vm512_vm0, %v7793_v21, 0.0 }
 0xc64   : > { %3243 = vst.msk [vmem:[#allocation2 + $0x20] sm:$0xff] %vm512_vm0, %v7797_v45  ;;  %v7808_v56 = vadd.f32 %v7756_v32, %v3205_v6  ;;  %v3269_v63 = vsel %vm512_vm0, %v7797_v45, 0.0 }
 0xc65   : > { %3246 = vst.msk [vmem:[#allocation2 + $0x38] sm:$0xff] %vm512_vm0, %v7803_v34  ;;  %3270 = vadd.xlane.f32.xlu0 %v3269_v63  ;;  %v3278_v41 = vsel %vm512_vm0, %v7803_v34, 0.0 }
 0xc66   : > { %3244 = vst.msk [vmem:[#allocation2 + $0x28] sm:$0xff] %vm512_vm0, %v7808_v56  ;;  %v3272_v38 = vsel %vm512_vm0, %v7808_v56, 0.0 }
 0xc67   : > { %3273 = vadd.xlane.f32.xlu1 %v3272_v38 }
 0xc69   : > { %3276 = vadd.xlane.f32.xlu0 %v3275_v39 }
 0xc6b   : > { %3279 = vadd.xlane.f32.xlu1 %v3278_v41 }
 0xc8e   : > { %v5656_v11 = vpop.f32.mrb[104].mxu0 }
 0xc8f   : > { %v3210_v14 = vadd.f32 %v6252_v25, %v5656_v11  ;;  %v3169_v35 = vpop.f32.mrb[105].mxu0 }
 0xc90   : > { %v3208_v20 = vadd.f32 %v6253_v58, %v3169_v35  ;;  %v5657_v51 = vpop.f32.mrb[106].mxu0 }
 0xc91   : > { %v7825_v60 = vadd.f32 %v7756_v32, %v3210_v14  ;;  %v3211_v33 = vadd.f32 %v6254_v16, %v5657_v51  ;;  %v3172_v48 = vpop.f32.mrb[107].mxu0 }
 0xc92   : > { %v7829_v59 = vadd.f32 %v7756_v32, %v3208_v20  ;;  %v3209_v12 = vadd.f32 %v6255_v40, %v3172_v48 }
 0xc93   : > { %3249 = vst.msk [vmem:[#allocation2 + $0x50] sm:$0xff] %vm512_vm0, %v7825_v60  ;;  %v7835_v9 = vadd.f32 %v7756_v32, %v3211_v33  ;;  %v3287_v26 = vsel %vm512_vm0, %v7825_v60, 0.0 }
 0xc94   : > { %3247 = vst.msk [vmem:[#allocation2 + $0x40] sm:$0xff] %vm512_vm0, %v7829_v59  ;;  %v7840_v27 = vadd.f32 %v7756_v32, %v3209_v12  ;;  %v3281_v57 = vsel %vm512_vm0, %v7829_v59, 0.0 }
 0xc95   : > { %3250 = vst.msk [vmem:[#allocation2 + $0x58] sm:$0xff] %vm512_vm0, %v7835_v9  ;;  %3282 = vadd.xlane.f32.xlu0 %v3281_v57  ;;  %v3290_v42 = vsel %vm512_vm0, %v7835_v9, 0.0 }
 0xc96   : > { %3248 = vst.msk [vmem:[#allocation2 + $0x48] sm:$0xff] %vm512_vm0, %v7840_v27  ;;  %v3284_v50 = vsel %vm512_vm0, %v7840_v27, 0.0 }
 0xc97   : > { %3285 = vadd.xlane.f32.xlu1 %v3284_v50 }
 0xc99   : > { %3288 = vadd.xlane.f32.xlu0 %v3287_v26 }
 0xc9a   : > { %v5660_v1 = vpop.f32.mrb[108].mxu0 }
 0xc9b   : > { %v3214_v61 = vadd.f32 %v6256_v37, %v5660_v1  ;;  %3291 = vadd.xlane.f32.xlu1 %v3290_v42  ;;  %v3185_v62 = vpop.f32.mrb[109].mxu0  ;;  %v5760_v37 = vld [vmem:[%s9146_s8] ss:$8 sps:$4 sm:$0xff]  }
 0xc9c   : > { %v3212_v53 = vadd.f32 %v6257_v5, %v3185_v62  ;;  %v5661_v0 = vpop.f32.mrb[110].mxu0  ;;  %v5763_v62 = vld [vmem:[%s9146_s8 + $0x10] ss:$8 sps:$4 sm:$0xff]   ;;  %v5768_v5 = vld [vmem:[%s9146_s8 + $0x24] ss:$8 sps:$4 sm:$0xff]  }
 0xc9d   : > { %v7857_v4 = vadd.f32 %v7756_v32, %v3214_v61  ;;  %v3215_v49 = vadd.f32 %v6258_v55, %v5661_v0  ;;  %v3188_v44 = vpop.f32.mrb[111].mxu0  ;;  %v5765_v61 = vld [vmem:[%s9146_s8 + $0x14] ss:$8 sps:$4 sm:$0xff]   ;;  %v5769_v55 = vld [vmem:[%s9146_s8 + $0x30] ss:$8 sps:$4 sm:$0xff]  }
 0xc9e   : > { %v7861_v47 = vadd.f32 %v7756_v32, %v3212_v53  ;;  %v3213_v22 = vadd.f32 %v6259_v52, %v3188_v44  ;;  %v5766_v53 = vld [vmem:[%s9146_s8 + $0x20] ss:$8 sps:$4 sm:$0xff]   ;;  %v5771_v0 = vld [vmem:[%s9146_s8 + $0x34] ss:$8 sps:$4 sm:$0xff]  }
 0xc9f   : > { %3253 = vst.msk [vmem:[#allocation2 + $0x70] sm:$0xff] %vm512_vm0, %v7857_v4  ;;  %v7867_v17 = vadd.f32 %v7756_v32, %v3215_v49  ;;  %v3299_v54 = vsel %vm512_vm0, %v7857_v4, 0.0 }
 0xca0   : > { %3251 = vst.msk [vmem:[#allocation2 + $0x60] sm:$0xff] %vm512_vm0, %v7861_v47  ;;  %v7872_v24 = vadd.f32 %v7756_v32, %v3213_v22  ;;  %v3293_v19 = vsel %vm512_vm0, %v7861_v47, 0.0 }
 0xca1   : > { %3254 = vst.msk [vmem:[#allocation2 + $0x78] sm:$0xff] %vm512_vm0, %v7867_v17  ;;  %3294 = vadd.xlane.f32.xlu0 %v3293_v19  ;;  %v3302_v32 = vsel %vm512_vm0, %v7867_v17, 0.0 }
 0xca2   : > { %3252 = vst.msk [vmem:[#allocation2 + $0x68] sm:$0xff] %vm512_vm0, %v7872_v24  ;;  %v3296_v13 = vsel %vm512_vm0, %v7872_v24, 0.0 }
 0xca3   : > { %3297 = vadd.xlane.f32.xlu1 %v3296_v13 }
 0xca5   : > { %3300 = vadd.xlane.f32.xlu0 %v3299_v54 }
 0xca7   : > { %3303 = vadd.xlane.f32.xlu1 %v3302_v32 }
 0xce6   : > { %v3259_v18 = vpop.xlane.xlu0 %3258 }
 0xce7   : > { %v3305_v36 = vmul.f32 0.015625, %v3259_v18 }
 0xce8   : > { %v3262_v43 = vpop.xlane.xlu1 %3261 }
 0xce9   : > { %v7887_v30 = vsub.f32 %v7765_v29, %v3305_v36  ;;  %v3306_v31 = vmul.f32 0.015625, %v3262_v43 }
 0xcea   : > { %v3265_v28 = vpop.xlane.xlu0 %3264 }
 0xceb   : > { %v7890_v7 = vsub.f32 %v7776_v8, %v3306_v31  ;;  %v3307_v23 = vmul.f32 0.015625, %v3265_v28  ;;  %v3337_v46 = vmul.f32 %v7887_v30, %v7887_v30 }
 0xced   : > { %v7895_v2 = vsub.f32 %v7761_v15, %v3307_v23  ;;  %v3353_v10 = vsel %vm512_vm0, %v3337_v46, 0.0  ;;  %v3338_v6 = vmul.f32 %v7890_v7, %v7890_v7 }
 0xcee   : > { %3354 = vadd.xlane.f32.xlu0 %v3353_v10  ;;  %v3268_v29 = vpop.xlane.xlu0 %3267 }
 0xcef   : > { %v3308_v63 = vmul.f32 0.015625, %v3268_v29  ;;  %v3356_v38 = vsel %vm512_vm0, %v3338_v6, 0.0  ;;  %v3339_v8 = vmul.f32 %v7895_v2, %v7895_v2 }
 0xcf0   : > { %3357 = vadd.xlane.f32.xlu1 %v3356_v38 }
 0xcf1   : > { %v7904_v39 = vsub.f32 %v7771_v3, %v3308_v63  ;;  %v3359_v15 = vsel %vm512_vm0, %v3339_v8, 0.0 }
 0xcf2   : > { %3360 = vadd.xlane.f32.xlu0 %v3359_v15  ;;  %v3271_v41 = vpop.xlane.xlu0 %3270 }
 0xcf3   : > { %v3309_v11 = vmul.f32 0.015625, %v3271_v41  ;;  %v3340_v25 = vmul.f32 %v7904_v39, %v7904_v39 }
 0xcf4   : > { %v3274_v14 = vpop.xlane.xlu1 %3273 }
 0xcf5   : > { %v7910_v35 = vsub.f32 %v7797_v45, %v3309_v11  ;;  %v3310_v58 = vmul.f32 0.015625, %v3274_v14  ;;  %v3362_v20 = vsel %vm512_vm0, %v3340_v25, 0.0 }
 0xcf6   : > { %3363 = vadd.xlane.f32.xlu1 %v3362_v20  ;;  %v3277_v51 = vpop.xlane.xlu0 %3276 }
 0xcf7   : > { %v7914_v3 = vsub.f32 %v7808_v56, %v3310_v58  ;;  %v3311_v16 = vmul.f32 0.015625, %v3277_v51  ;;  %v3341_v33 = vmul.f32 %v7910_v35, %v7910_v35 }
 0xcf8   : > { %v3280_v48 = vpop.xlane.xlu1 %3279 }
 0xcf9   : > { %v7919_v40 = vsub.f32 %v7793_v21, %v3311_v16  ;;  %v3312_v12 = vmul.f32 0.015625, %v3280_v48  ;;  %v3365_v45 = vsel %vm512_vm0, %v3341_v33, 0.0  ;;  %v3342_v57 = vmul.f32 %v7914_v3, %v7914_v3 }
 0xcfa   : > { %3366 = vadd.xlane.f32.xlu0 %v3365_v45 }
 0xcfb   : > { %v7925_v50 = vsub.f32 %v7803_v34, %v3312_v12  ;;  %v3368_v56 = vsel %vm512_vm0, %v3342_v57, 0.0  ;;  %v3343_v26 = vmul.f32 %v7919_v40, %v7919_v40  ;;  %v5762_v34 = vld [vmem:[%s9146_s8 + $0x4] ss:$8 sps:$4 sm:$0xff]  }
 0xcfc   : > { %3369 = vadd.xlane.f32.xlu1 %v3368_v56  ;;  %3634 = vmatprep.subr.bf16.mxu1 %v5762_v34 }
 0xcfd   : > { %v3371_v1 = vsel %vm512_vm0, %v3343_v26, 0.0  ;;  %v3344_v21 = vmul.f32 %v7925_v50, %v7925_v50  ;;  %3635 = vmatpush1.bf16.msra.mxu1 %v5760_v37 }
 0xcfe   : > { %3372 = vadd.xlane.f32.xlu0 %v3371_v1  ;;  %3636 = vmatprep.subr.bf16.mxu1 %v5765_v61 }
 0xcff   : > { %v3374_v42 = vsel %vm512_vm0, %v3344_v21, 0.0 }
 0xd00   : > { %3375 = vadd.xlane.f32.xlu1 %v3374_v42 }
 0xd01   : > { %3637 = vmatpush1.bf16.msra.mxu1 %v5763_v62 }
 0xd02   : > { %3638 = vmatprep.subr.bf16.mxu1 %v5768_v5 }
 0xd05   : > { %3639 = vmatpush1.bf16.msra.mxu1 %v5766_v53 }
 0xd06   : > { %3640 = vmatprep.subr.bf16.mxu1 %v5771_v0 }
 0xd09   : > { %3641 = vmatpush1.bf16.msra.mxu1 %v5769_v55 }
 0xd22   : > { %v3283_v49 = vpop.xlane.xlu0 %3282 }
 0xd23   : > { %v3313_v44 = vmul.f32 0.015625, %v3283_v49  ;;  %v8009_v49 = vld [vmem:[%s9144_s6] ss:$0 sm:$0xff] }
 0xd24   : > { %v3286_v52 = vpop.xlane.xlu1 %3285 }
 0xd25   : > { %v7959_v22 = vsub.f32 %v7829_v59, %v3313_v44  ;;  %v3314_v19 = vmul.f32 0.015625, %v3286_v52 }
 0xd26   : > { %v3289_v13 = vpop.xlane.xlu0 %3288 }
 0xd27   : > { %v7962_v54 = vsub.f32 %v7840_v27, %v3314_v19  ;;  %v3315_v32 = vmul.f32 0.015625, %v3289_v13  ;;  %v3345_v18 = vmul.f32 %v7959_v22, %v7959_v22 }
 0xd28   : > { %v3292_v36 = vpop.xlane.xlu1 %3291 }
 0xd29   : > { %v7967_v43 = vsub.f32 %v7825_v60, %v3315_v32  ;;  %v3316_v31 = vmul.f32 0.015625, %v3292_v36  ;;  %v3377_v28 = vsel %vm512_vm0, %v3345_v18, 0.0  ;;  %v3346_v59 = vmul.f32 %v7962_v54, %v7962_v54 }
 0xd2a   : > { %3378 = vadd.xlane.f32.xlu0 %v3377_v28 }
 0xd2b   : > { %v7973_v23 = vsub.f32 %v7835_v9, %v3316_v31  ;;  %v3380_v27 = vsel %vm512_vm0, %v3346_v59, 0.0  ;;  %v3347_v46 = vmul.f32 %v7967_v43, %v7967_v43 }
 0xd2c   : > { %3381 = vadd.xlane.f32.xlu1 %v3380_v27 }
 0xd2d   : > { %v3383_v10 = vsel %vm512_vm0, %v3347_v46, 0.0  ;;  %v3348_v60 = vmul.f32 %v7973_v23, %v7973_v23  ;;  %v8017_v46 = vld [vmem:[%s9145_s7] ss:$0 sm:$0xff] }
 0xd2e   : > { %3384 = vadd.xlane.f32.xlu0 %v3383_v10  ;;  %v3295_v6 = vpop.xlane.xlu0 %3294 }
 0xd2f   : > { %v3317_v29 = vmul.f32 0.015625, %v3295_v6  ;;  %v3386_v63 = vsel %vm512_vm0, %v3348_v60, 0.0 }
 0xd30   : > { %v3298_v38 = vpop.xlane.xlu1 %3297  ;;  %3387 = vadd.xlane.f32.xlu1 %v3386_v63 }
 0xd31   : > { %v7983_v9 = vsub.f32 %v7861_v47, %v3317_v29  ;;  %v3318_v8 = vmul.f32 0.015625, %v3298_v38 }
 0xd32   : > { %v3301_v15 = vpop.xlane.xlu0 %3300 }
 0xd33   : > { %v7986_v41 = vsub.f32 %v7872_v24, %v3318_v8  ;;  %v3319_v11 = vmul.f32 0.015625, %v3301_v15  ;;  %v3349_v25 = vmul.f32 %v7983_v9, %v7983_v9 }
 0xd34   : > { %v3304_v14 = vpop.xlane.xlu1 %3303 }
 0xd35   : > { %v7991_v58 = vsub.f32 %v7857_v4, %v3319_v11  ;;  %v3320_v20 = vmul.f32 0.015625, %v3304_v14  ;;  %v3389_v51 = vsel %vm512_vm0, %v3349_v25, 0.0  ;;  %v3350_v47 = vmul.f32 %v7986_v41, %v7986_v41 }
 0xd36   : > { %3390 = vadd.xlane.f32.xlu0 %v3389_v51 }
 0xd37   : > { %v7997_v16 = vsub.f32 %v7867_v17, %v3320_v20  ;;  %v3392_v24 = vsel %vm512_vm0, %v3350_v47, 0.0  ;;  %v3351_v33 = vmul.f32 %v7991_v58, %v7991_v58 }
 0xd38   : > { %3393 = vadd.xlane.f32.xlu1 %v3392_v24 }
 0xd39   : > { %v3395_v48 = vsel %vm512_vm0, %v3351_v33, 0.0  ;;  %v3352_v4 = vmul.f32 %v7997_v16, %v7997_v16 }
 0xd3a   : > { %3396 = vadd.xlane.f32.xlu0 %v3395_v48 }
 0xd3b   : > { %v3398_v12 = vsel %vm512_vm0, %v3352_v4, 0.0 }
 0xd3c   : > { %3399 = vadd.xlane.f32.xlu1 %v3398_v12 }
 0xd7b   : > { %v3355_v45 = vpop.xlane.xlu0 %3354 }
 0xd7c   : > { %v3401_v57 = vmul.f32 0.015625, %v3355_v45 }
 0xd7d   : > { %v3358_v56 = vpop.xlane.xlu1 %3357 }
 0xd7e   : > { %v3417_v17 = vadd.f32 1e-05, %v3401_v57  ;;  %v3402_v26 = vmul.f32 0.015625, %v3358_v56 }
 0xd7f   : > { %v3361_v1 = vpop.xlane.xlu0 %3360 }
 0xd80   : > { %6076 = vrsqrt.f32 %v3417_v17  ;;  %v3418_v21 = vadd.f32 1e-05, %v3402_v26  ;;  %v3403_v42 = vmul.f32 0.015625, %v3361_v1 }
 0xd82   : > { %6078 = vrsqrt.f32 %v3418_v21  ;;  %v3419_v34 = vadd.f32 1e-05, %v3403_v42 }
 0xd83   : > { %v3364_v37 = vpop.xlane.xlu1 %3363 }
 0xd84   : > { %6080 = vrsqrt.f32 %v3419_v34  ;;  %v3404_v61 = vmul.f32 0.015625, %v3364_v37 }
 0xd86   : > { %v3420_v62 = vadd.f32 1e-05, %v3404_v61 }
 0xd87   : > { %v3367_v5 = vpop.xlane.xlu0 %3366 }
 0xd88   : > { %6082 = vrsqrt.f32 %v3420_v62  ;;  %v3405_v53 = vmul.f32 0.015625, %v3367_v5 }
 0xd89   : > { %v3370_v0 = vpop.xlane.xlu1 %3369 }
 0xd8a   : > { %v6077_v55 = vpop.eup %6076  ;;  %v3421_v44 = vadd.f32 1e-05, %v3405_v53  ;;  %v3406_v52 = vmul.f32 0.015625, %v3370_v0 }
 0xd8b   : > { %v3449_v19 = vmul.f32 %v6077_v55, %v7887_v30  ;;  %v3373_v13 = vpop.xlane.xlu0 %3372 }
 0xd8c   : > { %v6079_v32 = vpop.eup %6078  ;;  %6084 = vrsqrt.f32 %v3421_v44  ;;  %v3422_v18 = vadd.f32 1e-05, %v3406_v52  ;;  %v3407_v36 = vmul.f32 0.015625, %v3373_v13 }
 0xd8d   : > { %v3471_v31 = vmul.f32 %v8009_v49, %v3449_v19  ;;  %v3450_v28 = vmul.f32 %v6079_v32, %v7890_v7  ;;  %v3376_v59 = vpop.xlane.xlu1 %3375 }
 0xd8e   : > { %v6081_v27 = vpop.eup %6080  ;;  %6086 = vrsqrt.f32 %v3422_v18  ;;  %v3423_v10 = vadd.f32 1e-05, %v3407_v36  ;;  %v3408_v60 = vmul.f32 0.015625, %v3376_v59 }
 0xd8f   : > { %v3472_v30 = vmul.f32 %v8009_v49, %v3450_v28  ;;  %v3451_v6 = vmul.f32 %v6081_v27, %v7895_v2  ;;  %v3493_v63 = vadd.f32 %v8017_v46, %v3471_v31 }
 0xd90   : > { %6088 = vrsqrt.f32 %v3423_v10  ;;  %v3424_v29 = vadd.f32 1e-05, %v3408_v60 }
 0xd91   : > { %v3494_v7 = vadd.f32 %v8017_v46, %v3472_v30  ;;  %v3473_v15 = vmul.f32 %v8009_v49, %v3451_v6 }
 0xd92   : > { %v6083_v38 = vpop.eup %6082  ;;  %6090 = vrsqrt.f32 %v3424_v29 }
 0xd93   : > { %v3509_v8 = vpack.c.bf16 %v3494_v7, %v3493_v63  ;;  %v3452_v11 = vmul.f32 %v6083_v38, %v7904_v39  ;;  %v3495_v2 = vadd.f32 %v8017_v46, %v3473_v15 }
 0xd95   : > { %3517 = vst.msk [vmem:[#allocation3] sm:$0xff] %vm512_vm0, %v3509_v8  ;;  %v3474_v25 = vmul.f32 %v8009_v49, %v3452_v11 }
 0xd96   : > { %v6085_v14 = vpop.eup %6084 }
 0xd97   : > { %v3496_v20 = vadd.f32 %v8017_v46, %v3474_v25  ;;  %v3453_v51 = vmul.f32 %v6085_v14, %v7910_v35 }
 0xd98   : > { %v6087_v47 = vpop.eup %6086 }
 0xd99   : > { %v3510_v24 = vpack.c.bf16 %v3496_v20, %v3495_v2  ;;  %v3475_v33 = vmul.f32 %v8009_v49, %v3453_v51  ;;  %v3454_v48 = vmul.f32 %v6087_v47, %v7914_v3  ;;  %v9180_v3 = vmov 0  }
 0xd9a   : > { %v6089_v4 = vpop.eup %6088 }
 0xd9b   : > { %3518 = vst.msk [vmem:[#allocation3 + $0x8] sm:$0xff] %vm512_vm0, %v3510_v24  ;;  %v3476_v39 = vmul.f32 %v8009_v49, %v3454_v48  ;;  %v3455_v12 = vmul.f32 %v6089_v4, %v7919_v40  ;;  %v3497_v56 = vadd.f32 %v8017_v46, %v3475_v33 }
 0xd9c   : > { %v6091_v45 = vpop.eup %6090  ;;  %v3541_v57 = vld [vmem:[#allocation3] sm:$0xff] }
 0xd9d   : > { %v3498_v17 = vadd.f32 %v8017_v46, %v3476_v39  ;;  %v3477_v35 = vmul.f32 %v8009_v49, %v3455_v12  ;;  %v3456_v26 = vmul.f32 %v6091_v45, %v7925_v50  ;;  %5149 = vmatmul.mubr.msk.bf16.vlgmr.msra.gmra.mrb[64].mxu1 %vm512_vm0, %v3541_v57 }
 0xd9e   : > { %3676 = vmatprep.mubr.bf16.mxu1 %v9180_v3 }
 0xd9f   : > { %v3511_v1 = vpack.c.bf16 %v3498_v17, %v3497_v56  ;;  %v3478_v21 = vmul.f32 %v8009_v49, %v3456_v26  ;;  %v3499_v40 = vadd.f32 %v8017_v46, %v3477_v35 }
 0xda1   : > { %3519 = vst.msk [vmem:[#allocation3 + $0x10] sm:$0xff] %vm512_vm0, %v3511_v1  ;;  %v3500_v42 = vadd.f32 %v8017_v46, %v3478_v21 }
 0xda2   : > { %v3542_v37 = vld [vmem:[#allocation3 + $0x8] sm:$0xff] }
 0xda3   : > { %v3512_v34 = vpack.c.bf16 %v3500_v42, %v3499_v40 }
 0xda5   : > { %3520 = vst.msk [vmem:[#allocation3 + $0x18] sm:$0xff] %vm512_vm0, %v3512_v34  ;;  %5150 = vmatmul.mubr.msk.bf16.gmra.mrb[68].mxu1 %vm512_vm0, %v3542_v37 }
 0xda6   : > { %3686 = vmatprep.mubr.bf16.mxu1 %v9180_v3 }
 0xda8   : > { %v3543_v50 = vld [vmem:[#allocation3 + $0x10] sm:$0xff] }
 0xdac   : > { %v3544_v61 = vld [vmem:[#allocation3 + $0x18] sm:$0xff] }
 0xdad   : > { %5151 = vmatmul.mubr.msk.bf16.gmra.mrb[72].mxu1 %vm512_vm0, %v3543_v50 }
 0xdae   : > { %3696 = vmatprep.mubr.bf16.mxu1 %v9180_v3 }
 0xdb5   : > { %5152 = vmatmul.mubr.msk.bf16.gmra.mrb[76].mxu1 %vm512_vm0, %v3544_v61 }
 0xdb6   : > { %3706 = vmatprep.mubr.bf16.mxu1 %v9180_v3 }
 0xdb7   : > { %v3379_v62 = vpop.xlane.xlu0 %3378 }
 0xdb8   : > { %v3409_v5 = vmul.f32 0.015625, %v3379_v62 }
 0xdb9   : > { %v3382_v53 = vpop.xlane.xlu1 %3381 }
 0xdba   : > { %v3425_v0 = vadd.f32 1e-05, %v3409_v5  ;;  %v3410_v55 = vmul.f32 0.015625, %v3382_v53  ;;  %v5773_v53 = vld [vmem:[%s9148_s10] sm:$0xff]  }
 0xdbb   : > { %v3385_v44 = vpop.xlane.xlu0 %3384 }
 0xdbc   : > { %6092 = vrsqrt.f32 %v3425_v0  ;;  %v3426_v52 = vadd.f32 1e-05, %v3410_v55  ;;  %v3411_v19 = vmul.f32 0.015625, %v3385_v44  ;;  %v5774_v0 = vld [vmem:[%s9148_s10 + $0x48] sm:$0xff]   ;;  %v5776_v55 = vld [vmem:[%s9148_s10 + $0x50] sm:$0xff]  }
 0xdbd   : > { %v3388_v13 = vpop.xlane.xlu1 %3387  ;;  %v5777_v44 = vld [vmem:[%s9148_s10 + $0x10] sm:$0xff]  }
 0xdbe   : > { %6094 = vrsqrt.f32 %v3426_v52  ;;  %v3427_v32 = vadd.f32 1e-05, %v3411_v19  ;;  %v3412_v18 = vmul.f32 0.015625, %v3388_v13  ;;  %v5778_v52 = vld [vmem:[%s9148_s10 + $0x58] sm:$0xff]   ;;  %v5780_v13 = vld [vmem:[%s9148_s10 + $0x60] sm:$0xff]  }
 0xdbf   : > { %v5779_v19 = vld [vmem:[%s9148_s10 + $0x18] sm:$0xff]  }
 0xdc0   : > { %6096 = vrsqrt.f32 %v3427_v32  ;;  %v3428_v36 = vadd.f32 1e-05, %v3412_v18  ;;  %v5781_v32 = vld [vmem:[%s9148_s10 + $0x20] sm:$0xff]   ;;  %v5782_v18 = vld [vmem:[%s9148_s10 + $0x68] sm:$0xff]  }
 0xdc2   : > { %6098 = vrsqrt.f32 %v3428_v36  ;;  %v5783_v36 = vld [vmem:[%s9148_s10 + $0x28] sm:$0xff]  }
 0xdc3   : > { %v3391_v31 = vpop.xlane.xlu0 %3390 }
 0xdc4   : > { %v3413_v28 = vmul.f32 0.015625, %v3391_v31  ;;  %v5784_v31 = vld [vmem:[%s9148_s10 + $0x70] sm:$0xff]  }
 0xdc5   : > { %v3394_v59 = vpop.xlane.xlu1 %3393 }
 0xdc6   : > { %v6093_v27 = vpop.eup %6092  ;;  %v3429_v10 = vadd.f32 1e-05, %v3413_v28  ;;  %v3414_v60 = vmul.f32 0.015625, %v3394_v59  ;;  %v5785_v28 = vld [vmem:[%s9148_s10 + $0x30] sm:$0xff]   ;;  %v5786_v59 = vld [vmem:[%s9148_s10 + $0x78] sm:$0xff]  }
 0xdc7   : > { %v3457_v30 = vmul.f32 %v6093_v27, %v7959_v22  ;;  %v3397_v6 = vpop.xlane.xlu0 %3396  ;;  %v5787_v27 = vld [vmem:[%s9148_s10 + $0x38] sm:$0xff]  }
 0xdc8   : > { %v6095_v29 = vpop.eup %6094  ;;  %6100 = vrsqrt.f32 %v3429_v10  ;;  %v3430_v63 = vadd.f32 1e-05, %v3414_v60  ;;  %v3415_v7 = vmul.f32 0.015625, %v3397_v6  ;;  %v9181_v10 = vlaneseq  ;;  %v3557_v6 = vld [vmem:[%s9147_s9] sm:$0x3] }
 0xdc9   : > { %v3479_v38 = vmul.f32 %v8009_v49, %v3457_v30  ;;  %v3458_v8 = vmul.f32 %v6095_v29, %v7962_v54  ;;  %v3400_v15 = vpop.xlane.xlu1 %3399 }
 0xdca   : > { %v6097_v11 = vpop.eup %6096  ;;  %6102 = vrsqrt.f32 %v3430_v63  ;;  %v3431_v25 = vadd.f32 1e-05, %v3415_v7  ;;  %v3416_v14 = vmul.f32 0.015625, %v3400_v15  ;;  %v3560_v60 = vshrl.u32 %v9181_v10, 7 }
 0xdcb   : > { %v3480_v2 = vmul.f32 %v8009_v49, %v3458_v8  ;;  %v3459_v20 = vmul.f32 %v6097_v11, %v7967_v43  ;;  %v3501_v47 = vadd.f32 %v8017_v46, %v3479_v38 }
 0xdcc   : > { %v6099_v51 = vpop.eup %6098  ;;  %6104 = vrsqrt.f32 %v3431_v25  ;;  %v3432_v22 = vadd.f32 1e-05, %v3416_v14  ;;  %v3561_v30 = vsub.s32 0, %v3560_v60  ;;  %v3565_v29 = vsub.s32 1, %v3560_v60 }
 0xdcd   : > { %v3502_v24 = vadd.f32 %v8017_v46, %v3480_v2  ;;  %v3481_v33 = vmul.f32 %v8009_v49, %v3459_v20  ;;  %v3460_v54 = vmul.f32 %v6099_v51, %v7973_v23 }
 0xdce   : > { %6106 = vrsqrt.f32 %v3432_v22  ;;  %v8139_v63 = vrot.slane %v3557_v6, %v3561_v30  ;;  %v8141_v7 = vrot.slane %v3557_v6, %v3565_v29 }
 0xdcf   : > { %v3513_v48 = vpack.c.bf16 %v3502_v24, %v3501_v47  ;;  %v3482_v4 = vmul.f32 %v8009_v49, %v3460_v54  ;;  %v3503_v39 = vadd.f32 %v8017_v46, %v3481_v33 }
 0xdd1   : > { %3521 = vst.msk [vmem:[#allocation3 + $0x20] sm:$0xff] %vm512_vm0, %v3513_v48  ;;  %v3504_v43 = vadd.f32 %v8017_v46, %v3482_v4 }
 0xdd2   : > { %v6101_v12 = vpop.eup %6100 }
 0xdd3   : > { %v3514_v45 = vpack.c.bf16 %v3504_v43, %v3503_v39  ;;  %v3461_v57 = vmul.f32 %v6101_v12, %v7983_v9 }
 0xdd4   : > { %v6103_v56 = vpop.eup %6102 }
 0xdd5   : > { %3522 = vst.msk [vmem:[#allocation3 + $0x28] sm:$0xff] %vm512_vm0, %v3514_v45  ;;  %v3483_v17 = vmul.f32 %v8009_v49, %v3461_v57  ;;  %v3462_v23 = vmul.f32 %v6103_v56, %v7986_v41 }
 0xdd6   : > { %v6105_v35 = vpop.eup %6104 }
 0xdd7   : > { %v3484_v26 = vmul.f32 %v8009_v49, %v3462_v23  ;;  %v3463_v1 = vmul.f32 %v6105_v35, %v7991_v58  ;;  %v3505_v42 = vadd.f32 %v8017_v46, %v3483_v17 }
 0xdd8   : > { %v6107_v21 = vpop.eup %6106  ;;  %v3545_v40 = vld [vmem:[#allocation3 + $0x20] sm:$0xff] }
 0xdd9   : > { %v3506_v34 = vadd.f32 %v8017_v46, %v3484_v26  ;;  %v3485_v9 = vmul.f32 %v8009_v49, %v3463_v1  ;;  %v3464_v37 = vmul.f32 %v6107_v21, %v7997_v16  ;;  %5153 = vmatmul.mubr.msk.bf16.gmra.mrb[80].mxu1 %vm512_vm0, %v3545_v40 }
 0xdda   : > { %3716 = vmatprep.mubr.bf16.mxu1 %v9180_v3 }
 0xddb   : > { %v3515_v41 = vpack.c.bf16 %v3506_v34, %v3505_v42  ;;  %v3486_v50 = vmul.f32 %v8009_v49, %v3464_v37  ;;  %v3507_v58 = vadd.f32 %v8017_v46, %v3485_v9 }
 0xddc   : > { %v3546_v5 = vld [vmem:[#allocation3 + $0x28] sm:$0xff] }
 0xddd   : > { %3523 = vst.msk [vmem:[#allocation3 + $0x30] sm:$0xff] %vm512_vm0, %v3515_v41  ;;  %v3508_v61 = vadd.f32 %v8017_v46, %v3486_v50  ;;  %v5772_v46 = vld [vmem:[%s9148_s10 + $0x40] sm:$0xff]  }
 0xdde   : > { %5318 = vmatprep.subr.bf16.mxu0 %v5772_v46  ;;  %5662 = vmatprep.subr.bf16.mxu1 %v5772_v46 }
 0xddf   : > { %v3516_v62 = vpack.c.bf16 %v3508_v61, %v3507_v58  ;;  %5319 = vmatpush3.bf16.msra.mxu0 %v5773_v53  ;;  %5670 = vmatpush3.bf16.msra.mxu1 %v5773_v53 }
 0xde0   : > { %5320 = vmatprep.subr.bf16.mxu0 %v5774_v0  ;;  %5663 = vmatprep.subr.bf16.mxu1 %v5774_v0 }
 0xde1   : > { %3524 = vst.msk [vmem:[#allocation3 + $0x38] sm:$0xff] %vm512_vm0, %v3516_v62  ;;  %5154 = vmatmul.mubr.msk.bf16.gmra.mrb[84].mxu1 %vm512_vm0, %v3546_v5 }
 0xde2   : > { %3726 = vmatprep.mubr.bf16.mxu1 %v9180_v3 }
 0xde4   : > { %v3547_v16 = vld [vmem:[#allocation3 + $0x30] sm:$0xff] }
 0xde8   : > { %v3548_v49 = vld [vmem:[#allocation3 + $0x38] sm:$0xff] }
 0xde9   : > { %5155 = vmatmul.mubr.msk.bf16.gmra.mrb[88].mxu1 %vm512_vm0, %v3547_v16 }
 0xdea   : > { %3736 = vmatprep.mubr.bf16.mxu1 %v9180_v3  ;;  %v5775_v3 = vld [vmem:[%s9148_s10 + $0x8] sm:$0xff]  }
 0xdeb   : > { %5321 = vmatpush3.bf16.msra.mxu0 %v5775_v3  ;;  %5671 = vmatpush3.bf16.msra.mxu1 %v5775_v3 }
 0xdec   : > { %5322 = vmatprep.subr.bf16.mxu0 %v5776_v55  ;;  %5664 = vmatprep.subr.bf16.mxu1 %v5776_v55 }
 0xdef   : > { %5323 = vmatpush3.bf16.msra.mxu0 %v5777_v44  ;;  %5672 = vmatpush3.bf16.msra.mxu1 %v5777_v44 }
 0xdf0   : > { %5324 = vmatprep.subr.bf16.mxu0 %v5778_v52  ;;  %5665 = vmatprep.subr.bf16.mxu1 %v5778_v52 }
 0xdf1   : > { %5156 = vmatmul.mubr.msk.bf16.gmra.mrb[92].mxu1 %vm512_vm0, %v3548_v49 }
 0xdf3   : > { %5325 = vmatpush3.bf16.msra.mxu0 %v5779_v19  ;;  %5673 = vmatpush3.bf16.msra.mxu1 %v5779_v19 }
 0xdf4   : > { %5326 = vmatprep.subr.bf16.mxu0 %v5780_v13  ;;  %5666 = vmatprep.subr.bf16.mxu1 %v5780_v13 }
 0xdf7   : > { %5327 = vmatpush3.bf16.msra.mxu0 %v5781_v32  ;;  %5674 = vmatpush3.bf16.msra.mxu1 %v5781_v32 }
 0xdf8   : > { %5328 = vmatprep.subr.bf16.mxu0 %v5782_v18  ;;  %5667 = vmatprep.subr.bf16.mxu1 %v5782_v18 }
 0xdfb   : > { %5329 = vmatpush3.bf16.msra.mxu0 %v5783_v36  ;;  %5675 = vmatpush3.bf16.msra.mxu1 %v5783_v36 }
 0xdfc   : > { %5330 = vmatprep.subr.bf16.mxu0 %v5784_v31  ;;  %5668 = vmatprep.subr.bf16.mxu1 %v5784_v31 }
 0xdff   : > { %5331 = vmatpush3.bf16.msra.mxu0 %v5785_v28  ;;  %5676 = vmatpush3.bf16.msra.mxu1 %v5785_v28 }
 0xe00   : > { %5332 = vmatprep.subr.bf16.mxu0 %v5786_v59  ;;  %5669 = vmatprep.subr.bf16.mxu1 %v5786_v59 }
 0xe03   : > { %5333 = vmatpush3.bf16.msra.mxu0 %v5787_v27  ;;  %5677 = vmatpush3.bf16.msra.mxu1 %v5787_v27 }
 0xe70   : > { %v3668_v38 = vpop.f32.mrb[64].mxu1 }
 0xe71   : > { %v8144_v8 = vadd.f32 %v3668_v38, %v8139_v63  ;;  %v3670_v15 = vpop.f32.mrb[65].mxu1 }
 0xe72   : > { %v8147_v11 = vadd.f32 %v3670_v15, %v8141_v7  ;;  %v3672_v25 = vpop.f32.mrb[66].mxu1 }
 0xe73   : > { %v8150_v14 = vmul.f32 0.70710677, %v8144_v8  ;;  %v8153_v2 = vadd.f32 %v3672_v25, %v8139_v63  ;;  %v3674_v20 = vpop.f32.mrb[67].mxu1 }
 0xe74   : > { %v8156_v51 = vmul.f32 0.70710677, %v8147_v11  ;;  %v8159_v22 = vadd.f32 %v3674_v20, %v8141_v7 }
 0xe75   : > { %v3811_v47 = vand.u32 2147483647, %v8150_v14  ;;  %v8163_v24 = vmul.f32 0.70710677, %v8153_v2  ;;  %vm4419_vm6 = vcmp.ge.f32.partialorder %v8150_v14, 0.0 }
 0xe76   : > { %v8166_v33 = vand.u32 2147483647, %v8156_v51  ;;  %v8169_v54 = vmul.f32 0.70710677, %v8159_v22  ;;  %vm4420_vm8 = vcmp.ge.f32.partialorder %v8156_v51, 0.0 }
 0xe77   : > { %v3843_v48 = vmul.f32 0.3275911, %v3811_v47  ;;  %v3813_v4 = vand.u32 2147483647, %v8163_v24  ;;  %v4227_v61 = vsub.f32 0.0, %v3811_v47  ;;  %vm4421_vm7 = vcmp.ge.f32.partialorder %v8163_v24, 0.0 }
 0xe78   : > { %v3844_v39 = vmul.f32 0.3275911, %v8166_v33  ;;  %v8174_v43 = vand.u32 2147483647, %v8169_v54  ;;  %v3678_v57 = vpop.f32.mrb[68].mxu1  ;;  %vm4422_vm9 = vcmp.ge.f32.partialorder %v8169_v54, 0.0 }
 0xe79   : > { %v3875_v12 = vadd.f32 1.0, %v3843_v48  ;;  %v3845_v45 = vmul.f32 0.3275911, %v3813_v4  ;;  %v3680_v23 = vpop.f32.mrb[69].mxu1  ;;  %v8178_v40 = vadd.f32 %v3678_v57, %v8139_v63  ;;  %v4259_v52 = vmul.f32 %v4227_v61, %v3811_v47 }
 0xe7a   : > { %v3876_v56 = vadd.f32 1.0, %v3844_v39  ;;  %v3846_v17 = vmul.f32 0.3275911, %v8174_v43  ;;  %v3682_v26 = vpop.f32.mrb[70].mxu1  ;;  %v8181_v42 = vadd.f32 %v3680_v23, %v8141_v7  ;;  %v4229_v19 = vsub.f32 0.0, %v3813_v4 }
 0xe7b   : > { %6108 = vrcp.f32 %v3875_v12  ;;  %v3877_v35 = vadd.f32 1.0, %v3845_v45  ;;  %v3684_v1 = vpop.f32.mrb[71].mxu1  ;;  %v8184_v34 = vadd.f32 %v3682_v26, %v8139_v63  ;;  %v8187_v9 = vmul.f32 0.70710677, %v8178_v40 }
 0xe7c   : > { %6110 = vrcp.f32 %v3876_v56  ;;  %v3878_v21 = vadd.f32 1.0, %v3846_v17  ;;  %v8190_v37 = vadd.f32 %v3684_v1, %v8141_v7  ;;  %v8193_v41 = vmul.f32 0.70710677, %v8181_v42 }
 0xe7d   : > { %6112 = vrcp.f32 %v3877_v35  ;;  %v8196_v50 = vmul.f32 0.70710677, %v8184_v34  ;;  %v8199_v62 = vand.u32 2147483647, %v8187_v9  ;;  %v4291_v6 = vmul.f32 1.442695, %v4259_v52 }
 0xe7e   : > { %6114 = vrcp.f32 %v3878_v21  ;;  %v8204_v16 = vand.u32 2147483647, %v8193_v41  ;;  %v8213_v0 = vmul.f32 0.70710677, %v8190_v37  ;;  %v4261_v38 = vmul.f32 %v4229_v19, %v3813_v4 }
 0xe7f   : > { %v8207_v49 = vand.u32 2147483647, %v8196_v50  ;;  %v3847_v53 = vmul.f32 0.3275911, %v8199_v62  ;;  %v4228_v23 = vsub.f32 0.0, %v8166_v33  ;;  %vm4423_vm10 = vcmp.ge.f32.partialorder %v8187_v9, 0.0 }
 0xe80   : > { %v3688_v58 = vpop.f32.mrb[72].mxu1  ;;  %v3848_v3 = vmul.f32 0.3275911, %v8204_v16  ;;  %v8220_v32 = vand.u32 2147483647, %v8213_v0  ;;  %vm4424_vm11 = vcmp.ge.f32.partialorder %v8193_v41, 0.0 }
 0xe81   : > { %v8201_v5 = vpop.f32.mrb[73].mxu1  ;;  %v3849_v55 = vmul.f32 0.3275911, %v8207_v49  ;;  %v3879_v13 = vadd.f32 1.0, %v3847_v53  ;;  %v8241_v45 = vadd.f32 %v3688_v58, %v8139_v63  ;;  %v4295_v35 = vmul.f32 1.442695, %v4261_v38 }
 0xe82   : > { %v8209_v46 = vpop.f32.mrb[74].mxu1  ;;  %v3880_v28 = vadd.f32 1.0, %v3848_v3  ;;  %v3850_v60 = vmul.f32 0.3275911, %v8220_v32  ;;  %vm4425_vm12 = vcmp.ge.f32.partialorder %v8196_v50, 0.0  ;;  %vm4426_vm13 = vcmp.ge.f32.partialorder %v8213_v0, 0.0 }
 0xe83   : > { %v8222_v18 = vpop.f32.mrb[75].mxu1  ;;  %6116 = vrcp.f32 %v3879_v13  ;;  %v3881_v27 = vadd.f32 1.0, %v3849_v55  ;;  %v8252_v58 = vmul.f32 0.70710677, %v8241_v45 }
 0xe84   : > { %6118 = vrcp.f32 %v3880_v28  ;;  %v3882_v12 = vadd.f32 1.0, %v3850_v60  ;;  %v4230_v28 = vsub.f32 0.0, %v8174_v43 }
 0xe85   : > { %v8217_v44 = vpop.eup %6108  ;;  %6120 = vrcp.f32 %v3881_v27  ;;  %v8256_v19 = vand.u32 2147483647, %v8252_v58  ;;  %vm4427_vm14 = vcmp.ge.f32.partialorder %v8252_v58, 0.0 }
 0xe86   : > { %v8224_v36 = vpop.eup %6110  ;;  %v3939_v31 = vmul.f32 1.0614054, %v8217_v44  ;;  %6122 = vpow2.f32 %v4291_v6 }
 0xe87   : > { %v3940_v59 = vmul.f32 1.0614054, %v8224_v36  ;;  %v8229_v30 = vpop.eup %6112  ;;  %6124 = vrcp.f32 %v3882_v12 }
 0xe88   : > { %v3971_v10 = vadd.f32 -1.4531521, %v3939_v31  ;;  %v8231_v15 = vpop.f32.mrb[76].mxu1  ;;  %v3941_v20 = vmul.f32 1.0614054, %v8229_v30  ;;  %v8237_v48 = vpop.eup %6114  ;;  %v4260_v31 = vmul.f32 %v4228_v23, %v8166_v33  ;;  %6126 = vpow2.f32 %v4295_v35 }
 0xe89   : > { %v3972_v29 = vadd.f32 -1.4531521, %v3940_v59  ;;  %v8235_v47 = vpop.f32.mrb[77].mxu1  ;;  %v3942_v17 = vmul.f32 1.0614054, %v8237_v48 }
 0xe8a   : > { %v4003_v25 = vmul.f32 %v8217_v44, %v3971_v10  ;;  %v8243_v57 = vpop.f32.mrb[78].mxu1  ;;  %v3973_v56 = vadd.f32 -1.4531521, %v3941_v20  ;;  %v8403_v54 = vadd.f32 %v8235_v47, %v8141_v7 }
 0xe8b   : > { %v4004_v39 = vmul.f32 %v8224_v36, %v3972_v29  ;;  %v8247_v26 = vpop.f32.mrb[79].mxu1  ;;  %v3974_v61 = vadd.f32 -1.4531521, %v3942_v17 }
 0xe8c   : > { %v4035_v4 = vadd.f32 1.4214138, %v4003_v25  ;;  %v4005_v21 = vmul.f32 %v8229_v30, %v3973_v56  ;;  %v3851_v25 = vmul.f32 0.3275911, %v8256_v19  ;;  %v4262_v56 = vmul.f32 %v4230_v28, %v8174_v43 }
 0xe8d   : > { %v4036_v53 = vadd.f32 1.4214138, %v4004_v39  ;;  %v4006_v52 = vmul.f32 %v8237_v48, %v3974_v61  ;;  %v8258_v13 = vpop.eup %6116 }
 0xe8e   : > { %v4067_v1 = vmul.f32 %v8217_v44, %v4035_v4  ;;  %v4037_v55 = vadd.f32 1.4214138, %v4005_v21  ;;  %v8262_v59 = vpop.eup %6118  ;;  %v3943_v6 = vmul.f32 1.0614054, %v8258_v13  ;;  %v3883_v23 = vadd.f32 1.0, %v3851_v25 }
 0xe8f   : > { %v4038_v60 = vadd.f32 1.4214138, %v4006_v52  ;;  %v4068_v29 = vmul.f32 %v8224_v36, %v4036_v53  ;;  %v3944_v38 = vmul.f32 1.0614054, %v8262_v59  ;;  %v8271_v4 = vpop.eup %6120  ;;  %v4297_v28 = vmul.f32 1.442695, %v4262_v56 }
 0xe90   : > { %v4099_v3 = vadd.f32 -0.28449672, %v4067_v1  ;;  %v4069_v10 = vmul.f32 %v8229_v30, %v4037_v55  ;;  %v3975_v12 = vadd.f32 -1.4531521, %v3943_v6  ;;  %v4293_v1 = vmul.f32 1.442695, %v4260_v31  ;;  %v6123_v53 = vpop.eup %6122 }
 0xe91   : > { %v4070_v39 = vmul.f32 %v8237_v48, %v4038_v60  ;;  %v3976_v17 = vadd.f32 -1.4531521, %v3944_v38  ;;  %v3945_v52 = vmul.f32 1.0614054, %v8271_v4  ;;  %6128 = vrcp.f32 %v3883_v23  ;;  %v8279_v43 = vpop.eup %6124 }
 0xe92   : > { %v4131_v27 = vmul.f32 %v8217_v44, %v4099_v3  ;;  %v4101_v33 = vadd.f32 -0.28449672, %v4069_v10  ;;  %v4007_v61 = vmul.f32 %v8258_v13, %v3975_v12  ;;  %v4100_v3 = vadd.f32 -0.28449672, %v4068_v29 }
 0xe93   : > { %v4102_v55 = vadd.f32 -0.28449672, %v4070_v39  ;;  %v4008_v60 = vmul.f32 %v8262_v59, %v3976_v17  ;;  %v3977_v31 = vadd.f32 -1.4531521, %v3945_v52  ;;  %6130 = vpow2.f32 %v4293_v1 }
 0xe94   : > { %v4163_v20 = vadd.f32 0.2548296, %v4131_v27  ;;  %v4133_v21 = vmul.f32 %v8229_v30, %v4101_v33  ;;  %v4039_v25 = vadd.f32 1.4214138, %v4007_v61  ;;  %v4132_v29 = vmul.f32 %v8224_v36, %v4100_v3 }
 0xe95   : > { %v4134_v33 = vmul.f32 %v8237_v48, %v4102_v55  ;;  %v4009_v39 = vmul.f32 %v8271_v4, %v3977_v31  ;;  %v4040_v23 = vadd.f32 1.4214138, %v4008_v60  ;;  %v3946_v56 = vmul.f32 1.0614054, %v8279_v43 }
 0xe96   : > { %v4195_v35 = vmul.f32 %v8217_v44, %v4163_v20  ;;  %v4165_v10 = vadd.f32 0.2548296, %v4133_v21  ;;  %v4231_v44 = vsub.f32 0.0, %v8199_v62  ;;  %v6127_v20 = vpop.eup %6126  ;;  %6132 = vpow2.f32 %v4297_v28 }
 0xe97   : > { %v4071_v1 = vmul.f32 %v8258_v13, %v4039_v25  ;;  %v3747_v3 = vmul.f32 0.5, %v8144_v8  ;;  %v4164_v55 = vadd.f32 0.2548296, %v4132_v29  ;;  %v4233_v52 = vsub.f32 0.0, %v8207_v49 }
 0xe98   : > { %v4355_v27 = vmul.f32 %v6123_v53, %v4195_v35  ;;  %v4197_v38 = vmul.f32 %v8229_v30, %v4165_v10  ;;  %v4263_v35 = vmul.f32 %v4231_v44, %v8199_v62  ;;  %v4232_v30 = vsub.f32 0.0, %v8204_v16 }
 0xe99   : > { %v4041_v53 = vadd.f32 1.4214138, %v4009_v39  ;;  %v4166_v10 = vadd.f32 0.2548296, %v4134_v33  ;;  %v4072_v62 = vmul.f32 %v8262_v59, %v4040_v23  ;;  %v3978_v60 = vadd.f32 -1.4531521, %v3946_v56 }
 0xe9a   : > { %v4387_v6 = vsub.f32 1.0, %v4355_v27  ;;  %v4357_v17 = vmul.f32 %v6127_v20, %v4197_v38  ;;  %v8295_v27 = vadd.f32 %v8201_v5, %v8141_v7  ;;  %v3749_v31 = vmul.f32 0.5, %v8153_v2 }
 0xe9b   : > { %v8298_v28 = vpop.eup %6128  ;;  %v4264_v8 = vmul.f32 %v4232_v30, %v8204_v16  ;;  %v4103_v38 = vadd.f32 -0.28449672, %v4071_v1  ;;  %v4299_v25 = vmul.f32 1.442695, %v4263_v35  ;;  %v4073_v5 = vmul.f32 %v8271_v4, %v4041_v53 }
 0xe9c   : > { %v4451_v12 = vsub.f32 0.0, %v4387_v6  ;;  %v4389_v61 = vsub.f32 1.0, %v4357_v17  ;;  %v4196_v20 = vmul.f32 %v8224_v36, %v4164_v55  ;;  %v4265_v33 = vmul.f32 %v4233_v52, %v8207_v49 }
 0xe9d   : > { %v8307_v39 = vmul.f32 0.70710677, %v8295_v27  ;;  %v4104_v2 = vadd.f32 -0.28449672, %v4072_v62  ;;  %v4010_v24 = vmul.f32 %v8279_v43, %v3978_v60  ;;  %v3947_v16 = vmul.f32 1.0614054, %v8298_v28  ;;  %v6131_v17 = vpop.eup %6130 }
 0xe9e   : > { %v4483_v21 = vsel %vm4419_vm6, %v4387_v6, %v4451_v12  ;;  %v4453_v14 = vsub.f32 0.0, %v4389_v61  ;;  %v4198_v12 = vmul.f32 %v8237_v48, %v4166_v10  ;;  %v4301_v35 = vmul.f32 1.442695, %v4264_v8 }
 0xe9f   : > { %v4515_v44 = vadd.f32 1.0, %v4483_v21  ;;  %v4135_v36 = vmul.f32 %v8258_v13, %v4103_v38  ;;  %6134 = vpow2.f32 %v4299_v25  ;;  %v4105_v49 = vadd.f32 -0.28449672, %v4073_v5 }
 0xea0   : > { %v4485_v6 = vsel %vm4421_vm7, %v4389_v61, %v4453_v14  ;;  %v6133_v30 = vpop.eup %6132  ;;  %v4356_v21 = vmul.f32 %v6131_v17, %v4196_v20  ;;  %v4303_v61 = vmul.f32 1.442695, %v4265_v33  ;;  %v3979_v1 = vadd.f32 -1.4531521, %v3947_v16 }
 0xea1   : > { %v4517_v29 = vadd.f32 1.0, %v4485_v6  ;;  %v8312_v23 = vmul.f32 %v4515_v44, %v3747_v3  ;;  %v4358_v53 = vmul.f32 %v6133_v30, %v4198_v12  ;;  %v4136_v55 = vmul.f32 %v8262_v59, %v4104_v2 }
 0xea2   : > { %v4042_v52 = vadd.f32 1.4214138, %v4010_v24  ;;  %v8321_v3 = vand.u32 2147483647, %v8307_v39  ;;  %v8324_v14 = vmul.f32 0.5, %v8147_v11  ;;  %v8327_v10 = vmul.f32 0.5, %v8159_v22 }
 0xea3   : > { %v8314_v56 = vmul.f32 %v4517_v29, %v3749_v31  ;;  %6136 = vpow2.f32 %v4301_v35  ;;  %v8331_v62 = vadd.f32 %v8209_v46, %v8139_v63  ;;  %v4167_v60 = vadd.f32 0.2548296, %v4135_v36 }
 0xea4   : > { %v4137_v44 = vmul.f32 %v8271_v4, %v4105_v49  ;;  %v4234_v31 = vsub.f32 0.0, %v8220_v32  ;;  %v3852_v8 = vmul.f32 0.3275911, %v8321_v3  ;;  %v4388_v6 = vsub.f32 1.0, %v4356_v21 }
 0xea5   : > { %6138 = vpow2.f32 %v4303_v61  ;;  %v4011_v11 = vmul.f32 %v8298_v28, %v3979_v1  ;;  %v4390_v22 = vsub.f32 1.0, %v4358_v53  ;;  %v4168_v38 = vadd.f32 0.2548296, %v4136_v55 }
 0xea6   : > { %v4074_v46 = vmul.f32 %v8279_v43, %v4042_v52  ;;  %v3884_v25 = vadd.f32 1.0, %v3852_v8  ;;  %v8343_v20 = vmul.f32 0.5, %v8178_v40  ;;  %v8346_v29 = vmul.f32 0.5, %v8181_v42 }
 0xea7   : > { %v4235_v33 = vsub.f32 0.0, %v8256_v19  ;;  %v8350_v12 = vmul.f32 0.70710677, %v8331_v62  ;;  %v4199_v24 = vmul.f32 %v8258_v13, %v4167_v60  ;;  %v4169_v16 = vadd.f32 0.2548296, %v4137_v44 }
 0xea8   : > { %v4266_v17 = vmul.f32 %v4234_v31, %v8220_v32  ;;  %6140 = vrcp.f32 %v3884_v25  ;;  %v4452_v40 = vsub.f32 0.0, %v4388_v6  ;;  %v4043_v36 = vadd.f32 1.4214138, %v4011_v11 }
 0xea9   : > { %v8359_v42 = vand.u32 2147483647, %v8350_v12  ;;  %v6135_v30 = vpop.eup %6134  ;;  %v4454_v21 = vsub.f32 0.0, %v4390_v22  ;;  %v4200_v61 = vmul.f32 %v8262_v59, %v4168_v38  ;;  %v4106_v1 = vadd.f32 -0.28449672, %v4074_v46 }
 0xeaa   : > { %v8366_v13 = vadd.f32 %v8222_v18, %v8141_v7  ;;  %v8369_v32 = vmul.f32 0.5, %v8184_v34  ;;  %v4267_v53 = vmul.f32 %v4235_v33, %v8256_v19  ;;  %v8375_v52 = vadd.f32 %v8231_v15, %v8139_v63 }
 0xeab   : > { %v3853_v55 = vmul.f32 0.3275911, %v8359_v42  ;;  %v4359_v60 = vmul.f32 %v6135_v30, %v4199_v24  ;;  %v4201_v44 = vmul.f32 %v8271_v4, %v4169_v16  ;;  %v8379_v59 = vmul.f32 0.5, %v8190_v37 }
 0xeac   : > { %v8340_v5 = vpop.f32.mrb[80].mxu1  ;;  %v4305_v31 = vmul.f32 1.442695, %v4266_v17  ;;  %v4484_v34 = vsel %vm4420_vm8, %v4388_v6, %v4452_v40  ;;  %v4075_v8 = vmul.f32 %v8298_v28, %v4043_v36  ;;  %v8385_v11 = vmul.f32 0.70710677, %v8366_v13 }
 0xead   : > { %v8352_v2 = vpop.f32.mrb[81].mxu1  ;;  %v6137_v18 = vpop.eup %6136  ;;  %v3885_v19 = vadd.f32 1.0, %v3853_v55  ;;  %v4486_v15 = vsel %vm4422_vm9, %v4390_v22, %v4454_v21  ;;  %v4138_v4 = vmul.f32 %v8279_v43, %v4106_v1  ;;  %v8393_v37 = vmul.f32 0.70710677, %v8375_v52 }
 0xeae   : > { %v8356_v35 = vpop.f32.mrb[82].mxu1  ;;  %v8389_v38 = vmul.f32 %v6137_v18, %v4200_v61  ;;  %v4307_v6 = vmul.f32 1.442695, %v4267_v53  ;;  %v8399_v25 = vand.u32 2147483647, %v8385_v11  ;;  %v4391_v33 = vsub.f32 1.0, %v4359_v60 }
 0xeaf   : > { %v8361_v49 = vpop.f32.mrb[83].mxu1  ;;  %v6139_v51 = vpop.eup %6138  ;;  %6142 = vrcp.f32 %v3885_v19  ;;  %v8408_v16 = vand.u32 2147483647, %v8393_v37  ;;  %v4516_v40 = vadd.f32 1.0, %v4484_v34  ;;  %v4107_v36 = vadd.f32 -0.28449672, %v4075_v8 }
 0xeb0   : > { %v4361_v24 = vmul.f32 %v6139_v51, %v4201_v44  ;;  %6144 = vpow2.f32 %v4305_v31  ;;  %v3854_v30 = vmul.f32 0.3275911, %v8399_v25  ;;  %v4518_v61 = vadd.f32 1.0, %v4486_v15 }
 0xeb1   : > { %v4392_v1 = vsub.f32 1.0, %v8389_v38  ;;  %v4170_v53 = vadd.f32 0.2548296, %v4138_v4  ;;  %v3855_v55 = vmul.f32 0.3275911, %v8408_v16  ;;  %6146 = vpow2.f32 %v4307_v6 }
 0xeb2   : > { %v8416_v47 = vpop.eup %6140  ;;  %v3886_v44 = vadd.f32 1.0, %v3854_v30  ;;  %v8423_v31 = vmul.f32 0.70710677, %v8403_v54  ;;  %v4455_v18 = vsub.f32 0.0, %v4391_v33  ;;  %v4393_v34 = vsub.f32 1.0, %v4361_v24 }
 0xeb3   : > { %v3948_v60 = vmul.f32 1.0614054, %v8416_v47  ;;  %v3887_v8 = vadd.f32 1.0, %v3855_v55  ;;  %v8427_v19 = vadd.f32 %v8243_v57, %v8139_v63  ;;  %v4139_v15 = vmul.f32 %v8298_v28, %v4107_v36 }
 0xeb4   : > { %v8395_v46 = vpop.f32.mrb[84].mxu1  ;;  %6148 = vrcp.f32 %v3886_v44  ;;  %v8431_v4 = vand.u32 2147483647, %v8423_v31  ;;  %v4456_v51 = vsub.f32 0.0, %v4392_v1  ;;  %v8434_v6 = vmul.f32 0.5, %v8241_v45 }
 0xeb5   : > { %v8405_v22 = vpop.f32.mrb[85].mxu1  ;;  %v3980_v38 = vadd.f32 -1.4531521, %v3948_v60  ;;  %v4236_v30 = vsub.f32 0.0, %v8321_v3  ;;  %6150 = vrcp.f32 %v3887_v8  ;;  %v4548_v55 = vmul.f32 %v4516_v40, %v8324_v14 }
 0xeb6   : > { %v8410_v17 = vpop.f32.mrb[86].mxu1  ;;  %v4202_v57 = vmul.f32 %v8279_v43, %v4170_v53  ;;  %v8442_v36 = vmul.f32 0.5, %v8295_v27  ;;  %v3856_v60 = vmul.f32 0.3275911, %v8431_v4  ;;  %v4550_v48 = vmul.f32 %v4518_v61, %v8327_v10 }
 0xeb7   : > { %v8414_v21 = vpop.f32.mrb[87].mxu1  ;;  %v4487_v45 = vsel %vm4423_vm10, %v4391_v33, %v4455_v18  ;;  %v8451_v8 = vmul.f32 0.70710677, %v8427_v19  ;;  %v4171_v43 = vadd.f32 0.2548296, %v4139_v15  ;;  %v4012_v27 = vmul.f32 %v8416_v47, %v3980_v38 }
 0xeb8   : > { %9182 = vst [vmem:[#allocation8_spill] sm:$0xff] %v8414_v21  ;;  %9184 = vst [vmem:[#allocation9_spill] sm:$0xff] %v8442_v36  ;;  %v4457_v21 = vsub.f32 0.0, %v4393_v34  ;;  %v3888_v40 = vadd.f32 1.0, %v3856_v60  ;;  %v8460_v53 = vadd.f32 %v8247_v26, %v8141_v7  ;;  %v4488_v33 = vsel %vm4424_vm11, %v4392_v1, %v4456_v51 }
 0xeb9   : > { %v8455_v14 = vpop.eup %6142  ;;  %v4268_v61 = vmul.f32 %v4236_v30, %v8321_v3  ;;  %v4519_v15 = vadd.f32 1.0, %v4487_v45  ;;  %v4596_v1 = vpack.c.bf16 %v4550_v48, %v4548_v55  ;;  %v4520_v3 = vadd.f32 1.0, %v4488_v33 }
 0xeba   : > { %v6145_v9 = vpop.eup %6144  ;;  %v3949_v18 = vmul.f32 1.0614054, %v8455_v14  ;;  %6152 = vrcp.f32 %v3888_v40  ;;  %v8472_v60 = vmul.f32 0.70710677, %v8460_v53  ;;  %v4489_v26 = vsel %vm4425_vm12, %v4393_v34, %v4457_v21 }
 0xebb   : > { %v4362_v38 = vmul.f32 %v6145_v9, %v4202_v57  ;;  %v6147_v51 = vpop.eup %6146  ;;  %v4203_v30 = vmul.f32 %v8298_v28, %v4171_v43  ;;  %v4309_v57 = vmul.f32 1.442695, %v4268_v61  ;;  %4771 = vmatprep.mubr.bf16.mxu0 %v4596_v1  ;;  %v8485_v50 = vadd.f32 %v8340_v5, %v8139_v63 }
 0xebc   : > { %v8437_v24 = vpop.f32.mrb[88].mxu1  ;;  %v8479_v36 = vand.u32 2147483647, %v8472_v60  ;;  %v4521_v28 = vadd.f32 1.0, %v4489_v26  ;;  %v8492_v55 = vmul.f32 0.5, %v8331_v62  ;;  %v8503_v5 = vmul.f32 %v4519_v15, %v8343_v20 }
 0xebd   : > { %9183 = vst [vmem:[#allocation7_spill] sm:$0xff] %v8437_v24  ;;  %v8445_v44 = vpop.f32.mrb[89].mxu1  ;;  %v4394_v34 = vsub.f32 1.0, %v4362_v38  ;;  %v4237_v33 = vsub.f32 0.0, %v8359_v42  ;;  %v8515_v20 = vmul.f32 0.70710677, %v8485_v50  ;;  %v8546_v0 = vadd.f32 %v8352_v2, %v8141_v7 }
 0xebe   : > { %9185 = vst [vmem:[#allocation10_spill] sm:$0xff] %v8445_v44  ;;  %v8453_v24 = vpop.f32.mrb[90].mxu1  ;;  %v4044_v44 = vadd.f32 1.4214138, %v4012_v27  ;;  %v8489_v21 = vpop.eup %6148  ;;  %v3858_v43 = vmul.f32 0.3275911, %v8479_v36  ;;  %v9189_v27 = vpack.c.bf16 %v8314_v56, %v8312_v23  ;;  %v8512_v56 = vmul.f32 %v4520_v3, %v8346_v29 }
 0xebf   : > { %9186 = vst [vmem:[#allocation11_spill] sm:$0xff] %v8453_v24  ;;  %v8462_v10 = vpop.f32.mrb[91].mxu1  ;;  %v8469_v24 = vand.u32 2147483647, %v8451_v8  ;;  %v8500_v9 = vpop.eup %6150  ;;  %v3950_v61 = vmul.f32 1.0614054, %v8489_v21 }
 0xec0   : > { %9187 = vst [vmem:[#allocation12_spill] sm:$0xff] %v8462_v10  ;;  %v3981_v10 = vadd.f32 -1.4531521, %v3949_v18  ;;  %4772 = vmatmul.mubr.bf16.vlgmr.msra.gmra.mrb[112].mxu0 %v9189_v27  ;;  %v4363_v18 = vmul.f32 %v6147_v51, %v4203_v30  ;;  %v4076_v38 = vmul.f32 %v8416_v47, %v4044_v44  ;;  %v3951_v23 = vmul.f32 1.0614054, %v8500_v9  ;;  %9192 = vst [vmem:[#allocation16_spill] sm:$0xff] %v8515_v20 }
 0xec1   : > { %v3857_v41 = vmul.f32 0.3275911, %v8469_v24  ;;  %v3890_v1 = vadd.f32 1.0, %v3858_v43  ;;  %v4458_v27 = vsub.f32 0.0, %v4394_v34  ;;  %v4238_v30 = vsub.f32 0.0, %v8399_v25 }
 0xec2   : > { %v4013_v45 = vmul.f32 %v8455_v14, %v3981_v10  ;;  %v3983_v51 = vadd.f32 -1.4531521, %v3951_v23  ;;  %v8525_v29 = vand.u32 2147483647, %v8515_v20  ;;  %v4108_v43 = vadd.f32 -0.28449672, %v4076_v38 }
 0xec3   : > { %v3889_v40 = vadd.f32 1.0, %v3857_v41  ;;  %v3982_v41 = vadd.f32 -1.4531521, %v3950_v61  ;;  %v4239_v38 = vsub.f32 0.0, %v8408_v16  ;;  %vm4428_vm15 = vcmp.ge.f32.partialorder %v8307_v39, 0.0 }
 0xec4   : > { %v8487_v48 = vpop.f32.mrb[92].mxu1  ;;  %v4045_v26 = vadd.f32 1.4214138, %v4013_v45  ;;  %v8527_v3 = vpop.eup %6152  ;;  %v4395_v45 = vsub.f32 1.0, %v4363_v18  ;;  %vm4429_vm1 = vcmp.ge.f32.partialorder %v8350_v12, 0.0  ;;  %vm4430_vm2 = vcmp.ge.f32.partialorder %v8385_v11, 0.0 }
 0xec5   : > { %9188 = vst [vmem:[#allocation13_spill] sm:$0xff] %v8487_v48  ;;  %v8498_v10 = vpop.f32.mrb[93].mxu1  ;;  %6154 = vrcp.f32 %v3889_v40  ;;  %v8520_v40 = vmul.f32 %v4521_v28, %v8369_v32  ;;  %v4014_v44 = vmul.f32 %v8489_v21, %v3982_v41  ;;  %v4269_v32 = vmul.f32 %v4237_v33, %v8359_v42 }
 0xec6   : > { %9190 = vst [vmem:[#allocation14_spill] sm:$0xff] %v8498_v10  ;;  %v8507_v62 = vpop.f32.mrb[94].mxu1  ;;  %6156 = vpow2.f32 %v4309_v57  ;;  %v4015_v28 = vmul.f32 %v8500_v9, %v3983_v51  ;;  %v4077_v57 = vmul.f32 %v8455_v14, %v4045_v26  ;;  %v3952_v23 = vmul.f32 1.0614054, %v8527_v3 }
 0xec7   : > { %9191 = vst [vmem:[#allocation15_spill] sm:$0xff] %v8507_v62  ;;  %v8517_v15 = vpop.f32.mrb[95].mxu1  ;;  %6158 = vrcp.f32 %v3890_v1  ;;  %v4046_v61 = vadd.f32 1.4214138, %v4014_v44  ;;  %v3859_v41 = vmul.f32 0.3275911, %v8525_v29  ;;  %v4490_v1 = vsel %vm4426_vm13, %v4394_v34, %v4458_v27 }
 0xec8   : > { %9193 = vst [vmem:[#allocation17_spill] sm:$0xff] %v8517_v15  ;;  %v8538_v15 = vmul.f32 0.5, %v8366_v13  ;;  %v4047_v18 = vadd.f32 1.4214138, %v4015_v28  ;;  %v4270_v33 = vmul.f32 %v4238_v30, %v8399_v25  ;;  %v3984_v51 = vadd.f32 -1.4531521, %v3952_v23 }
 0xec9   : > { %v4078_v42 = vmul.f32 %v8489_v21, %v4046_v61  ;;  %v3891_v26 = vadd.f32 1.0, %v3859_v41  ;;  %v4459_v44 = vsub.f32 0.0, %v4395_v45  ;;  %v4140_v62 = vmul.f32 %v8416_v47, %v4108_v43 }
 0xeca   : > { %v4311_v10 = vmul.f32 1.442695, %v4269_v32  ;;  %v4109_v13 = vadd.f32 -0.28449672, %v4077_v57  ;;  %v4079_v27 = vmul.f32 %v8500_v9, %v4047_v18  ;;  %v4016_v28 = vmul.f32 %v8527_v3, %v3984_v51 }
 0xecb   : > { %6160 = vrcp.f32 %v3891_v26  ;;  %v4522_v61 = vadd.f32 1.0, %v4490_v1  ;;  %v4110_v25 = vadd.f32 -0.28449672, %v4078_v42  ;;  %v8553_v30 = vmul.f32 0.5, %v8375_v52 }
 0xecc   : > { %v4313_v32 = vmul.f32 1.442695, %v4270_v33  ;;  %v4271_v23 = vmul.f32 %v4239_v38, %v8408_v16  ;;  %v4048_v2 = vadd.f32 1.4214138, %v4016_v28  ;;  %v4240_v41 = vsub.f32 0.0, %v8431_v4 }
 0xecd   : > { %9194 = vst [vmem:[#allocation18_spill] sm:$0xff] %v8553_v30  ;;  %v4172_v57 = vadd.f32 0.2548296, %v4140_v62  ;;  %6162 = vpow2.f32 %v4311_v10  ;;  %v8559_v51 = vmul.f32 0.70710677, %v8546_v0  ;;  %v4491_v52 = vsel %vm4427_vm14, %v4395_v45, %v4459_v44 }
 0xece   : > { %v4141_v42 = vmul.f32 %v8455_v14, %v4109_v13  ;;  %v4111_v33 = vadd.f32 -0.28449672, %v4079_v27  ;;  %v4241_v16 = vsub.f32 0.0, %v8469_v24  ;;  %v4142_v38 = vmul.f32 %v8489_v21, %v4110_v25 }
 0xecf   : > { %v8548_v34 = vpop.eup %6154  ;;  %9195 = vst [vmem:[#allocation19_spill] sm:$0xff] %v8559_v51  ;;  %v8571_v62 = vand.u32 2147483647, %v8559_v51  ;;  %6164 = vpow2.f32 %v4313_v32  ;;  %v4315_v28 = vmul.f32 1.442695, %v4271_v23  ;;  %v4272_v58 = vmul.f32 %v4240_v41, %v8431_v4 }
 0xed0   : > { %v3953_v43 = vmul.f32 1.0614054, %v8548_v34  ;;  %v6157_v48 = vpop.eup %6156  ;;  %v4204_v45 = vmul.f32 %v8416_v47, %v4172_v57  ;;  %v8578_v25 = vmul.f32 %v4522_v61, %v8379_v59  ;;  %v4273_v20 = vmul.f32 %v4241_v16, %v8469_v24 }
 0xed1   : > { %v8561_v1 = vpop.eup %6158  ;;  %v3860_v27 = vmul.f32 0.3275911, %v8571_v62  ;;  %v4242_v51 = vsub.f32 0.0, %v8479_v36  ;;  %v4174_v32 = vadd.f32 0.2548296, %v4142_v38  ;;  %v4143_v23 = vmul.f32 %v8500_v9, %v4111_v33 }
 0xed2   : > { %v3985_v18 = vadd.f32 -1.4531521, %v3953_v43  ;;  %v3954_v10 = vmul.f32 1.0614054, %v8561_v1  ;;  %v4080_v43 = vmul.f32 %v8527_v3, %v4048_v2  ;;  %v4523_v41 = vadd.f32 1.0, %v4491_v52 }
 0xed3   : > { %6166 = vpow2.f32 %v4315_v28  ;;  %v4364_v59 = vmul.f32 %v6157_v48, %v4204_v45  ;;  %v4317_v61 = vmul.f32 1.442695, %v4272_v58  ;;  %v4319_v16 = vmul.f32 1.442695, %v4273_v20 }
 0xed4   : > { %v4017_v26 = vmul.f32 %v8548_v34, %v3985_v18  ;;  %v3986_v13 = vadd.f32 -1.4531521, %v3954_v10  ;;  %v4173_v18 = vadd.f32 0.2548296, %v4141_v42  ;;  %v4112_v57 = vadd.f32 -0.28449672, %v4080_v43 }
 0xed5   : > { %v8585_v47 = vpop.eup %6160  ;;  %v4274_v52 = vmul.f32 %v4242_v51, %v8479_v36  ;;  %v8594_v48 = vmul.f32 0.5, %v8403_v54  ;;  %v8599_v20 = vadd.f32 %v8356_v35, %v8139_v63  ;;  %v4396_v43 = vsub.f32 1.0, %v4364_v59 }
 0xed6   : > { %v4049_v44 = vadd.f32 1.4214138, %v4017_v26  ;;  %v4018_v4 = vmul.f32 %v8561_v1, %v3986_v13  ;;  %v3892_v26 = vadd.f32 1.0, %v3860_v27  ;;  %v4205_v24 = vmul.f32 %v8455_v14, %v4173_v18 }
 0xed7   : > { %v3955_v38 = vmul.f32 1.0614054, %v8585_v47  ;;  %v6163_v33 = vpop.eup %6162  ;;  %v4175_v13 = vadd.f32 0.2548296, %v4143_v23  ;;  %v4144_v28 = vmul.f32 %v8527_v3, %v4112_v57  ;;  %v4243_v58 = vsub.f32 0.0, %v8525_v29 }
 0xed8   : > { %v4081_v2 = vmul.f32 %v8548_v34, %v4049_v44  ;;  %v4050_v10 = vadd.f32 1.4214138, %v4018_v4  ;;  %6168 = vrcp.f32 %v3892_v26  ;;  %v4206_v44 = vmul.f32 %v8489_v21, %v4174_v32 }
 0xed9   : > { %v3987_v14 = vadd.f32 -1.4531521, %v3955_v38  ;;  %6170 = vpow2.f32 %v4317_v61  ;;  %v6165_v45 = vpop.eup %6164  ;;  %v4365_v36 = vmul.f32 %v6163_v33, %v4205_v24  ;;  %v8604_v51 = vmul.f32 0.5, %v8427_v19 }
 0xeda   : > { %v4113_v42 = vadd.f32 -0.28449672, %v4081_v2  ;;  %v4082_v30 = vmul.f32 %v8561_v1, %v4050_v10  ;;  %6172 = vpow2.f32 %v4319_v16  ;;  %v8607_v27 = vmul.f32 %v4523_v41, %v8434_v6 }
 0xedb   : > { %v4366_v18 = vmul.f32 %v6165_v45, %v4206_v44  ;;  %v4207_v35 = vmul.f32 %v8500_v9, %v4175_v13  ;;  %v4321_v32 = vmul.f32 1.442695, %v4274_v52  ;;  %v4176_v23 = vadd.f32 0.2548296, %v4144_v28 }
 0xedc   : > { %v4145_v21 = vmul.f32 %v8548_v34, %v4113_v42  ;;  %v4114_v54 = vadd.f32 -0.28449672, %v4082_v30  ;;  %v8611_v2 = vmul.f32 0.5, %v8460_v53  ;;  %v4019_v4 = vmul.f32 %v8585_v47, %v3987_v14 }
 0xedd   : > { %v8615_v57 = vmul.f32 0.70710677, %v8599_v20  ;;  %v4460_v19 = vsub.f32 0.0, %v4396_v43  ;;  %v4275_v6 = vmul.f32 %v4243_v58, %v8525_v29  ;;  %v4598_v41 = vpack.c.bf16 %v8578_v25, %v8512_v56  ;;  %v6167_v9 = vpop.eup %6166 }
 0xede   : > { %v4177_v30 = vadd.f32 0.2548296, %v4145_v21  ;;  %v4397_v26 = vsub.f32 1.0, %v4365_v36  ;;  %v4146_v53 = vmul.f32 %v8561_v1, %v4114_v54  ;;  %v8628_v61 = vadd.f32 %v8361_v49, %v8141_v7 }
 0xedf   : > { %v8624_v59 = vand.u32 2147483647, %v8615_v57  ;;  %v4398_v42 = vsub.f32 1.0, %v4366_v18  ;;  %v4367_v10 = vmul.f32 %v6167_v9, %v4207_v35  ;;  %6174 = vpow2.f32 %v4321_v32  ;;  %4779 = vmatprep.mubr.bf16.mxu0 %v4598_v41 }
 0xee0   : > { %v8631_v29 = vmul.f32 0.5, %v8485_v50  ;;  %v4208_v25 = vmul.f32 %v8527_v3, %v4176_v23  ;;  %v4051_v24 = vadd.f32 1.4214138, %v4019_v4  ;;  %v4597_v38 = vpack.c.bf16 %v8520_v40, %v8503_v5 }
 0xee1   : > { %v3861_v16 = vmul.f32 0.3275911, %v8624_v59  ;;  %v4492_v49 = vsel %vm4428_vm15, %v4396_v43, %v4460_v19  ;;  %v4209_v33 = vmul.f32 %v8548_v34, %v4177_v30  ;;  %v4323_v44 = vmul.f32 1.442695, %v4275_v6 }
 0xee2   : > { %v8633_v56 = vpop.eup %6168  ;;  %v4461_v13 = vsub.f32 0.0, %v4397_v26  ;;  %vm4431_vm3 = vcmp.ge.f32.partialorder %v8393_v37, 0.0  ;;  %v4178_v52 = vadd.f32 0.2548296, %v4146_v53  ;;  %v8645_v3 = vmul.f32 0.70710677, %v8628_v61  ;;  %4780 = vmatmul.mubr.bf16.gmra.mrb[116].mxu0 %v4597_v38 }
 0xee3   : > { %v3956_v50 = vmul.f32 1.0614054, %v8633_v56  ;;  %v3893_v28 = vadd.f32 1.0, %v3861_v16  ;;  %v6171_v14 = vpop.eup %6170  ;;  %v4462_v21 = vsub.f32 0.0, %v4398_v42  ;;  %v4399_v5 = vsub.f32 1.0, %v4367_v10 }
 0xee4   : > { %v4244_v39 = vsub.f32 0.0, %v8571_v62  ;;  %v6173_v43 = vpop.eup %6172  ;;  %v4368_v34 = vmul.f32 %v6171_v14, %v4208_v25  ;;  %v4083_v58 = vmul.f32 %v8585_v47, %v4051_v24  ;;  %v8651_v45 = vadd.f32 %v8395_v46, %v8139_v63 }
 0xee5   : > { %v3988_v40 = vadd.f32 -1.4531521, %v3956_v50  ;;  %6176 = vrcp.f32 %v3893_v28  ;;  %v4524_v36 = vadd.f32 1.0, %v4492_v49  ;;  %v4369_v54 = vmul.f32 %v6173_v43, %v4209_v33 }
 0xee6   : > { %v8654_v18 = vmul.f32 0.5, %v8546_v0  ;;  %v8657_v35 = vand.u32 2147483647, %v8645_v3  ;;  %v4493_v32 = vsel %vm4429_vm1, %v4397_v26, %v4461_v13  ;;  %v4210_v23 = vmul.f32 %v8561_v1, %v4178_v52 }
 0xee7   : > { %6178 = vpow2.f32 %v4323_v44  ;;  %v4020_v4 = vmul.f32 %v8633_v56, %v3988_v40  ;;  %v4494_v46 = vsel %vm4430_vm2, %v4398_v42, %v4462_v21  ;;  %v4463_v19 = vsub.f32 0.0, %v4399_v5  ;;  %v9196_v42 = vld [vmem:[#allocation9_spill] sm:$0xff] }
 0xee8   : > { %vm4432_vm4 = vcmp.ge.f32.partialorder %v8423_v31, 0.0  ;;  %v4276_v0 = vmul.f32 %v4244_v39, %v8571_v62  ;;  %v3862_v30 = vmul.f32 0.3275911, %v8657_v35  ;;  %v4400_v6 = vsub.f32 1.0, %v4368_v34 }
 0xee9   : > { %v4115_v41 = vadd.f32 -0.28449672, %v4083_v58  ;;  %v8669_v12 = vmul.f32 0.70710677, %v8651_v45  ;;  %v8673_v1 = vadd.f32 %v8405_v22, %v8141_v7  ;;  %v6175_v9 = vpop.eup %6174  ;;  %v4525_v26 = vadd.f32 1.0, %v4493_v32 }
 0xeea   : > { %v4401_v11 = vsub.f32 1.0, %v4369_v54  ;;  %vm4433_vm5 = vcmp.ge.f32.partialorder %v8451_v8, 0.0  ;;  %v3894_v53 = vadd.f32 1.0, %v3862_v30  ;;  %v8678_v62 = vadd.f32 %v8410_v17, %v8139_v63 }
 0xeeb   : > { %v4556_v10 = vmul.f32 %v4524_v36, %v9196_v42  ;;  %v4370_v25 = vmul.f32 %v6175_v9, %v4210_v23  ;;  %v4052_v24 = vadd.f32 1.4214138, %v4020_v4  ;;  %v8682_v16 = vand.u32 2147483647, %v8669_v12 }
 0xeec   : > { %v4526_v38 = vadd.f32 1.0, %v4494_v46  ;;  %v4495_v22 = vsel %vm4431_vm3, %v4399_v5, %v4463_v19  ;;  %v4325_v49 = vmul.f32 1.442695, %v4276_v0  ;;  %6180 = vrcp.f32 %v3894_v53 }
 0xeed   : > { %v4464_v33 = vsub.f32 0.0, %v4400_v6  ;;  %v4147_v44 = vmul.f32 %v8585_v47, %v4115_v41  ;;  %v3863_v50 = vmul.f32 0.3275911, %v8682_v16  ;;  %v8689_v17 = vmul.f32 0.70710677, %v8673_v1 }
 0xeee   : > { %v8692_v13 = vmul.f32 %v4525_v26, %v8492_v55  ;;  %v4465_v52 = vsub.f32 0.0, %v4401_v11  ;;  %vm4434_vm6 = vcmp.ge.f32.partialorder %v8472_v60, 0.0  ;;  %v4245_v28 = vsub.f32 0.0, %v8624_v59 }
 0xeef   : > { %v8697_v37 = vmul.f32 0.70710677, %v8678_v62  ;;  %v8699_v14 = vpop.eup %6176  ;;  %v4402_v21 = vsub.f32 1.0, %v4370_v25  ;;  %v4084_v5 = vmul.f32 %v8633_v56, %v4052_v24  ;;  %v3895_v40 = vadd.f32 1.0, %v3863_v50 }
 0xef0   : > { %v8703_v39 = vand.u32 2147483647, %v8689_v17  ;;  %v4558_v55 = vmul.f32 %v4526_v38, %v8538_v15  ;;  %v4527_v43 = vadd.f32 1.0, %v4495_v22  ;;  %6182 = vpow2.f32 %v4325_v49 }
 0xef1   : > { %v3957_v34 = vmul.f32 1.0614054, %v8699_v14  ;;  %v6179_v58 = vpop.eup %6178  ;;  %v4496_v36 = vsel %vm4432_vm4, %v4400_v6, %v4464_v33  ;;  %v4179_v54 = vadd.f32 0.2548296, %v4147_v44  ;;  %6184 = vrcp.f32 %v3895_v40  ;;  %v9197_v6 = vld [vmem:[#allocation18_spill] sm:$0xff] }
 0xef2   : > { %v3864_v32 = vmul.f32 0.3275911, %v8703_v39  ;;  %v8711_v23 = vmul.f32 0.5, %v8599_v20  ;;  %v4277_v46 = vmul.f32 %v4245_v28, %v8624_v59  ;;  %v8715_v15 = vand.u32 2147483647, %v8697_v37  ;;  %v9198_v59 = vld [vmem:[#allocation8_spill] sm:$0xff] }
 0xef3   : > { %v3989_v4 = vadd.f32 -1.4531521, %v3957_v34  ;;  %v4497_v19 = vsel %vm4433_vm5, %v4401_v11, %v4465_v52  ;;  %v4466_v0 = vsub.f32 0.0, %v4402_v21  ;;  %v4116_v30 = vadd.f32 -0.28449672, %v4084_v5  ;;  %v9199_v34 = vld [vmem:[#allocation7_spill] sm:$0xff] }
 0xef4   : > { %v3896_v31 = vadd.f32 1.0, %v3864_v32  ;;  %v8720_v41 = vmul.f32 %v4527_v43, %v9197_v6  ;;  %v4528_v9 = vadd.f32 1.0, %v4496_v36  ;;  %v3865_v20 = vmul.f32 0.3275911, %v8715_v15 }
 0xef5   : > { %v4021_v26 = vmul.f32 %v8699_v14, %v3989_v4  ;;  %v4211_v53 = vmul.f32 %v8585_v47, %v4179_v54  ;;  %v8727_v42 = vadd.f32 %v9198_v59, %v8141_v7  ;;  %v4600_v8 = vpack.c.bf16 %v4558_v55, %v4556_v10  ;;  %v9201_v59 = vld [vmem:[#allocation10_spill] sm:$0xff] }
 0xef6   : > { %6186 = vrcp.f32 %v3896_v31  ;;  %v8729_v11 = vpop.eup %6180  ;;  %v4529_v25 = vadd.f32 1.0, %v4497_v19  ;;  %v4327_v24 = vmul.f32 1.442695, %v4277_v46  ;;  %v4246_v38 = vsub.f32 0.0, %v8657_v35 }
 0xef7   : > { %v3897_v22 = vadd.f32 1.0, %v3865_v20  ;;  %v4498_v49 = vsel %vm4434_vm6, %v4402_v21, %v4466_v0  ;;  %v4148_v33 = vmul.f32 %v8633_v56, %v4116_v30  ;;  %v3958_v47 = vmul.f32 1.0614054, %v8729_v11  ;;  %4787 = vmatprep.mubr.bf16.mxu0 %v4600_v8 }
 0xef8   : > { %v8737_v44 = vmul.f32 0.70710677, %v8727_v42  ;;  %v8740_v10 = vmul.f32 %v4528_v9, %v8594_v48  ;;  %v4053_v50 = vadd.f32 1.4214138, %v4021_v26  ;;  %v8743_v52 = vmul.f32 0.5, %v8628_v61 }
 0xef9   : > { %6188 = vrcp.f32 %v3897_v22  ;;  %v4371_v28 = vmul.f32 %v6179_v58, %v4211_v53  ;;  %v3990_v5 = vadd.f32 -1.4531521, %v3958_v47  ;;  %v4599_v21 = vpack.c.bf16 %v8692_v13, %v8607_v27  ;;  %v9200_v27 = vld [vmem:[#allocation16_spill] sm:$0xff] }
 0xefa   : > { %v8746_v60 = vand.u32 2147483647, %v8737_v44  ;;  %v6183_v40 = vpop.eup %6182  ;;  %v8751_v55 = vmul.f32 %v4529_v25, %v8604_v51  ;;  %v4530_v43 = vadd.f32 1.0, %v4498_v49  ;;  %v4278_v48 = vmul.f32 %v4246_v38, %v8657_v35 }
 0xefb   : > { %v8756_v61 = vadd.f32 %v9199_v34, %v8139_v63  ;;  %v8758_v36 = vpop.eup %6184  ;;  %v4180_v58 = vadd.f32 0.2548296, %v4148_v33  ;;  %6190 = vpow2.f32 %v4327_v24  ;;  %v4022_v54 = vmul.f32 %v8729_v11, %v3990_v5  ;;  %4788 = vmatmul.mubr.bf16.gmra.mrb[120].mxu0 %v4599_v21 }
 0xefc   : > { %v3866_v32 = vmul.f32 0.3275911, %v8746_v60  ;;  %vm4435_vm7 = vcmp.ge.f32.partialorder %v9200_v27, 0.0  ;;  %v4085_v51 = vmul.f32 %v8699_v14, %v4053_v50  ;;  %v8765_v13 = vmul.f32 0.5, %v8651_v45 }
 0xefd   : > { %v3959_v35 = vmul.f32 1.0614054, %v8758_v36  ;;  %v8769_v4 = vmul.f32 0.70710677, %v8756_v61  ;;  %v4403_v46 = vsub.f32 1.0, %v4371_v28  ;;  %v4247_v0 = vsub.f32 0.0, %v8682_v16 }
 0xefe   : > { %v4054_v19 = vadd.f32 1.4214138, %v4022_v54  ;;  %v3898_v30 = vadd.f32 1.0, %v3866_v32  ;;  %v8773_v31 = vmul.f32 %v4530_v43, %v8611_v2  ;;  %v4329_v6 = vmul.f32 1.442695, %v4278_v48 }
 0xeff   : > { %v3991_v9 = vadd.f32 -1.4531521, %v3959_v35  ;;  %v8776_v26 = vand.u32 2147483647, %v8769_v4  ;;  %v4212_v20 = vmul.f32 %v8633_v56, %v4180_v58  ;;  %v8784_v8 = vadd.f32 %v9201_v59, %v8141_v7 }
 0xf00   : > { %v8778_v45 = vpop.eup %6186  ;;  %v4086_v53 = vmul.f32 %v8729_v11, %v4054_v19  ;;  %6192 = vrcp.f32 %v3898_v30  ;;  %v4117_v25 = vadd.f32 -0.28449672, %v4085_v51  ;;  %v4467_v22 = vsub.f32 0.0, %v4403_v46 }
 0xf01   : > { %v4023_v2 = vmul.f32 %v8758_v36, %v3991_v9  ;;  %v3960_v24 = vmul.f32 1.0614054, %v8778_v45  ;;  %v3867_v38 = vmul.f32 0.3275911, %v8776_v26  ;;  %v4279_v49 = vmul.f32 %v4247_v0, %v8682_v16 }
 0xf02   : > { %v8791_v33 = vmul.f32 0.5, %v8673_v1  ;;  %v4249_v56 = vsub.f32 0.0, %v8715_v15  ;;  %v4250_v5 = vsub.f32 0.0, %v8746_v60  ;;  %v4372_v43 = vmul.f32 %v6183_v40, %v4212_v20 }
 0xf03   : > { %v8794_v47 = vpop.eup %6188  ;;  %v4055_v50 = vadd.f32 1.4214138, %v4023_v2  ;;  %v3992_v28 = vadd.f32 -1.4531521, %v3960_v24  ;;  %v3899_v21 = vadd.f32 1.0, %v3867_v38  ;;  %v4149_v16 = vmul.f32 %v8699_v14, %v4117_v25 }
 0xf04   : > { %v4118_v48 = vadd.f32 -0.28449672, %v4086_v53  ;;  %v3961_v34 = vmul.f32 1.0614054, %v8794_v47  ;;  %v8799_v58 = vmul.f32 0.70710677, %v8784_v8  ;;  %v4499_v51 = vsel %vm4435_vm7, %v4403_v46, %v4467_v22 }
 0xf05   : > { %v4087_v1 = vmul.f32 %v8758_v36, %v4055_v50  ;;  %v4024_v54 = vmul.f32 %v8778_v45, %v3992_v28  ;;  %6194 = vrcp.f32 %v3899_v21  ;;  %v6191_v32 = vpop.eup %6190  ;;  %v4331_v35 = vmul.f32 1.442695, %v4279_v49  ;;  %v9202_v53 = vld [vmem:[#allocation19_spill] sm:$0xff] }
 0xf06   : > { %6196 = vpow2.f32 %v4329_v6  ;;  %v3993_v40 = vadd.f32 -1.4531521, %v3961_v34  ;;  %v4248_v30 = vsub.f32 0.0, %v8703_v39  ;;  %v4281_v9 = vmul.f32 %v4249_v56, %v8715_v15  ;;  %v9203_v56 = vld [vmem:[#allocation11_spill] sm:$0xff] }
 0xf07   : > { %v4119_v19 = vadd.f32 -0.28449672, %v4087_v1  ;;  %v4056_v0 = vadd.f32 1.4214138, %v4024_v54  ;;  %v4404_v20 = vsub.f32 1.0, %v4372_v43  ;;  %vm4436_vm8 = vcmp.ge.f32.partialorder %v9202_v53, 0.0 }
 0xf08   : > { %v4150_v59 = vmul.f32 %v8729_v11, %v4118_v48  ;;  %v4025_v25 = vmul.f32 %v8794_v47, %v3993_v40  ;;  %v8812_v2 = vand.u32 2147483647, %v8799_v58  ;;  %v4531_v27 = vadd.f32 1.0, %v4499_v51 }
 0xf09   : > { %v4181_v46 = vadd.f32 0.2548296, %v4149_v16  ;;  %v4151_v6 = vmul.f32 %v8758_v36, %v4119_v19  ;;  %v4282_v24 = vmul.f32 %v4250_v5, %v8746_v60  ;;  %v4088_v15 = vmul.f32 %v8778_v45, %v4056_v0 }
 0xf0a   : > { %v8816_v38 = vpop.eup %6192  ;;  %v4057_v22 = vadd.f32 1.4214138, %v4025_v25  ;;  %v3868_v49 = vmul.f32 0.3275911, %v8812_v2  ;;  %v8822_v50 = vadd.f32 %v9203_v56, %v8139_v63  ;;  %6198 = vpow2.f32 %v4331_v35 }
 0xf0b   : > { %v4280_v28 = vmul.f32 %v4248_v30, %v8703_v39  ;;  %v4335_v21 = vmul.f32 1.442695, %v4281_v9  ;;  %v3962_v43 = vmul.f32 1.0614054, %v8816_v38  ;;  %v4468_v48 = vsub.f32 0.0, %v4404_v20 }
 0xf0c   : > { %v4182_v34 = vadd.f32 0.2548296, %v4150_v59  ;;  %v4089_v60 = vmul.f32 %v8794_v47, %v4057_v22  ;;  %v3900_v5 = vadd.f32 1.0, %v3868_v49  ;;  %v4213_v16 = vmul.f32 %v8699_v14, %v4181_v46 }
 0xf0d   : > { %v4183_v1 = vadd.f32 0.2548296, %v4151_v6  ;;  %v3994_v54 = vadd.f32 -1.4531521, %v3962_v43  ;;  %v4337_v51 = vmul.f32 1.442695, %v4282_v24  ;;  %v4500_v24 = vsel %vm4436_vm8, %v4404_v20, %v4468_v48 }
 0xf0e   : > { %v4120_v40 = vadd.f32 -0.28449672, %v4088_v15  ;;  %v4121_v19 = vadd.f32 -0.28449672, %v4089_v60  ;;  %6200 = vrcp.f32 %v3900_v5  ;;  %v8829_v35 = vmul.f32 0.70710677, %v8822_v50 }
 0xf0f   : > { %v8831_v39 = vpop.eup %6194  ;;  %v4333_v0 = vmul.f32 1.442695, %v4280_v28  ;;  %6202 = vpow2.f32 %v4335_v21  ;;  %v4026_v30 = vmul.f32 %v8816_v38, %v3994_v54  ;;  %v4251_v9 = vsub.f32 0.0, %v8776_v26 }
 0xf10   : > { %v6197_v59 = vpop.eup %6196  ;;  %v4214_v14 = vmul.f32 %v8729_v11, %v4182_v34  ;;  %v4153_v25 = vmul.f32 %v8794_v47, %v4121_v19  ;;  %v3963_v46 = vmul.f32 1.0614054, %v8831_v39  ;;  %v8839_v6 = vand.u32 2147483647, %v8829_v35 }
 0xf11   : > { %v4373_v15 = vmul.f32 %v6191_v32, %v4213_v16  ;;  %v4058_v22 = vadd.f32 1.4214138, %v4026_v30  ;;  %6204 = vpow2.f32 %v4337_v51  ;;  %v4215_v49 = vmul.f32 %v8758_v36, %v4183_v1 }
 0xf12   : > { %v4152_v56 = vmul.f32 %v8778_v45, %v4120_v40  ;;  %v3995_v28 = vadd.f32 -1.4531521, %v3963_v46  ;;  %v4602_v11 = vpack.c.bf16 %v8773_v31, %v8740_v10  ;;  %6206 = vpow2.f32 %v4333_v0 }
 0xf13   : > { %v8848_v21 = vmul.f32 0.5, %v8678_v62  ;;  %v4090_v43 = vmul.f32 %v8816_v38, %v4058_v22  ;;  %v4283_v53 = vmul.f32 %v4251_v9, %v8776_v26  ;;  %v4374_v20 = vmul.f32 %v6197_v59, %v4214_v14 }
 0xf14   : > { %v4185_v32 = vadd.f32 0.2548296, %v4153_v25  ;;  %v4027_v48 = vmul.f32 %v8831_v39, %v3995_v28  ;;  %v3869_v36 = vmul.f32 0.3275911, %v8839_v6  ;;  %4795 = vmatprep.mubr.bf16.mxu0 %v4602_v11  ;;  %v6199_v34 = vpop.eup %6198  ;;  %v8855_v60 = vmul.f32 %v4531_v27, %v8631_v29  ;;  %v9204_v29 = vld [vmem:[#allocation12_spill] sm:$0xff] }
 0xf15   : > { %v4532_v10 = vadd.f32 1.0, %v4500_v24  ;;  %v4405_v31 = vsub.f32 1.0, %v4373_v15  ;;  %vm4437_vm9 = vcmp.ge.f32.partialorder %v8615_v57, 0.0  ;;  %v4122_v62 = vadd.f32 -0.28449672, %v4090_v43 }
 0xf16   : > { %v8858_v5 = vmul.f32 %v6199_v34, %v4215_v49  ;;  %v4184_v16 = vadd.f32 0.2548296, %v4152_v56  ;;  %v4059_v26 = vadd.f32 1.4214138, %v4027_v48  ;;  %v3901_v1 = vadd.f32 1.0, %v3869_v36 }
 0xf17   : > { %vm4438_vm10 = vcmp.ge.f32.partialorder %v8645_v3, 0.0  ;;  %v8862_v54 = vmul.f32 0.5, %v8727_v42  ;;  %v4154_v51 = vmul.f32 %v8816_v38, %v4122_v62  ;;  %v4339_v40 = vmul.f32 1.442695, %v4283_v53  ;;  %v9205_v62 = vld [vmem:[#allocation13_spill] sm:$0xff] }
 0xf18   : > { %v8867_v27 = vadd.f32 %v9204_v29, %v8141_v7  ;;  %v8869_v19 = vpop.eup %6200  ;;  %v4406_v0 = vsub.f32 1.0, %v4374_v20  ;;  %v4217_v30 = vmul.f32 %v8794_v47, %v4185_v32  ;;  %v4091_v9 = vmul.f32 %v8831_v39, %v4059_v26 }
 0xf19   : > { %6208 = vrcp.f32 %v3901_v1  ;;  %v6203_v59 = vpop.eup %6202  ;;  %v4186_v14 = vadd.f32 0.2548296, %v4154_v51  ;;  %v8874_v42 = vmul.f32 0.5, %v8756_v61  ;;  %v3964_v25 = vmul.f32 1.0614054, %v8869_v19 }
 0xf1a   : > { %v4252_v46 = vsub.f32 0.0, %v8812_v2  ;;  %v8879_v24 = vmul.f32 %v4532_v10, %v8654_v18  ;;  %v4469_v15 = vsub.f32 0.0, %v4405_v31  ;;  %v4407_v22 = vsub.f32 1.0, %v8858_v5 }
 0xf1b   : > { %vm4439_vm11 = vcmp.ge.f32.partialorder %v8669_v12, 0.0  ;;  %v4216_v47 = vmul.f32 %v8778_v45, %v4184_v16  ;;  %v6205_v49 = vpop.eup %6204  ;;  %v4218_v56 = vmul.f32 %v8816_v38, %v4186_v14  ;;  %v4123_v28 = vadd.f32 -0.28449672, %v4091_v9 }
 0xf1c   : > { %v3996_v61 = vadd.f32 -1.4531521, %v3964_v25  ;;  %v8886_v11 = vmul.f32 0.70710677, %v8867_v27  ;;  %v4470_v43 = vsub.f32 0.0, %v4406_v0  ;;  %v4377_v53 = vmul.f32 %v6203_v59, %v4217_v30  ;;  %v6207_v20 = vpop.eup %6206  ;;  %v9206_v30 = vld [vmem:[#allocation14_spill] sm:$0xff] }
 0xf1d   : > { %6210 = vpow2.f32 %v4339_v40  ;;  %v4601_v18 = vpack.c.bf16 %v8751_v55, %v8720_v41  ;;  %v4378_v32 = vmul.f32 %v6205_v49, %v4218_v56  ;;  %v4284_v45 = vmul.f32 %v4252_v46, %v8812_v2 }
 0xf1e   : > { %v4028_v48 = vmul.f32 %v8869_v19, %v3996_v61  ;;  %v3838_v36 = vand.u32 2147483647, %v8886_v11  ;;  %v4501_v38 = vsel %vm4437_vm9, %v4405_v31, %v4469_v15  ;;  %v4376_v34 = vmul.f32 %v6207_v20, %v4216_v47 }
 0xf1f   : > { %v4253_v10 = vsub.f32 0.0, %v8839_v6  ;;  %4796 = vmatmul.mubr.bf16.gmra.mrb[124].mxu0 %v4601_v18  ;;  %v8898_v5 = vadd.f32 %v9205_v62, %v8139_v63  ;;  %v4471_v41 = vsub.f32 0.0, %v4407_v22  ;;  %v4155_v55 = vmul.f32 %v8831_v39, %v4123_v28 }
 0xf20   : > { %v4060_v16 = vadd.f32 1.4214138, %v4028_v48  ;;  %v3870_v26 = vmul.f32 0.3275911, %v3838_v36  ;;  %v4502_v2 = vsel %vm4438_vm10, %v4406_v0, %v4470_v43  ;;  %v4409_v1 = vsub.f32 1.0, %v4377_v53 }
 0xf21   : > { %vm4441_vm12 = vcmp.ge.f32.partialorder %v8697_v37, 0.0  ;;  %v4410_v57 = vsub.f32 1.0, %v4378_v32  ;;  %vm4442_vm13 = vcmp.ge.f32.partialorder %v8737_v44, 0.0  ;;  %v8906_v31 = vmul.f32 0.70710677, %v8898_v5 }
 0xf22   : > { %v4092_v51 = vmul.f32 %v8869_v19, %v4060_v16  ;;  %v4341_v40 = vmul.f32 1.442695, %v4284_v45  ;;  %v3902_v29 = vadd.f32 1.0, %v3870_v26  ;;  %v8911_v9 = vadd.f32 %v9206_v30, %v8141_v7 }
 0xf23   : > { %v8913_v59 = vpop.eup %6208  ;;  %v4533_v3 = vadd.f32 1.0, %v4501_v38  ;;  %v4408_v0 = vsub.f32 1.0, %v4376_v34  ;;  %vm4440_vm14 = vcmp.ge.f32.partialorder %v8689_v17, 0.0  ;;  %v4285_v14 = vmul.f32 %v4253_v10, %v8839_v6 }
 0xf24   : > { %v8918_v25 = vand.u32 2147483647, %v8906_v31  ;;  %v4503_v46 = vsel %vm4439_vm11, %v4407_v22, %v4471_v41  ;;  %v4187_v15 = vadd.f32 0.2548296, %v4155_v55  ;;  %v3965_v47 = vmul.f32 1.0614054, %v8913_v59 }
 0xf25   : > { %6212 = vrcp.f32 %v3902_v29  ;;  %v4534_v49 = vadd.f32 1.0, %v4502_v2  ;;  %v4473_v56 = vsub.f32 0.0, %v4409_v1  ;;  %v4474_v28 = vsub.f32 0.0, %v4410_v57  ;;  %v9207_v41 = vld [vmem:[#allocation15_spill] sm:$0xff] }
 0xf26   : > { %v3871_v61 = vmul.f32 0.3275911, %v8918_v25  ;;  %v4124_v43 = vadd.f32 -0.28449672, %v4092_v51  ;;  %6214 = vpow2.f32 %v4341_v40  ;;  %v3997_v53 = vadd.f32 -1.4531521, %v3965_v47 }
 0xf27   : > { %v8925_v6 = vmul.f32 0.70710677, %v8911_v9  ;;  %v6211_v18 = vpop.eup %6210  ;;  %v4535_v20 = vadd.f32 1.0, %v4503_v46  ;;  %v4472_v32 = vsub.f32 0.0, %v4408_v0  ;;  %v4343_v12 = vmul.f32 1.442695, %v4285_v14 }
 0xf28   : > { %v3903_v22 = vadd.f32 1.0, %v3871_v61  ;;  %v4219_v48 = vmul.f32 %v8831_v39, %v4187_v15  ;;  %v4029_v45 = vmul.f32 %v8913_v59, %v3997_v53  ;;  %v4254_v38 = vsub.f32 0.0, %v3838_v36  ;;  %v9208_v46 = vld [vmem:[#allocation17_spill] sm:$0xff] }
 0xf29   : > { %v8930_v34 = vand.u32 2147483647, %v8925_v6  ;;  %v4565_v10 = vmul.f32 %v4533_v3, %v8711_v23  ;;  %v4566_v62 = vmul.f32 %v4534_v49, %v8743_v52  ;;  %v8936_v55 = vadd.f32 %v9207_v41, %v8139_v63 }
 0xf2a   : > { %6216 = vrcp.f32 %v3903_v22  ;;  %v4505_v16 = vsel %vm4441_vm12, %v4409_v1, %v4473_v56  ;;  %v4506_v39 = vsel %vm4442_vm13, %v4410_v57, %v4474_v28  ;;  %v4156_v26 = vmul.f32 %v8869_v19, %v4124_v43 }
 0xf2b   : > { %v4061_v2 = vadd.f32 1.4214138, %v4029_v45  ;;  %v8944_v51 = vmul.f32 %v4535_v20, %v8765_v13  ;;  %6218 = vpow2.f32 %v4343_v12  ;;  %v3872_v23 = vmul.f32 0.3275911, %v8930_v34 }
 0xf2c   : > { %v8948_v52 = vmul.f32 0.70710677, %v8936_v55  ;;  %v4504_v63 = vsel %vm4440_vm14, %v4408_v0, %v4472_v32  ;;  %v4379_v37 = vmul.f32 %v6211_v18, %v4219_v48  ;;  %v4286_v44 = vmul.f32 %v4254_v38, %v3838_v36 }
 0xf2d   : > { %v4093_v1 = vmul.f32 %v8913_v59, %v4061_v2  ;;  %v4537_v57 = vadd.f32 1.0, %v4505_v16  ;;  %v4538_v40 = vadd.f32 1.0, %v4506_v39  ;;  %v3904_v29 = vadd.f32 1.0, %v3872_v23 }
 0xf2e   : > { %v8954_v30 = vand.u32 2147483647, %v8948_v52  ;;  %v4188_v3 = vadd.f32 0.2548296, %v4156_v26  ;;  %v8960_v15 = vadd.f32 %v9208_v46, %v8141_v7  ;;  %v4604_v17 = vpack.c.bf16 %v4566_v62, %v8879_v24 }
 0xf2f   : > { %v8956_v13 = vpop.eup %6212  ;;  %v4125_v14 = vadd.f32 -0.28449672, %v4093_v1  ;;  %vm4443_vm15 = vcmp.ge.f32.partialorder %v8769_v4, 0.0  ;;  %v4255_v0 = vsub.f32 0.0, %v8918_v25  ;;  %6220 = vrcp.f32 %v3904_v29 }
 0xf30   : > { %v3966_v36 = vmul.f32 1.0614054, %v8956_v13  ;;  %v3873_v47 = vmul.f32 0.3275911, %v8954_v30  ;;  %v6215_v49 = vpop.eup %6214  ;;  %v4536_v56 = vadd.f32 1.0, %v4504_v63  ;;  %v4411_v28 = vsub.f32 1.0, %v4379_v37  ;;  %4803 = vmatprep.mubr.bf16.mxu0 %v4604_v17 }
 0xf31   : > { %v4157_v61 = vmul.f32 %v8913_v59, %v4125_v14  ;;  %v4345_v43 = vmul.f32 1.442695, %v4286_v44  ;;  %v8969_v7 = vmul.f32 %v4537_v57, %v8848_v21  ;;  %v8972_v18 = vmul.f32 0.70710677, %v8960_v15 }
 0xf32   : > { %v3998_v24 = vadd.f32 -1.4531521, %v3966_v36  ;;  %v3905_v53 = vadd.f32 1.0, %v3873_v47  ;;  %v4570_v20 = vmul.f32 %v4538_v40, %v8862_v54  ;;  %v4220_v32 = vmul.f32 %v8869_v19, %v4188_v3 }
 0xf33   : > { %v4189_v12 = vadd.f32 0.2548296, %v4157_v61  ;;  %v4603_v22 = vpack.c.bf16 %v4565_v10, %v8855_v60  ;;  %v4287_v38 = vmul.f32 %v4255_v0, %v8918_v25  ;;  %v8982_v21 = vand.u32 2147483647, %v8972_v18 }
 0xf34   : > { %v8977_v48 = vpop.eup %6216  ;;  %v4030_v45 = vmul.f32 %v8956_v13, %v3998_v24  ;;  %6222 = vrcp.f32 %v3905_v53  ;;  %v4568_v62 = vmul.f32 %v4536_v56, %v8791_v33  ;;  %v4475_v41 = vsub.f32 0.0, %v4411_v28 }
 0xf35   : > { %v4221_v54 = vmul.f32 %v8913_v59, %v4189_v12  ;;  %v3967_v19 = vmul.f32 1.0614054, %v8977_v48  ;;  %4804 = vmatmul.mubr.bf16.gmra.mrb[128].mxu0 %v4603_v22  ;;  %v6219_v16 = vpop.eup %6218  ;;  %6224 = vpow2.f32 %v4345_v43  ;;  %v4256_v10 = vsub.f32 0.0, %v8930_v34 }
 0xf36   : > { %v4062_v60 = vadd.f32 1.4214138, %v4030_v45  ;;  %v3874_v39 = vmul.f32 0.3275911, %v8982_v21  ;;  %v8989_v25 = vmul.f32 %v6215_v49, %v4220_v32  ;;  %v4606_v23 = vpack.c.bf16 %v4570_v20, %v4568_v62 }
 0xf37   : > { %v4381_v26 = vmul.f32 %v6219_v16, %v4221_v54  ;;  %v3999_v2 = vadd.f32 -1.4531521, %v3967_v19  ;;  %v4347_v63 = vmul.f32 1.442695, %v4287_v38  ;;  %v4605_v59 = vpack.c.bf16 %v8969_v7, %v8944_v51 }
 0xf38   : > { %v4094_v33 = vmul.f32 %v8956_v13, %v4062_v60  ;;  %v3906_v37 = vadd.f32 1.0, %v3874_v39  ;;  %v4507_v1 = vsel %vm4443_vm15, %v4411_v28, %v4475_v41  ;;  %4811 = vmatprep.mubr.bf16.mxu0 %v4606_v23  ;;  %v4288_v3 = vmul.f32 %v4256_v10, %v8930_v34 }
 0xf39   : > { %v4413_v44 = vsub.f32 1.0, %v4381_v26  ;;  %v4031_v57 = vmul.f32 %v8977_v48, %v3999_v2  ;;  %v8997_v40 = vpop.eup %6220  ;;  %v4257_v14 = vsub.f32 0.0, %v8954_v30  ;;  %v6293_v46 = vmov 0.0  }
 0xf3a   : > { %v4126_v29 = vadd.f32 -0.28449672, %v4094_v33  ;;  %6226 = vrcp.f32 %v3906_v37  ;;  %3525 = vst.msk [vmem:[#allocation4] sm:$0xff] %vm512_vm0, %v6293_v46  ;;  %3526 = vst.msk [vmem:[#allocation4 + $0x8] sm:$0xff] %vm512_vm0, %v6293_v46  ;;  %v4412_v4 = vsub.f32 1.0, %v8989_v25  ;;  %v4539_v36 = vadd.f32 1.0, %v4507_v1 }
 0xf3b   : > { %3527 = vst.msk [vmem:[#allocation4 + $0x10] sm:$0xff] %vm512_vm0, %v6293_v46  ;;  %3528 = vst.msk [vmem:[#allocation4 + $0x18] sm:$0xff] %vm512_vm0, %v6293_v46  ;;  %v4477_v34 = vsub.f32 0.0, %v4413_v44  ;;  %v4063_v51 = vadd.f32 1.4214138, %v4031_v57  ;;  %vm4445_vm1 = vcmp.ge.f32.partialorder %v8829_v35, 0.0  ;;  %6228 = vpow2.f32 %v4347_v63 }
 0xf3c   : > { %3529 = vst.msk [vmem:[#allocation4 + $0x20] sm:$0xff] %vm512_vm0, %v6293_v46  ;;  %3530 = vst.msk [vmem:[#allocation4 + $0x28] sm:$0xff] %vm512_vm0, %v6293_v46  ;;  %v3968_v17 = vmul.f32 1.0614054, %v8997_v40  ;;  %v4158_v0 = vmul.f32 %v8956_v13, %v4126_v29  ;;  %v3773_v47 = vmul.f32 0.5, %v8822_v50  ;;  %v4289_v53 = vmul.f32 %v4257_v14, %v8954_v30 }
 0xf3d   : > { %3531 = vst.msk [vmem:[#allocation4 + $0x30] sm:$0xff] %vm512_vm0, %v6293_v46  ;;  %3532 = vst.msk [vmem:[#allocation4 + $0x38] sm:$0xff] %vm512_vm0, %v6293_v46  ;;  %v4509_v49 = vsel %vm4445_vm1, %v4413_v44, %v4477_v34  ;;  %v4095_v56 = vmul.f32 %v8977_v48, %v4063_v51  ;;  %4812 = vmatmul.mubr.bf16.gmra.mrb[132].mxu0 %v4605_v59  ;;  %v4349_v24 = vmul.f32 1.442695, %v4288_v3  ;;  %v4476_v20 = vsub.f32 0.0, %v4412_v4 }
 0xf3e   : > { %3533 = vst.msk [vmem:[#allocation4 + $0x40] sm:$0xff] %vm512_vm0, %v6293_v46  ;;  %3534 = vst.msk [vmem:[#allocation4 + $0x48] sm:$0xff] %vm512_vm0, %v6293_v46  ;;  %v4000_v28 = vadd.f32 -1.4531521, %v3968_v17  ;;  %v9023_v61 = vpop.eup %6222  ;;  %v4541_v43 = vadd.f32 1.0, %v4509_v49  ;;  %v4571_v50 = vmul.f32 %v4539_v36, %v8874_v42  ;;  %v4258_v62 = vsub.f32 0.0, %v8982_v21 }
 0xf3f   : > { %3535 = vst.msk [vmem:[#allocation4 + $0x50] sm:$0xff] %vm512_vm0, %v6293_v46  ;;  %3536 = vst.msk [vmem:[#allocation4 + $0x58] sm:$0xff] %vm512_vm0, %v6293_v46  ;;  %v4190_v7 = vadd.f32 0.2548296, %v4158_v0  ;;  %v4127_v32 = vadd.f32 -0.28449672, %v4095_v56  ;;  %v6225_v22 = vpop.eup %6224  ;;  %6230 = vpow2.f32 %v4349_v24 }
 0xf40   : > { %3537 = vst.msk [vmem:[#allocation4 + $0x60] sm:$0xff] %vm512_vm0, %v6293_v46  ;;  %3538 = vst.msk [vmem:[#allocation4 + $0x68] sm:$0xff] %vm512_vm0, %v6293_v46  ;;  %v4032_v35 = vmul.f32 %v8997_v40, %v4000_v28  ;;  %v3969_v12 = vmul.f32 1.0614054, %v9023_v61  ;;  %v4573_v45 = vmul.f32 %v4541_v43, %v3773_v47  ;;  %vm4444_vm2 = vcmp.ge.f32.partialorder %v8799_v58, 0.0 }
 0xf41   : > { %3539 = vst.msk [vmem:[#allocation4 + $0x70] sm:$0xff] %vm512_vm0, %v6293_v46  ;;  %3540 = vst.msk [vmem:[#allocation4 + $0x78] sm:$0xff] %vm512_vm0, %v6293_v46  ;;  %v4222_v38 = vmul.f32 %v8956_v13, %v4190_v7  ;;  %v4159_v41 = vmul.f32 %v8977_v48, %v4127_v32  ;;  %v4351_v16 = vmul.f32 1.442695, %v4289_v53  ;;  %v4508_v10 = vsel %vm4444_vm2, %v4412_v4, %v4476_v20 }
 0xf42   : > { %v4064_v54 = vadd.f32 1.4214138, %v4032_v35  ;;  %v4001_v30 = vadd.f32 -1.4531521, %v3969_v12  ;;  %v4607_v60 = vpack.c.bf16 %v4573_v45, %v4571_v50  ;;  %v4290_v2 = vmul.f32 %v4258_v62, %v8982_v21 }
 0xf43   : > { %v4382_v19 = vmul.f32 %v6225_v22, %v4222_v38  ;;  %v4191_v39 = vadd.f32 0.2548296, %v4159_v41  ;;  %v4540_v59 = vadd.f32 1.0, %v4508_v10  ;;  %vm4446_vm3 = vcmp.ge.f32.partialorder %v8886_v11, 0.0 }
 0xf44   : > { %v4096_v25 = vmul.f32 %v8997_v40, %v4064_v54  ;;  %v4033_v42 = vmul.f32 %v9023_v61, %v4001_v30  ;;  %v6227_v26 = vpop.eup %6226  ;;  %6232 = vpow2.f32 %v4351_v16  ;;  %v3772_v14 = vmul.f32 0.5, %v8784_v8 }
 0xf45   : > { %v4414_v13 = vsub.f32 1.0, %v4382_v19  ;;  %v4223_v58 = vmul.f32 %v8977_v48, %v4191_v39  ;;  %v3970_v63 = vmul.f32 1.0614054, %v6227_v26  ;;  %v6229_v37 = vpop.eup %6228  ;;  %v4353_v46 = vmul.f32 1.442695, %v4290_v2 }
 0xf46   : > { %v4128_v23 = vadd.f32 -0.28449672, %v4096_v25  ;;  %v4065_v33 = vadd.f32 1.4214138, %v4033_v42  ;;  %v3774_v48 = vmul.f32 0.5, %v8867_v27  ;;  %v4572_v17 = vmul.f32 %v4540_v59, %v3772_v14 }
 0xf47   : > { %v4478_v1 = vsub.f32 0.0, %v4414_v13  ;;  %v4383_v44 = vmul.f32 %v6229_v37, %v4223_v58  ;;  %v4002_v3 = vadd.f32 -1.4531521, %v3970_v63  ;;  %6234 = vpow2.f32 %v4353_v46  ;;  %v4579_v37 = vld [vmem:[#allocation4] sm:$0xff] }
 0xf48   : > { %v4160_v57 = vmul.f32 %v8997_v40, %v4128_v23  ;;  %v4097_v29 = vmul.f32 %v9023_v61, %v4065_v33  ;;  %vm4447_vm4 = vcmp.ge.f32.partialorder %v8906_v31, 0.0  ;;  %vm4449_vm5 = vcmp.ge.f32.partialorder %v8948_v52, 0.0 }
 0xf49   : > { %v4510_v21 = vsel %vm4446_vm3, %v4414_v13, %v4478_v1  ;;  %v4034_v36 = vmul.f32 %v6227_v26, %v4002_v3  ;;  %v4415_v0 = vsub.f32 1.0, %v4383_v44  ;;  %v6231_v56 = vpop.eup %6230  ;;  %v3775_v19 = vmul.f32 0.5, %v8898_v5 }
 0xf4a   : > { %v4542_v4 = vadd.f32 1.0, %v4510_v21  ;;  %v4192_v34 = vadd.f32 0.2548296, %v4160_v57  ;;  %v4129_v51 = vadd.f32 -0.28449672, %v4097_v29  ;;  %v3777_v16 = vmul.f32 0.5, %v8936_v55 }
 0xf4b   : > { %v4066_v28 = vadd.f32 1.4214138, %v4034_v36  ;;  %v4479_v53 = vsub.f32 0.0, %v4415_v0  ;;  %vm4448_vm6 = vcmp.ge.f32.partialorder %v8925_v6, 0.0  ;;  %vm4450_vm7 = vcmp.ge.f32.partialorder %v8972_v18, 0.0  ;;  %v4580_v57 = vld [vmem:[#allocation4 + $0x8] sm:$0xff] }
 0xf4c   : > { %v4574_v11 = vmul.f32 %v4542_v4, %v3774_v48  ;;  %v4224_v47 = vmul.f32 %v8997_v40, %v4192_v34  ;;  %v4161_v49 = vmul.f32 %v9023_v61, %v4129_v51  ;;  %v3778_v5 = vmul.f32 0.5, %v8960_v15  ;;  %v4871_v15 = vld [vmem:[#allocation2] sm:$0xff]  ;;  %v4872_v48 = vld [vmem:[#allocation2 + $0x8] sm:$0xff] }
 0xf4d   : > { %v4098_v24 = vmul.f32 %v6227_v26, %v4066_v28  ;;  %v4511_v22 = vsel %vm4447_vm4, %v4415_v0, %v4479_v53  ;;  %v9058_v21 = vld [vmem:[%s9149_s11] ss:$0 sm:$0xff] }
 0xf4e   : > { %v4193_v43 = vadd.f32 0.2548296, %v4161_v49  ;;  %v4608_v8 = vpack.c.bf16 %v4574_v11, %v4572_v17  ;;  %v4384_v7 = vmul.f32 %v6231_v56, %v4224_v47  ;;  %v6233_v20 = vpop.eup %6232  ;;  %v4543_v62 = vadd.f32 1.0, %v4511_v22  ;;  %v4581_v11 = vld [vmem:[#allocation4 + $0x10] sm:$0xff]  ;;  %v4582_v56 = vld [vmem:[#allocation4 + $0x18] sm:$0xff] }
 0xf4f   : > { %v4130_v32 = vadd.f32 -0.28449672, %v4098_v24  ;;  %v4873_v24 = vld [vmem:[#allocation2 + $0x10] sm:$0xff] }
 0xf50   : > { %v4225_v27 = vmul.f32 %v9023_v61, %v4193_v43  ;;  %4819 = vmatprep.mubr.bf16.mxu0 %v4608_v8  ;;  %v4416_v40 = vsub.f32 1.0, %v4384_v7  ;;  %v4575_v31 = vmul.f32 %v4543_v62, %v3775_v19 }
 0xf51   : > { %4820 = vmatmul.mubr.bf16.gmra.mrb[136].mxu0 %v4607_v60  ;;  %v4162_v12 = vmul.f32 %v6227_v26, %v4130_v32  ;;  %v6235_v30 = vpop.eup %6234 }
 0xf52   : > { %v4385_v35 = vmul.f32 %v6233_v20, %v4225_v27  ;;  %v4480_v41 = vsub.f32 0.0, %v4416_v40  ;;  %v4874_v20 = vld [vmem:[#allocation2 + $0x18] sm:$0xff] }
 0xf53   : > { %v4194_v45 = vadd.f32 0.2548296, %v4162_v12 }
 0xf54   : > { %v4417_v50 = vsub.f32 1.0, %v4385_v35  ;;  %v4512_v39 = vsel %vm4448_vm6, %v4416_v40, %v4480_v41  ;;  %v4584_v41 = vld [vmem:[#allocation4 + $0x28] sm:$0xff] }
 0xf55   : > { %v4226_v54 = vmul.f32 %v6227_v26, %v4194_v45  ;;  %v4544_v58 = vadd.f32 1.0, %v4512_v39  ;;  %v3776_v26 = vmul.f32 0.5, %v8911_v9 }
 0xf56   : > { %v4481_v38 = vsub.f32 0.0, %v4417_v50 }
 0xf57   : > { %v4386_v10 = vmul.f32 %v6235_v30, %v4226_v54  ;;  %v4576_v55 = vmul.f32 %v4544_v58, %v3776_v26  ;;  %v4585_v58 = vld [vmem:[#allocation4 + $0x30] sm:$0xff] }
 0xf58   : > { %v4513_v61 = vsel %vm4449_vm5, %v4417_v50, %v4481_v38  ;;  %v4583_v50 = vld [vmem:[#allocation4 + $0x20] sm:$0xff] }
 0xf59   : > { %v4545_v60 = vadd.f32 1.0, %v4513_v61  ;;  %v4418_v42 = vsub.f32 1.0, %v4386_v10 }
 0xf5b   : > { %v4577_v25 = vmul.f32 %v4545_v60, %v3777_v16  ;;  %v4482_v2 = vsub.f32 0.0, %v4418_v42  ;;  %v4875_v16 = vld [vmem:[#allocation2 + $0x20] sm:$0xff] }
 0xf5d   : > { %v4609_v13 = vpack.c.bf16 %v4577_v25, %v4575_v31  ;;  %v4514_v52 = vsel %vm4450_vm7, %v4418_v42, %v4482_v2  ;;  %v4876_v31 = vld [vmem:[#allocation2 + $0x28] sm:$0xff] }
 0xf5e   : > { %v4546_v23 = vadd.f32 1.0, %v4514_v52 }
 0xf60   : > { %v4578_v33 = vmul.f32 %v4546_v23, %v3778_v5  ;;  %v4586_v23 = vld [vmem:[#allocation4 + $0x38] sm:$0xff] }
 0xf62   : > { %v4610_v63 = vpack.c.bf16 %v4578_v33, %v4576_v55 }
 0xf64   : > { %4827 = vmatprep.mubr.bf16.mxu1 %v4610_v63 }
 0xf65   : > { %4828 = vmatmul.mubr.bf16.vlgmr.msra.gmra.mrb[96].mxu1 %v4609_v13 }
 0xf93   : > { %v5334_v6 = vpop.f32.mrb[112].mxu0 }
 0xf94   : > { %v5335_v59 = vpop.f32.mrb[113].mxu0 }
 0xf95   : > { %v5336_v1 = vadd.f32 %v5335_v59, %v5334_v6  ;;  %v5337_v44 = vpop.f32.mrb[114].mxu0 }
 0xf96   : > { %v5338_v29 = vpop.f32.mrb[115].mxu0 }
 0xf97   : > { %v4836_v18 = vadd.f32 %v5336_v1, %v4579_v37  ;;  %v5339_v3 = vadd.f32 %v5338_v29, %v5337_v44  ;;  %v4877_v37 = vld [vmem:[#allocation2 + $0x30] sm:$0xff]  ;;  %v4878_v44 = vld [vmem:[#allocation2 + $0x38] sm:$0xff] }
 0xf99   : > { %4852 = vst.msk [vmem:[#allocation4] sm:$0xff] %vm512_vm0, %v4836_v18  ;;  %v4837_v9 = vadd.f32 %v5339_v3, %v4580_v57 }
 0xf9b   : > { %4853 = vst.msk [vmem:[#allocation4 + $0x8] sm:$0xff] %vm512_vm0, %v4837_v9 }
 0xfa0   : > { %v4887_v14 = vld [vmem:[#allocation4] sm:$0xff] }
 0xfa1   : > { %v4903_v46 = vadd.f32 %v4887_v14, %v4871_v15  ;;  %v4587_v15 = vld [vmem:[#allocation4 + $0x40] sm:$0xff] }
 0xfa2   : > { %v4888_v4 = vld [vmem:[#allocation4 + $0x8] sm:$0xff] }
 0xfa3   : > { %v4926_v34 = vadd.f32 %v9058_v21, %v4903_v46  ;;  %v4904_v51 = vadd.f32 %v4888_v4, %v4872_v48  ;;  %v4588_v4 = vld [vmem:[#allocation4 + $0x48] sm:$0xff] }
 0xfa5   : > { %4942 = vst.msk [vmem:[%s9065_s17] sm:$0xff] %vm512_vm0, %v4926_v34  ;;  %v4927_v17 = vadd.f32 %v9058_v21, %v4904_v51 }
 0xfa7   : > { %4943 = vst.msk [vmem:[%s9065_s17 + $0x8] sm:$0xff] %vm512_vm0, %v4927_v17 }
 0xfb5   : > { %v5340_v36 = vpop.f32.mrb[116].mxu0 }
 0xfb6   : > { %v5341_v0 = vpop.f32.mrb[117].mxu0 }
 0xfb7   : > { %v5342_v47 = vadd.f32 %v5341_v0, %v5340_v36  ;;  %v5343_v49 = vpop.f32.mrb[118].mxu0  ;;  %v4589_v0 = vld [vmem:[#allocation4 + $0x50] sm:$0xff] }
 0xfb8   : > { %v5344_v28 = vpop.f32.mrb[119].mxu0 }
 0xfb9   : > { %v4838_v43 = vadd.f32 %v5342_v47, %v4581_v11  ;;  %v5345_v8 = vadd.f32 %v5344_v28, %v5343_v49  ;;  %v4590_v28 = vld [vmem:[#allocation4 + $0x58] sm:$0xff] }
 0xfbb   : > { %4854 = vst.msk [vmem:[#allocation4 + $0x10] sm:$0xff] %vm512_vm0, %v4838_v43  ;;  %v4839_v7 = vadd.f32 %v5345_v8, %v4582_v56 }
 0xfbd   : > { %4855 = vst.msk [vmem:[#allocation4 + $0x18] sm:$0xff] %vm512_vm0, %v4839_v7 }
 0xfc2   : > { %v4889_v53 = vld [vmem:[#allocation4 + $0x10] sm:$0xff] }
 0xfc3   : > { %v4905_v27 = vadd.f32 %v4889_v53, %v4873_v24  ;;  %v4879_v24 = vld [vmem:[#allocation2 + $0x40] sm:$0xff] }
 0xfc4   : > { %v4890_v32 = vld [vmem:[#allocation4 + $0x18] sm:$0xff] }
 0xfc5   : > { %v4928_v35 = vadd.f32 %v9058_v21, %v4905_v27  ;;  %v4906_v40 = vadd.f32 %v4890_v32, %v4874_v20  ;;  %v4880_v32 = vld [vmem:[#allocation2 + $0x48] sm:$0xff] }
 0xfc7   : > { %4944 = vst.msk [vmem:[%s9065_s17 + $0x10] sm:$0xff] %vm512_vm0, %v4928_v35  ;;  %v4929_v12 = vadd.f32 %v9058_v21, %v4906_v40 }
 0xfc9   : > { %4945 = vst.msk [vmem:[%s9065_s17 + $0x18] sm:$0xff] %vm512_vm0, %v4929_v12 }
 0xfce   : > { %v5346_v22 = vpop.f32.mrb[120].mxu0 }
 0xfcf   : > { %v5347_v45 = vpop.f32.mrb[121].mxu0 }
 0xfd0   : > { %v5348_v38 = vadd.f32 %v5347_v45, %v5346_v22  ;;  %v5349_v62 = vpop.f32.mrb[122].mxu0 }
 0xfd1   : > { %v5350_v54 = vpop.f32.mrb[123].mxu0 }
 0xfd2   : > { %v4840_v30 = vadd.f32 %v5348_v38, %v4583_v50  ;;  %v5351_v61 = vadd.f32 %v5350_v54, %v5349_v62  ;;  %v4881_v50 = vld [vmem:[#allocation2 + $0x50] sm:$0xff]  ;;  %v4882_v62 = vld [vmem:[#allocation2 + $0x58] sm:$0xff] }
 0xfd4   : > { %4856 = vst.msk [vmem:[#allocation4 + $0x20] sm:$0xff] %vm512_vm0, %v4840_v30  ;;  %v4841_v19 = vadd.f32 %v5351_v61, %v4584_v41 }
 0xfd6   : > { %4857 = vst.msk [vmem:[#allocation4 + $0x28] sm:$0xff] %vm512_vm0, %v4841_v19 }
 0xfdb   : > { %v4891_v60 = vld [vmem:[#allocation4 + $0x20] sm:$0xff] }
 0xfdc   : > { %v4907_v10 = vadd.f32 %v4891_v60, %v4875_v16  ;;  %v4591_v16 = vld [vmem:[#allocation4 + $0x60] sm:$0xff] }
 0xfdd   : > { %v4892_v39 = vld [vmem:[#allocation4 + $0x28] sm:$0xff] }
 0xfde   : > { %v4930_v25 = vadd.f32 %v9058_v21, %v4907_v10  ;;  %v4908_v42 = vadd.f32 %v4892_v39, %v4876_v31  ;;  %v4592_v39 = vld [vmem:[#allocation4 + $0x68] sm:$0xff] }
 0xfe0   : > { %4946 = vst.msk [vmem:[%s9065_s17 + $0x20] sm:$0xff] %vm512_vm0, %v4930_v25  ;;  %v4931_v13 = vadd.f32 %v9058_v21, %v4908_v42 }
 0xfe2   : > { %4947 = vst.msk [vmem:[%s9065_s17 + $0x28] sm:$0xff] %vm512_vm0, %v4931_v13 }
 0xff2   : > { %v5352_v2 = vpop.f32.mrb[124].mxu0 }
 0xff3   : > { %v5353_v52 = vpop.f32.mrb[125].mxu0 }
 0xff4   : > { %v5354_v26 = vadd.f32 %v5353_v52, %v5352_v2  ;;  %v5355_v5 = vpop.f32.mrb[126].mxu0 }
 0xff5   : > { %v5356_v55 = vpop.f32.mrb[127].mxu0 }
 0xff6   : > { %v4842_v33 = vadd.f32 %v5354_v26, %v4585_v58  ;;  %v5357_v63 = vadd.f32 %v5356_v55, %v5355_v5  ;;  %v4883_v58 = vld [vmem:[#allocation2 + $0x60] sm:$0xff]  ;;  %v4884_v5 = vld [vmem:[#allocation2 + $0x68] sm:$0xff] }
 0xff8   : > { %4858 = vst.msk [vmem:[#allocation4 + $0x30] sm:$0xff] %vm512_vm0, %v4842_v33  ;;  %v4843_v6 = vadd.f32 %v5357_v63, %v4586_v23 }
 0xffa   : > { %4859 = vst.msk [vmem:[#allocation4 + $0x38] sm:$0xff] %vm512_vm0, %v4843_v6 }
 0xfff   : > { %v4893_v59 = vld [vmem:[#allocation4 + $0x30] sm:$0xff] }
0x1000   : > { %v4909_v1 = vadd.f32 %v4893_v59, %v4877_v37  ;;  %v4593_v37 = vld [vmem:[#allocation4 + $0x70] sm:$0xff] }
0x1001   : > { %v4894_v57 = vld [vmem:[#allocation4 + $0x38] sm:$0xff] }
0x1002   : > { %v4932_v29 = vadd.f32 %v9058_v21, %v4909_v1  ;;  %v4910_v18 = vadd.f32 %v4894_v57, %v4878_v44  ;;  %v4594_v57 = vld [vmem:[#allocation4 + $0x78] sm:$0xff] }
0x1004   : > { %4948 = vst.msk [vmem:[%s9065_s17 + $0x30] sm:$0xff] %vm512_vm0, %v4932_v29  ;;  %v4933_v3 = vadd.f32 %v9058_v21, %v4910_v18 }
0x1006   : > { %4949 = vst.msk [vmem:[%s9065_s17 + $0x38] sm:$0xff] %vm512_vm0, %v4933_v3 }
0x1008   : > { %v5358_v9 = vpop.f32.mrb[128].mxu0 }
0x1009   : > { %v5359_v14 = vpop.f32.mrb[129].mxu0 }
0x100a   : > { %v5360_v46 = vadd.f32 %v5359_v14, %v5358_v9  ;;  %v5361_v48 = vpop.f32.mrb[130].mxu0 }
0x100b   : > { %v5362_v34 = vpop.f32.mrb[131].mxu0 }
0x100c   : > { %v4844_v51 = vadd.f32 %v5360_v46, %v4587_v15  ;;  %v5363_v17 = vadd.f32 %v5362_v34, %v5361_v48  ;;  %v4885_v15 = vld [vmem:[#allocation2 + $0x70] sm:$0xff]  ;;  %v4886_v48 = vld [vmem:[#allocation2 + $0x78] sm:$0xff] }
0x100e   : > { %4860 = vst.msk [vmem:[#allocation4 + $0x40] sm:$0xff] %vm512_vm0, %v4844_v51  ;;  %v4845_v36 = vadd.f32 %v5363_v17, %v4588_v4 }
0x1010   : > { %4861 = vst.msk [vmem:[#allocation4 + $0x48] sm:$0xff] %vm512_vm0, %v4845_v36  ;;  %v5364_v11 = vpop.f32.mrb[132].mxu0 }
0x1011   : > { %v5365_v47 = vpop.f32.mrb[133].mxu0 }
0x1012   : > { %v5366_v49 = vadd.f32 %v5365_v47, %v5364_v11  ;;  %v5367_v56 = vpop.f32.mrb[134].mxu0 }
0x1013   : > { %v5368_v43 = vpop.f32.mrb[135].mxu0 }
0x1014   : > { %v4846_v8 = vadd.f32 %v5366_v49, %v4589_v0  ;;  %v5369_v7 = vadd.f32 %v5368_v43, %v5367_v56 }
0x1015   : > { %v4895_v53 = vld [vmem:[#allocation4 + $0x40] sm:$0xff] }
0x1016   : > { %v4911_v27 = vadd.f32 %v4895_v53, %v4879_v24  ;;  %4862 = vst.msk [vmem:[#allocation4 + $0x50] sm:$0xff] %vm512_vm0, %v4846_v8  ;;  %v4847_v20 = vadd.f32 %v5369_v7, %v4590_v28 }
0x1017   : > { %v4896_v35 = vld [vmem:[#allocation4 + $0x48] sm:$0xff] }
0x1018   : > { %v4934_v40 = vadd.f32 %v9058_v21, %v4911_v27  ;;  %v4912_v12 = vadd.f32 %v4896_v35, %v4880_v32  ;;  %4863 = vst.msk [vmem:[#allocation4 + $0x58] sm:$0xff] %vm512_vm0, %v4847_v20 }
0x101a   : > { %4950 = vst.msk [vmem:[%s9065_s17 + $0x40] sm:$0xff] %vm512_vm0, %v4934_v40  ;;  %v4935_v22 = vadd.f32 %v9058_v21, %v4912_v12 }
0x101c   : > { %4951 = vst.msk [vmem:[%s9065_s17 + $0x48] sm:$0xff] %vm512_vm0, %v4935_v22 }
0x101d   : > { %v4897_v45 = vld [vmem:[#allocation4 + $0x50] sm:$0xff] }
0x101e   : > { %v4913_v38 = vadd.f32 %v4897_v45, %v4881_v50 }
0x101f   : > { %v4898_v41 = vld [vmem:[#allocation4 + $0x58] sm:$0xff] }
0x1020   : > { %v4936_v54 = vadd.f32 %v9058_v21, %v4913_v38  ;;  %v4914_v30 = vadd.f32 %v4898_v41, %v4882_v62 }
0x1022   : > { %4952 = vst.msk [vmem:[%s9065_s17 + $0x50] sm:$0xff] %vm512_vm0, %v4936_v54  ;;  %v4937_v61 = vadd.f32 %v9058_v21, %v4914_v30 }
0x1024   : > { %v5370_v19 = vpop.f32.mrb[136].mxu0  ;;  %4953 = vst.msk [vmem:[%s9065_s17 + $0x58] sm:$0xff] %vm512_vm0, %v4937_v61 }
0x1025   : > { %v5371_v60 = vpop.f32.mrb[137].mxu0 }
0x1026   : > { %v5372_v10 = vadd.f32 %v5371_v60, %v5370_v19  ;;  %v5373_v31 = vpop.f32.mrb[138].mxu0 }
0x1027   : > { %v5374_v25 = vpop.f32.mrb[139].mxu0 }
0x1028   : > { %v4848_v42 = vadd.f32 %v5372_v10, %v4591_v16  ;;  %v5375_v13 = vadd.f32 %v5374_v25, %v5373_v31 }
0x102a   : > { %4864 = vst.msk [vmem:[#allocation4 + $0x60] sm:$0xff] %vm512_vm0, %v4848_v42  ;;  %v4849_v2 = vadd.f32 %v5375_v13, %v4592_v39 }
0x102c   : > { %4865 = vst.msk [vmem:[#allocation4 + $0x68] sm:$0xff] %vm512_vm0, %v4849_v2 }
0x1031   : > { %v4899_v52 = vld [vmem:[#allocation4 + $0x60] sm:$0xff] }
0x1032   : > { %v4915_v26 = vadd.f32 %v4899_v52, %v4883_v58 }
0x1033   : > { %v4900_v23 = vld [vmem:[#allocation4 + $0x68] sm:$0xff] }
0x1034   : > { %v4938_v55 = vadd.f32 %v9058_v21, %v4915_v26  ;;  %v4916_v33 = vadd.f32 %v4900_v23, %v4884_v5 }
0x1036   : > { %4954 = vst.msk [vmem:[%s9065_s17 + $0x60] sm:$0xff] %vm512_vm0, %v4938_v55  ;;  %v4939_v63 = vadd.f32 %v9058_v21, %v4916_v33 }
0x1038   : > { %4955 = vst.msk [vmem:[%s9065_s17 + $0x68] sm:$0xff] %vm512_vm0, %v4939_v63  ;;  %v5376_v6 = vpop.f32.mrb[96].mxu1 }
0x1039   : > { %v5377_v59 = vpop.f32.mrb[97].mxu1 }
0x103a   : > { %v5378_v1 = vadd.f32 %v5377_v59, %v5376_v6  ;;  %v5379_v44 = vpop.f32.mrb[98].mxu1 }
0x103b   : > { %v5380_v29 = vpop.f32.mrb[99].mxu1 }
0x103c   : > { %v4850_v18 = vadd.f32 %v5378_v1, %v4593_v37  ;;  %v5381_v3 = vadd.f32 %v5380_v29, %v5379_v44 }
0x103e   : > { %4866 = vst.msk [vmem:[#allocation4 + $0x70] sm:$0xff] %vm512_vm0, %v4850_v18  ;;  %v4851_v9 = vadd.f32 %v5381_v3, %v4594_v57 }
0x1040   : > { %4867 = vst.msk [vmem:[#allocation4 + $0x78] sm:$0xff] %vm512_vm0, %v4851_v9 }
0x1045   : > { %v4901_v14 = vld [vmem:[#allocation4 + $0x70] sm:$0xff] }
0x1046   : > { %v4917_v46 = vadd.f32 %v4901_v14, %v4885_v15 }
0x1047   : > { %v4902_v4 = vld [vmem:[#allocation4 + $0x78] sm:$0xff] }
0x1048   : > { %v4940_v34 = vadd.f32 %v9058_v21, %v4917_v46  ;;  %v4918_v51 = vadd.f32 %v4902_v4, %v4886_v48 }
0x104a   : > { %4956 = vst.msk [vmem:[%s9065_s17 + $0x70] sm:$0xff] %vm512_vm0, %v4940_v34  ;;  %v4941_v17 = vadd.f32 %v9058_v21, %v4918_v51 }
0x104c   : > { %4957 = vst.msk [vmem:[%s9065_s17 + $0x78] sm:$0xff] %vm512_vm0, %v4941_v17 }
0x104d PF: > { %s22_s23 = sadd.s32 1, %s6282_s23   ;;  %s9209_s21 = smov %s6278_s22 }
0x104e   : > { %p19_p5 = scmp.ge.s32.totalorder %s22_s23, 4   ;;  %s9210_s22 = smov %s9212_s24 }
0x1050   :  { %21 = sbr.rel (!%p19_p5) target bundleno = 2 (0x2), region = 115 }

</bundles_post_ra>
